<compile_context>
chip_gen: v7x
topology: tpu7x:2x2x1
jax: 0.10.0
libtpu: 0.0.40
codegen_flags: <defaults>
</compile_context>

<pallas_src>
import functools

import jax
import jax.numpy as jnp
from jax.experimental import pallas as pl
from jax.experimental.pallas import tpu as pltpu

VMEM = pltpu.MemorySpace.VMEM
LANE = 128                       # lane-dense padding for all matmul outputs
MXU_DTYPE = jnp.bfloat16         # MXU operand dtype (accumulation stays f32)

# network hyper-parameters (matconvnet-style layer stack)
KH = KW = 3
LRN_SIZE = 5
LRN_ALPHA = 1e-4
LRN_BETA = 0.75
LRN_K = 2.0

# lane shifts implementing PyTorch's LRN channel window [c - size//2, c + (size-1)//2]
_LRN_SHIFTS = tuple(range(1, LRN_SIZE // 2 + 1)) + tuple(
    -s for s in range(1, (LRN_SIZE - 1) // 2 + 1)
)


# ---------------------------------------------------------------------------
# kernel 1: fused conv(+folded mean) + bias + ReLU + maxpool 2x2 + LRN
# ---------------------------------------------------------------------------
def fused_conv_block_kernel(x_ref, w_ref, b_ref, sel_ref, o_ref, *, H, W, cin):
    HW = H * W

    # 3x3 conv from the VMEM-resident padded slab (no HBM im2col):
    # 9 shifted taps, each a [H*W, cin] x [cin, LANE] matmul, accumulated in f32.
    acc = None
    for kh in range(KH):
        for kw in range(KW):
            tap = x_ref[pl.ds(kh, H), pl.ds(kw, W), :]            # [H, W, cin]
            tap2d = tap.reshape(HW, cin).astype(MXU_DTYPE)
            part = jnp.dot(tap2d, w_ref[kh * KW + kw],
                           preferred_element_type=jnp.float32)    # [H*W, LANE]
            acc = part if acc is None else acc + part

    # 2x2/s2 max-pool via 4 exact 0/1 row-selection matmuls (one per window
    # position) + elementwise max -- stays lane-dense and VMEM-resident.
    pooled = None
    for q in range(4):
        sel_q = jnp.dot(sel_ref[q], acc, preferred_element_type=jnp.float32)
        pooled = sel_q if pooled is None else jnp.maximum(pooled, sel_q)

    # bias (with the averageImage fold) + ReLU; both commute with max-pool, so
    # they are applied on the pooled (4x smaller) tile.
    act = jnp.maximum(pooled + b_ref[...], 0.0)                   # [Hp*Wp, LANE]

    # LocalResponseNorm(size, alpha, beta, k): windowed channel sum of x^2 via
    # lane rolls.  Pad channels are exactly zero, so wrapped-in lanes
    # contribute nothing -- matches PyTorch's zero boundary handling
    # (avg_pool with count_include_pad=True, hence the alpha/size scaling).
    sq = act * act
    win = sq
    for s in _LRN_SHIFTS:
        win = win + pltpu.roll(sq, s % LANE, 1)
    base = LRN_K + (LRN_ALPHA / LRN_SIZE) * win
    if LRN_BETA == 0.75:
        r = jax.lax.rsqrt(base)
        inv = r * jnp.sqrt(r)            # base ** -0.75 without div/exp/log
    else:
        inv = jnp.exp(-LRN_BETA * jnp.log(base))
    o_ref[...] = (act * inv).astype(o_ref.dtype)


def _fused_conv_block(xpad, w_packed, b_fold, sel, *, H, W):
    N, _, _, cin = xpad.shape
    Hp, Wp = H // 2, W // 2
    kernel = functools.partial(fused_conv_block_kernel, H=H, W=W, cin=cin)
    return pl.pallas_call(
        kernel,
        out_shape=jax.ShapeDtypeStruct((N, Hp * Wp, LANE), jnp.float32),
        grid=(N,),
        in_specs=[
            # per-image padded activation slab (squeezed batch dim)
            pl.BlockSpec((None, H + 2, W + 2, cin), lambda n: (n, 0, 0, 0)),
            # conv weights / folded bias / pool selection: same block every
            # grid step -> VMEM-resident across the whole grid
            pl.BlockSpec((KH * KW, cin, LANE), lambda n: (0, 0, 0)),
            pl.BlockSpec((1, LANE), lambda n: (0, 0)),
            pl.BlockSpec((4, Hp * Wp, H * W), lambda n: (0, 0, 0)),
        ],
        out_specs=pl.BlockSpec((None, Hp * Wp, LANE), lambda n: (n, 0, 0)),
        compiler_params=pltpu.CompilerParams(
            dimension_semantics=("parallel",),        # shard images over TCs
            vmem_limit_bytes=32 * 1024 * 1024,        # fits v7x's 64 MiB VMEM
        ),
    )(xpad, w_packed, b_fold, sel)


# ---------------------------------------------------------------------------
# kernel 2: Linear + Softmax(dim=1), classes padded to 128 lanes
# ---------------------------------------------------------------------------
def fc_softmax_kernel(x_ref, w_ref, b_ref, o_ref):
    x = x_ref[...].astype(MXU_DTYPE)
    logits = jnp.dot(x, w_ref[...], preferred_element_type=jnp.float32)
    logits = logits + b_ref[...]          # pad-class bias is -1e30 -> prob 0
    m = jnp.max(logits, axis=-1, keepdims=True)
    e = jnp.exp(logits - m)
    o_ref[...] = (e / jnp.sum(e, axis=-1, keepdims=True)).astype(o_ref.dtype)


def _fc_softmax(x_flat, w_fc, b_fc):
    N = x_flat.shape[0]
    return pl.pallas_call(
        fc_softmax_kernel,
        out_shape=jax.ShapeDtypeStruct((N, LANE), jnp.float32),
        in_specs=[pl.BlockSpec(memory_space=VMEM)] * 3,
        out_specs=pl.BlockSpec(memory_space=VMEM),
        compiler_params=pltpu.CompilerParams(vmem_limit_bytes=32 * 1024 * 1024),
    )(x_flat, w_fc, b_fc)


# ---------------------------------------------------------------------------
# parameters
# ---------------------------------------------------------------------------
def init_params(key, cin, cout, hw, num_classes):
    """Raw parameters in the original (PyTorch / matconvnet) layout."""
    ks = jax.random.split(key, 5)
    hp = hw // 2
    return {
        # per-channel averageImage (meta.normalization.averageImage)
        "mean": 0.5 * jax.random.normal(ks[0], (cin,), jnp.float32),
        # matconvnet conv weights are HWIO
        "conv_w": 0.1 * jax.random.normal(ks[1], (KH, KW, cin, cout), jnp.float32),
        "conv_b": 0.1 * jax.random.normal(ks[2], (cout,), jnp.float32),
        # nn.Linear applied to x.view(N, -1) of an NCHW tensor -> the input
        # rows are in (c, h, w) order; stored as [in, out] so forward is x @ W + b.
        "fc_w": 0.05 * jax.random.normal(ks[3], (cout * hp * hp, num_classes), jnp.float32),
        "fc_b": 0.05 * jax.random.normal(ks[4], (num_classes,), jnp.float32),
    }


def prepare_kernel_params(raw, *, H, W):
    """One-time host-side packing: lane padding to 128, mean fold into the
    conv bias, pool selection matrices, fc-weight row permutation to the
    fused kernel's (h, w, c_pad) flatten order, bf16 weights for the MXU."""
    KHW = KH * KW
    _, _, cin, cout = raw["conv_w"].shape
    nc = raw["fc_w"].shape[1]
    Hp, Wp = H // 2, W // 2
    assert cout + LRN_SIZE <= LANE    # zero pad lanes fully cover the LRN window
    assert nc <= LANE

    # conv weight: HWIO -> [9, cin, LANE] with zero-padded output channels
    w = raw["conv_w"].reshape(KHW, cin, cout)
    w_packed = jnp.zeros((KHW, cin, LANE), jnp.float32).at[:, :, :cout].set(w)

    # fold the averageImage subtraction into the bias:
    #   conv(x - mean) = conv(x) - sum_{kh,kw,ci} w[kh,kw,ci,o] * mean[ci]
    # exact everywhere because the padded ring of the slab carries the mean.
    mean_corr = jnp.einsum("kio,i->o", w, raw["mean"])
    b_fold = jnp.zeros((1, LANE), jnp.float32).at[0, :cout].set(
        raw["conv_b"] - mean_corr
    )

    # 0/1 row-selection matrices for the 4 positions of each 2x2 pool window
    hp_idx = jnp.arange(Hp * Wp) // Wp
    wp_idx = jnp.arange(Hp * Wp) % Wp
    sels = []
    for dy in (0, 1):
        for dx in (0, 1):
            rows = (2 * hp_idx + dy) * W + (2 * wp_idx + dx)
            sels.append(jax.nn.one_hot(rows, H * W, dtype=jnp.float32))
    sel = jnp.stack(sels)                                  # [4, Hp*Wp, H*W]

    # fc weight: reorder rows from torch's (c, h, w) flatten to the fused
    # kernel's (h, w, c_pad) output layout; zero-pad channels and classes.
    w_fc = raw["fc_w"].reshape(cout, Hp * Wp, nc).transpose(1, 0, 2)  # [HpWp, cout, nc]
    w_fc = jnp.zeros((Hp * Wp, LANE, LANE), jnp.float32).at[:, :cout, :nc].set(w_fc)
    w_fc = w_fc.reshape(Hp * Wp * LANE, LANE)
    # pad-class bias = -1e30 so their softmax probability is exactly 0
    b_fc = jnp.full((1, LANE), -1e30, jnp.float32).at[0, :nc].set(raw["fc_b"])

    return {
        "mean": raw["mean"],
        "w_conv": w_packed.astype(MXU_DTYPE),
        "b_conv": b_fold,
        "sel": sel,
        "w_fc": w_fc.astype(MXU_DTYPE),
        "b_fc": b_fc,
    }


# ---------------------------------------------------------------------------
# forward pass
# ---------------------------------------------------------------------------
def matconvnet_forward(x_nchw, params, *, num_classes):
    N, C, H, W = x_nchw.shape
    assert H % 2 == 0 and W % 2 == 0      # MaxPool2d(2,2) floor behaviour
    Hp, Wp = H // 2, W // 2

    # NCHW -> NHWC and build the padded slab.  The 1-pixel ring carries the
    # per-channel averageImage so the mean fold in the conv bias is exact at
    # the borders (== zero-padding the mean-subtracted input, as PyTorch does).
    x = jnp.transpose(x_nchw, (0, 2, 3, 1))
    xpad = jnp.broadcast_to(params["mean"].reshape(1, 1, 1, C),
                            (N, H + 2, W + 2, C))
    xpad = xpad.at[:, 1:H + 1, 1:W + 1, :].set(x)

    # fused conv + bias + ReLU + maxpool + LRN (one kernel, one HBM pass)
    feats = _fused_conv_block(xpad, params["w_conv"], params["b_conv"],
                              params["sel"], H=H, W=W)      # [N, Hp*Wp, LANE]

    # flatten in the kernel's (h, w, c_pad) order -- fc weights were permuted
    # at init to match, so no activation transpose is needed.
    x_flat = feats.reshape(N, Hp * Wp * LANE)
    probs = _fc_softmax(x_flat, params["w_fc"], params["b_fc"])  # [N, LANE]
    return probs[:, :num_classes]


# ---------------------------------------------------------------------------
# main
# ---------------------------------------------------------------------------
if __name__ == "__main__":
    key = jax.random.PRNGKey(0)
    k_in, k_par = jax.random.split(key)

    N, C, H, W = 2, 4, 16, 16
    COUT, NUM_CLASSES = 8, 10

    x = jax.random.normal(k_in, (N, C, H, W), jnp.float32)   # NCHW like PyTorch
    raw_params = init_params(k_par, C, COUT, H, NUM_CLASSES)
    params = prepare_kernel_params(raw_params, H=H, W=W)

    fwd = jax.jit(functools.partial(matconvnet_forward, num_classes=NUM_CLASSES))
    out = jax.block_until_ready(fwd(x, params))

    assert out.shape == (N, NUM_CLASSES), out.shape
    assert bool(jnp.all(jnp.isfinite(out)))
    # Softmax(dim=1) rows sum to 1 (pad-class probabilities are exactly 0)
    assert bool(jnp.allclose(jnp.sum(out, axis=1), 1.0, atol=1e-4))
    print("KERNEL_OK")
</pallas_src>

<mosaic_0001>
module attributes {stable_mosaic.version = 11 : i64} {
  func.func @fused_conv_block_kernel(%arg0: i32, %arg1: memref<1x18x18x4xf32, #tpu.memory_space<vmem>>, %arg2: memref<9x4x128xbf16, #tpu.memory_space<vmem>>, %arg3: memref<1x128xf32, #tpu.memory_space<vmem>>, %arg4: memref<4x64x256xf32, #tpu.memory_space<vmem>>, %arg5: memref<1x64x128xf32, #tpu.memory_space<vmem>>) attributes {dimension_semantics = [#tpu.dimension_semantics<parallel>], iteration_bounds = array<i64: 2>, scalar_prefetch = 0 : i64, scratch_operands = 0 : i64, tpu.core_type = #tpu.core_type<tc>, window_params = [{transform_indices = @transform_0, window_bounds = array<i64: 1, 18, 18, 4>}, {pipeline_mode = #tpu.pipeline_mode<synchronous>, transform_indices = @transform_1, window_bounds = array<i64: 9, 4, 128>}, {pipeline_mode = #tpu.pipeline_mode<synchronous>, transform_indices = @transform_2, window_bounds = array<i64: 1, 128>}, {pipeline_mode = #tpu.pipeline_mode<synchronous>, transform_indices = @transform_3, window_bounds = array<i64: 4, 64, 256>}, {transform_indices = @transform_4, window_bounds = array<i64: 1, 64, 128>}]} {
    %c0 = arith.constant 0 : index
    %c0_0 = arith.constant 0 : index
    %c0_1 = arith.constant 0 : index
    %c0_2 = arith.constant 0 : index
    %0 = vector.load %arg1[%c0, %c0_0, %c0_1, %c0_2] : memref<1x18x18x4xf32, #tpu.memory_space<vmem>>, vector<1x16x16x4xf32>
    %1 = vector.shape_cast %0 : vector<1x16x16x4xf32> to vector<16x16x4xf32>
    %2 = vector.shape_cast %1 : vector<16x16x4xf32> to vector<256x4xf32>
    %3 = arith.truncf %2 : vector<256x4xf32> to vector<256x4xbf16>
    %c0_3 = arith.constant 0 : index
    %c0_4 = arith.constant 0 : index
    %c0_5 = arith.constant 0 : index
    %4 = vector.load %arg2[%c0_3, %c0_4, %c0_5] : memref<9x4x128xbf16, #tpu.memory_space<vmem>>, vector<1x4x128xbf16>
    %5 = vector.shape_cast %4 : vector<1x4x128xbf16> to vector<4x128xbf16>
    %cst = arith.constant dense<0.000000e+00> : vector<256x128xf32>
    %6 = tpu.matmul %3, %5, %cst {dimension_numbers = #tpu.dot_dimension_numbers<[1], [0], [0], [1], [0, 0, 1, 1], [], []>} : vector<256x4xbf16>, vector<4x128xbf16>, vector<256x128xf32> -> vector<256x128xf32>
    %c0_6 = arith.constant 0 : index
    %c0_7 = arith.constant 0 : index
    %c1 = arith.constant 1 : index
    %c0_8 = arith.constant 0 : index
    %7 = vector.load %arg1[%c0_6, %c0_7, %c1, %c0_8] : memref<1x18x18x4xf32, #tpu.memory_space<vmem>>, vector<1x16x16x4xf32>
    %8 = vector.shape_cast %7 : vector<1x16x16x4xf32> to vector<16x16x4xf32>
    %9 = vector.shape_cast %8 : vector<16x16x4xf32> to vector<256x4xf32>
    %10 = arith.truncf %9 : vector<256x4xf32> to vector<256x4xbf16>
    %c1_9 = arith.constant 1 : index
    %c0_10 = arith.constant 0 : index
    %c0_11 = arith.constant 0 : index
    %11 = vector.load %arg2[%c1_9, %c0_10, %c0_11] : memref<9x4x128xbf16, #tpu.memory_space<vmem>>, vector<1x4x128xbf16>
    %12 = vector.shape_cast %11 : vector<1x4x128xbf16> to vector<4x128xbf16>
    %cst_12 = arith.constant dense<0.000000e+00> : vector<256x128xf32>
    %13 = tpu.matmul %10, %12, %cst_12 {dimension_numbers = #tpu.dot_dimension_numbers<[1], [0], [0], [1], [0, 0, 1, 1], [], []>} : vector<256x4xbf16>, vector<4x128xbf16>, vector<256x128xf32> -> vector<256x128xf32>
    %14 = arith.addf %6, %13 : vector<256x128xf32>
    %c0_13 = arith.constant 0 : index
    %c0_14 = arith.constant 0 : index
    %c2 = arith.constant 2 : index
    %c0_15 = arith.constant 0 : index
    %15 = vector.load %arg1[%c0_13, %c0_14, %c2, %c0_15] : memref<1x18x18x4xf32, #tpu.memory_space<vmem>>, vector<1x16x16x4xf32>
    %16 = vector.shape_cast %15 : vector<1x16x16x4xf32> to vector<16x16x4xf32>
    %17 = vector.shape_cast %16 : vector<16x16x4xf32> to vector<256x4xf32>
    %18 = arith.truncf %17 : vector<256x4xf32> to vector<256x4xbf16>
    %c2_16 = arith.constant 2 : index
    %c0_17 = arith.constant 0 : index
    %c0_18 = arith.constant 0 : index
    %19 = vector.load %arg2[%c2_16, %c0_17, %c0_18] : memref<9x4x128xbf16, #tpu.memory_space<vmem>>, vector<1x4x128xbf16>
    %20 = vector.shape_cast %19 : vector<1x4x128xbf16> to vector<4x128xbf16>
    %cst_19 = arith.constant dense<0.000000e+00> : vector<256x128xf32>
    %21 = tpu.matmul %18, %20, %cst_19 {dimension_numbers = #tpu.dot_dimension_numbers<[1], [0], [0], [1], [0, 0, 1, 1], [], []>} : vector<256x4xbf16>, vector<4x128xbf16>, vector<256x128xf32> -> vector<256x128xf32>
    %22 = arith.addf %14, %21 : vector<256x128xf32>
    %c0_20 = arith.constant 0 : index
    %c1_21 = arith.constant 1 : index
    %c0_22 = arith.constant 0 : index
    %c0_23 = arith.constant 0 : index
    %23 = vector.load %arg1[%c0_20, %c1_21, %c0_22, %c0_23] : memref<1x18x18x4xf32, #tpu.memory_space<vmem>>, vector<1x16x16x4xf32>
    %24 = vector.shape_cast %23 : vector<1x16x16x4xf32> to vector<16x16x4xf32>
    %25 = vector.shape_cast %24 : vector<16x16x4xf32> to vector<256x4xf32>
    %26 = arith.truncf %25 : vector<256x4xf32> to vector<256x4xbf16>
    %c3 = arith.constant 3 : index
    %c0_24 = arith.constant 0 : index
    %c0_25 = arith.constant 0 : index
    %27 = vector.load %arg2[%c3, %c0_24, %c0_25] : memref<9x4x128xbf16, #tpu.memory_space<vmem>>, vector<1x4x128xbf16>
    %28 = vector.shape_cast %27 : vector<1x4x128xbf16> to vector<4x128xbf16>
    %cst_26 = arith.constant dense<0.000000e+00> : vector<256x128xf32>
    %29 = tpu.matmul %26, %28, %cst_26 {dimension_numbers = #tpu.dot_dimension_numbers<[1], [0], [0], [1], [0, 0, 1, 1], [], []>} : vector<256x4xbf16>, vector<4x128xbf16>, vector<256x128xf32> -> vector<256x128xf32>
    %30 = arith.addf %22, %29 : vector<256x128xf32>
    %c0_27 = arith.constant 0 : index
    %c1_28 = arith.constant 1 : index
    %c1_29 = arith.constant 1 : index
    %c0_30 = arith.constant 0 : index
    %31 = vector.load %arg1[%c0_27, %c1_28, %c1_29, %c0_30] : memref<1x18x18x4xf32, #tpu.memory_space<vmem>>, vector<1x16x16x4xf32>
    %32 = vector.shape_cast %31 : vector<1x16x16x4xf32> to vector<16x16x4xf32>
    %33 = vector.shape_cast %32 : vector<16x16x4xf32> to vector<256x4xf32>
    %34 = arith.truncf %33 : vector<256x4xf32> to vector<256x4xbf16>
    %c4 = arith.constant 4 : index
    %c0_31 = arith.constant 0 : index
    %c0_32 = arith.constant 0 : index
    %35 = vector.load %arg2[%c4, %c0_31, %c0_32] : memref<9x4x128xbf16, #tpu.memory_space<vmem>>, vector<1x4x128xbf16>
    %36 = vector.shape_cast %35 : vector<1x4x128xbf16> to vector<4x128xbf16>
    %cst_33 = arith.constant dense<0.000000e+00> : vector<256x128xf32>
    %37 = tpu.matmul %34, %36, %cst_33 {dimension_numbers = #tpu.dot_dimension_numbers<[1], [0], [0], [1], [0, 0, 1, 1], [], []>} : vector<256x4xbf16>, vector<4x128xbf16>, vector<256x128xf32> -> vector<256x128xf32>
    %38 = arith.addf %30, %37 : vector<256x128xf32>
    %c0_34 = arith.constant 0 : index
    %c1_35 = arith.constant 1 : index
    %c2_36 = arith.constant 2 : index
    %c0_37 = arith.constant 0 : index
    %39 = vector.load %arg1[%c0_34, %c1_35, %c2_36, %c0_37] : memref<1x18x18x4xf32, #tpu.memory_space<vmem>>, vector<1x16x16x4xf32>
    %40 = vector.shape_cast %39 : vector<1x16x16x4xf32> to vector<16x16x4xf32>
    %41 = vector.shape_cast %40 : vector<16x16x4xf32> to vector<256x4xf32>
    %42 = arith.truncf %41 : vector<256x4xf32> to vector<256x4xbf16>
    %c5 = arith.constant 5 : index
    %c0_38 = arith.constant 0 : index
    %c0_39 = arith.constant 0 : index
    %43 = vector.load %arg2[%c5, %c0_38, %c0_39] : memref<9x4x128xbf16, #tpu.memory_space<vmem>>, vector<1x4x128xbf16>
    %44 = vector.shape_cast %43 : vector<1x4x128xbf16> to vector<4x128xbf16>
    %cst_40 = arith.constant dense<0.000000e+00> : vector<256x128xf32>
    %45 = tpu.matmul %42, %44, %cst_40 {dimension_numbers = #tpu.dot_dimension_numbers<[1], [0], [0], [1], [0, 0, 1, 1], [], []>} : vector<256x4xbf16>, vector<4x128xbf16>, vector<256x128xf32> -> vector<256x128xf32>
    %46 = arith.addf %38, %45 : vector<256x128xf32>
    %c0_41 = arith.constant 0 : index
    %c2_42 = arith.constant 2 : index
    %c0_43 = arith.constant 0 : index
    %c0_44 = arith.constant 0 : index
    %47 = vector.load %arg1[%c0_41, %c2_42, %c0_43, %c0_44] : memref<1x18x18x4xf32, #tpu.memory_space<vmem>>, vector<1x16x16x4xf32>
    %48 = vector.shape_cast %47 : vector<1x16x16x4xf32> to vector<16x16x4xf32>
    %49 = vector.shape_cast %48 : vector<16x16x4xf32> to vector<256x4xf32>
    %50 = arith.truncf %49 : vector<256x4xf32> to vector<256x4xbf16>
    %c6 = arith.constant 6 : index
    %c0_45 = arith.constant 0 : index
    %c0_46 = arith.constant 0 : index
    %51 = vector.load %arg2[%c6, %c0_45, %c0_46] : memref<9x4x128xbf16, #tpu.memory_space<vmem>>, vector<1x4x128xbf16>
    %52 = vector.shape_cast %51 : vector<1x4x128xbf16> to vector<4x128xbf16>
    %cst_47 = arith.constant dense<0.000000e+00> : vector<256x128xf32>
    %53 = tpu.matmul %50, %52, %cst_47 {dimension_numbers = #tpu.dot_dimension_numbers<[1], [0], [0], [1], [0, 0, 1, 1], [], []>} : vector<256x4xbf16>, vector<4x128xbf16>, vector<256x128xf32> -> vector<256x128xf32>
    %54 = arith.addf %46, %53 : vector<256x128xf32>
    %c0_48 = arith.constant 0 : index
    %c2_49 = arith.constant 2 : index
    %c1_50 = arith.constant 1 : index
    %c0_51 = arith.constant 0 : index
    %55 = vector.load %arg1[%c0_48, %c2_49, %c1_50, %c0_51] : memref<1x18x18x4xf32, #tpu.memory_space<vmem>>, vector<1x16x16x4xf32>
    %56 = vector.shape_cast %55 : vector<1x16x16x4xf32> to vector<16x16x4xf32>
    %57 = vector.shape_cast %56 : vector<16x16x4xf32> to vector<256x4xf32>
    %58 = arith.truncf %57 : vector<256x4xf32> to vector<256x4xbf16>
    %c7 = arith.constant 7 : index
    %c0_52 = arith.constant 0 : index
    %c0_53 = arith.constant 0 : index
    %59 = vector.load %arg2[%c7, %c0_52, %c0_53] : memref<9x4x128xbf16, #tpu.memory_space<vmem>>, vector<1x4x128xbf16>
    %60 = vector.shape_cast %59 : vector<1x4x128xbf16> to vector<4x128xbf16>
    %cst_54 = arith.constant dense<0.000000e+00> : vector<256x128xf32>
    %61 = tpu.matmul %58, %60, %cst_54 {dimension_numbers = #tpu.dot_dimension_numbers<[1], [0], [0], [1], [0, 0, 1, 1], [], []>} : vector<256x4xbf16>, vector<4x128xbf16>, vector<256x128xf32> -> vector<256x128xf32>
    %62 = arith.addf %54, %61 : vector<256x128xf32>
    %c0_55 = arith.constant 0 : index
    %c2_56 = arith.constant 2 : index
    %c2_57 = arith.constant 2 : index
    %c0_58 = arith.constant 0 : index
    %63 = vector.load %arg1[%c0_55, %c2_56, %c2_57, %c0_58] : memref<1x18x18x4xf32, #tpu.memory_space<vmem>>, vector<1x16x16x4xf32>
    %64 = vector.shape_cast %63 : vector<1x16x16x4xf32> to vector<16x16x4xf32>
    %65 = vector.shape_cast %64 : vector<16x16x4xf32> to vector<256x4xf32>
    %66 = arith.truncf %65 : vector<256x4xf32> to vector<256x4xbf16>
    %c8 = arith.constant 8 : index
    %c0_59 = arith.constant 0 : index
    %c0_60 = arith.constant 0 : index
    %67 = vector.load %arg2[%c8, %c0_59, %c0_60] : memref<9x4x128xbf16, #tpu.memory_space<vmem>>, vector<1x4x128xbf16>
    %68 = vector.shape_cast %67 : vector<1x4x128xbf16> to vector<4x128xbf16>
    %cst_61 = arith.constant dense<0.000000e+00> : vector<256x128xf32>
    %69 = tpu.matmul %66, %68, %cst_61 {dimension_numbers = #tpu.dot_dimension_numbers<[1], [0], [0], [1], [0, 0, 1, 1], [], []>} : vector<256x4xbf16>, vector<4x128xbf16>, vector<256x128xf32> -> vector<256x128xf32>
    %70 = arith.addf %62, %69 : vector<256x128xf32>
    %c0_62 = arith.constant 0 : index
    %c0_63 = arith.constant 0 : index
    %c0_64 = arith.constant 0 : index
    %71 = vector.load %arg4[%c0_62, %c0_63, %c0_64] : memref<4x64x256xf32, #tpu.memory_space<vmem>>, vector<1x64x256xf32>
    %72 = vector.shape_cast %71 : vector<1x64x256xf32> to vector<64x256xf32>
    %cst_65 = arith.constant dense<0.000000e+00> : vector<64x128xf32>
    %73 = tpu.matmul %72, %70, %cst_65 {dimension_numbers = #tpu.dot_dimension_numbers<[1], [0], [0], [1], [0, 0, 1, 1], [], []>} : vector<64x256xf32>, vector<256x128xf32>, vector<64x128xf32> -> vector<64x128xf32>
    %c1_66 = arith.constant 1 : index
    %c0_67 = arith.constant 0 : index
    %c0_68 = arith.constant 0 : index
    %74 = vector.load %arg4[%c1_66, %c0_67, %c0_68] : memref<4x64x256xf32, #tpu.memory_space<vmem>>, vector<1x64x256xf32>
    %75 = vector.shape_cast %74 : vector<1x64x256xf32> to vector<64x256xf32>
    %cst_69 = arith.constant dense<0.000000e+00> : vector<64x128xf32>
    %76 = tpu.matmul %75, %70, %cst_69 {dimension_numbers = #tpu.dot_dimension_numbers<[1], [0], [0], [1], [0, 0, 1, 1], [], []>} : vector<64x256xf32>, vector<256x128xf32>, vector<64x128xf32> -> vector<64x128xf32>
    %77 = arith.maximumf %73, %76 : vector<64x128xf32>
    %c2_70 = arith.constant 2 : index
    %c0_71 = arith.constant 0 : index
    %c0_72 = arith.constant 0 : index
    %78 = vector.load %arg4[%c2_70, %c0_71, %c0_72] : memref<4x64x256xf32, #tpu.memory_space<vmem>>, vector<1x64x256xf32>
    %79 = vector.shape_cast %78 : vector<1x64x256xf32> to vector<64x256xf32>
    %cst_73 = arith.constant dense<0.000000e+00> : vector<64x128xf32>
    %80 = tpu.matmul %79, %70, %cst_73 {dimension_numbers = #tpu.dot_dimension_numbers<[1], [0], [0], [1], [0, 0, 1, 1], [], []>} : vector<64x256xf32>, vector<256x128xf32>, vector<64x128xf32> -> vector<64x128xf32>
    %81 = arith.maximumf %77, %80 : vector<64x128xf32>
    %c3_74 = arith.constant 3 : index
    %c0_75 = arith.constant 0 : index
    %c0_76 = arith.constant 0 : index
    %82 = vector.load %arg4[%c3_74, %c0_75, %c0_76] : memref<4x64x256xf32, #tpu.memory_space<vmem>>, vector<1x64x256xf32>
    %83 = vector.shape_cast %82 : vector<1x64x256xf32> to vector<64x256xf32>
    %cst_77 = arith.constant dense<0.000000e+00> : vector<64x128xf32>
    %84 = tpu.matmul %83, %70, %cst_77 {dimension_numbers = #tpu.dot_dimension_numbers<[1], [0], [0], [1], [0, 0, 1, 1], [], []>} : vector<64x256xf32>, vector<256x128xf32>, vector<64x128xf32> -> vector<64x128xf32>
    %85 = arith.maximumf %81, %84 : vector<64x128xf32>
    %c0_78 = arith.constant 0 : index
    %c0_79 = arith.constant 0 : index
    %86 = vector.load %arg3[%c0_78, %c0_79] : memref<1x128xf32, #tpu.memory_space<vmem>>, vector<1x128xf32>
    %87 = vector.broadcast %86 : vector<1x128xf32> to vector<64x128xf32>
    %88 = arith.addf %85, %87 : vector<64x128xf32>
    %cst_80 = arith.constant 0.000000e+00 : f32
    %89 = vector.broadcast %cst_80 : f32 to vector<64x128xf32>
    %90 = arith.maximumf %88, %89 : vector<64x128xf32>
    %91 = arith.mulf %90, %90 : vector<64x128xf32>
    %c1_i32 = arith.constant 1 : i32
    %92 = tpu.dynamic_rotate %91 by %c1_i32 dim 1 : vector<64x128xf32>, i32 -> vector<64x128xf32>
    %93 = arith.addf %91, %92 : vector<64x128xf32>
    %c2_i32 = arith.constant 2 : i32
    %94 = tpu.dynamic_rotate %91 by %c2_i32 dim 1 : vector<64x128xf32>, i32 -> vector<64x128xf32>
    %95 = arith.addf %93, %94 : vector<64x128xf32>
    %c127_i32 = arith.constant 127 : i32
    %96 = tpu.dynamic_rotate %91 by %c127_i32 dim 1 : vector<64x128xf32>, i32 -> vector<64x128xf32>
    %97 = arith.addf %95, %96 : vector<64x128xf32>
    %c126_i32 = arith.constant 126 : i32
    %98 = tpu.dynamic_rotate %91 by %c126_i32 dim 1 : vector<64x128xf32>, i32 -> vector<64x128xf32>
    %99 = arith.addf %97, %98 : vector<64x128xf32>
    %cst_81 = arith.constant 2.000000e-05 : f32
    %100 = vector.broadcast %cst_81 : f32 to vector<64x128xf32>
    %101 = arith.mulf %100, %99 : vector<64x128xf32>
    %cst_82 = arith.constant 2.000000e+00 : f32
    %102 = vector.broadcast %cst_82 : f32 to vector<64x128xf32>
    %103 = arith.addf %102, %101 : vector<64x128xf32>
    %104 = math.rsqrt %103 : vector<64x128xf32>
    %105 = math.sqrt %104 : vector<64x128xf32>
    %106 = arith.mulf %104, %105 : vector<64x128xf32>
    %107 = arith.mulf %90, %106 : vector<64x128xf32>
    %c0_83 = arith.constant 0 : index
    %c0_84 = arith.constant 0 : index
    %c0_85 = arith.constant 0 : index
    %108 = vector.load %arg5[%c0_83, %c0_84, %c0_85] : memref<1x64x128xf32, #tpu.memory_space<vmem>>, vector<1x64x128xf32>
    %109 = vector.shape_cast %108 : vector<1x64x128xf32> to vector<64x128xf32>
    %110 = vector.shape_cast %107 : vector<64x128xf32> to vector<1x64x128xf32>
    tpu.vector_store %arg5[%c0_83, %c0_84, %c0_85], %110 {strides = array<i32>} : memref<1x64x128xf32, #tpu.memory_space<vmem>>, vector<1x64x128xf32>,
    return
  }
  func.func @transform_0(%arg0: i32) -> (i32, i32, i32, i32) {
    %c0_i32 = arith.constant 0 : i32
    %c0_i32_0 = arith.constant 0 : i32
    %c0_i32_1 = arith.constant 0 : i32
    %c0_i32_2 = arith.constant 0 : i32
    return %arg0, %c0_i32, %c0_i32_0, %c0_i32_1 : i32, i32, i32, i32
  }
  func.func @transform_1(%arg0: i32) -> (i32, i32, i32) {
    %c0_i32 = arith.constant 0 : i32
    %c0_i32_0 = arith.constant 0 : i32
    %c0_i32_1 = arith.constant 0 : i32
    %c0_i32_2 = arith.constant 0 : i32
    return %c0_i32, %c0_i32_0, %c0_i32_1 : i32, i32, i32
  }
  func.func @transform_2(%arg0: i32) -> (i32, i32) {
    %c0_i32 = arith.constant 0 : i32
    %c0_i32_0 = arith.constant 0 : i32
    %c0_i32_1 = arith.constant 0 : i32
    return %c0_i32, %c0_i32_0 : i32, i32
  }
  func.func @transform_3(%arg0: i32) -> (i32, i32, i32) {
    %c0_i32 = arith.constant 0 : i32
    %c0_i32_0 = arith.constant 0 : i32
    %c0_i32_1 = arith.constant 0 : i32
    %c0_i32_2 = arith.constant 0 : i32
    return %c0_i32, %c0_i32_0, %c0_i32_1 : i32, i32, i32
  }
  func.func @transform_4(%arg0: i32) -> (i32, i32, i32) {
    %c0_i32 = arith.constant 0 : i32
    %c0_i32_0 = arith.constant 0 : i32
    %c0_i32_1 = arith.constant 0 : i32
    return %arg0, %c0_i32, %c0_i32_0 : i32, i32, i32
  }
}

module attributes {stable_mosaic.version = 11 : i64} {
  func.func @fc_softmax_kernel(%arg0: memref<2x8192xf32, #tpu.memory_space<vmem>>, %arg1: memref<8192x128xbf16, #tpu.memory_space<vmem>>, %arg2: memref<1x128xf32, #tpu.memory_space<vmem>>, %arg3: memref<2x128xf32, #tpu.memory_space<vmem>>) attributes {dimension_semantics = [], scalar_prefetch = 0 : i64, scratch_operands = 0 : i64, tpu.core_type = #tpu.core_type<tc>} {
    %c0 = arith.constant 0 : index
    %c0_0 = arith.constant 0 : index
    %0 = vector.load %arg0[%c0, %c0_0] : memref<2x8192xf32, #tpu.memory_space<vmem>>, vector<2x8192xf32>
    %1 = arith.truncf %0 : vector<2x8192xf32> to vector<2x8192xbf16>
    %c0_1 = arith.constant 0 : index
    %c0_2 = arith.constant 0 : index
    %2 = vector.load %arg1[%c0_1, %c0_2] : memref<8192x128xbf16, #tpu.memory_space<vmem>>, vector<8192x128xbf16>
    %cst = arith.constant dense<0.000000e+00> : vector<2x128xf32>
    %3 = tpu.matmul %1, %2, %cst {dimension_numbers = #tpu.dot_dimension_numbers<[1], [0], [0], [1], [0, 0, 1, 1], [], []>} : vector<2x8192xbf16>, vector<8192x128xbf16>, vector<2x128xf32> -> vector<2x128xf32>
    %c0_3 = arith.constant 0 : index
    %c0_4 = arith.constant 0 : index
    %4 = vector.load %arg2[%c0_3, %c0_4] : memref<1x128xf32, #tpu.memory_space<vmem>>, vector<1x128xf32>
    %5 = vector.broadcast %4 : vector<1x128xf32> to vector<2x128xf32>
    %6 = arith.addf %3, %5 : vector<2x128xf32>
    %cst_5 = arith.constant dense<0xFF800000> : vector<2xf32>
    %7 = vector.multi_reduction <maximumf>, %6, %cst_5 [1] : vector<2x128xf32> to vector<2xf32>
    %8 = vector.shape_cast %7 : vector<2xf32> to vector<2x1xf32>
    %9 = vector.broadcast %8 : vector<2x1xf32> to vector<2x128xf32>
    %10 = arith.subf %6, %9 : vector<2x128xf32>
    %11 = math.exp %10 : vector<2x128xf32>
    %cst_6 = arith.constant dense<0.000000e+00> : vector<2xf32>
    %12 = vector.multi_reduction <add>, %11, %cst_6 [1] : vector<2x128xf32> to vector<2xf32>
    %13 = vector.shape_cast %12 : vector<2xf32> to vector<2x1xf32>
    %14 = vector.broadcast %13 : vector<2x1xf32> to vector<2x128xf32>
    %15 = arith.divf %11, %14 : vector<2x128xf32>
    %c0_7 = arith.constant 0 : index
    %c0_8 = arith.constant 0 : index
    %16 = vector.load %arg3[%c0_7, %c0_8] : memref<2x128xf32, #tpu.memory_space<vmem>>, vector<2x128xf32>
    tpu.vector_store %arg3[%c0_7, %c0_8], %15 {strides = array<i32>} : memref<2x128xf32, #tpu.memory_space<vmem>>, vector<2x128xf32>,
    return
  }
}

</mosaic_0001>

<bundles_post_ra>
// kernel: matconvnet_forward.2
= control target key start
LH: loop header
LB: loop body
LE: loop exit
PB: predicated region body
PF: predicated region fallthrough
CT: control target
= control target key end

     0   :  { %9 = vsyncpa [#allocation3], 0  ;;  %s6246_s0 = inlined_call_operand.vmem [shape: f32[2,18,18,4], index: 0, kind: input, shape index: {}]   ;;  %s6247_s1 = inlined_call_operand.hbm [shape: bf16[9,4,128], index: 1, kind: input, shape index: {}]   ;;  %s6248_s2 = inlined_call_operand.hbm [shape: f32[1,128], index: 2, kind: input, shape index: {}]   ;;  %s6249_s3 = inlined_call_operand.hbm [shape: f32[4,64,256], index: 3, kind: input, shape index: {}]   ;;  %s6250_s4 = inlined_call_operand.vmem [shape: f32[2,64,128], index: 4, kind: output, shape index: {}]  }
   0x1   :  { %10 = vsyncpa [#allocation5], 0  ;;  %s5303_s15 = smov 0  }
   0x2 LB: > { %s5267_s16 = smov [#allocation4]   ;;  %s5309_s18 = sadd.s32 4294967295, %s5265_s15   ;;  %s5265_s15 = sphi %s5303_s15, %s16_s15  }
   0x3   : > { %s162_s17 = sshll.u32 %s5267_s16, 4  ;;  %p3656_p0 = scmp.ge.s32.totalorder %s5265_s15, 1  ;;  %s163_s17 = int_to_ptr.vmem [resolvable:$true] %s162_s17 }
   0x4   : > { %p136_p1 = scmp.lt.s32.totalorder %s5265_s15, 3  ;;  %p6251_p2 = scmp.eq.s32.totalorder %s5309_s18, 0 }
   0x5   : > { %s5268_s20 = smov [#allocation2]   ;;  %s5269_s23 = smov [#allocation6]  }
   0x6   : > { %p5314_p3 = pnand %p3656_p0, %p136_p1  ;;  %s148_s21 = sshll.u32 %s5268_s20, 4  ;;  %s5320_s21 = int_to_ptr.vmem [resolvable:$true] %s148_s21 }
   0x7   : > { %s172_s24 = sshll.u32 %s5269_s23, 4  ;;  %s5167_s27 = scalar_lea.hbm %s6248_s2, 16  ;;  %s5328_s24 = int_to_ptr.vmem [resolvable:$true] %s172_s24 }
   0x8   : > { %s6253_s19 = scalar_select %p5314_p3, 1, 0 }
   0x9   : > { %p5100_p4 = pneg %p5314_p3  ;;  %p5168_p6 = scmp.ne.s32.totalorder %s6248_s2, %s5167_s27 }
   0xa   : > { %p5174_p10 = scmp.lt.u32.totalorder %s5167_s27, %s6248_s2 }
   0xb   : > { %p5324_p5 = pnand %p6251_p2, %p5100_p4 }
   0xd   : > { %p5338_p7 = pneg %p5324_p5 }
   0xf   : > { %p5170_p8 = pnand %p5338_p7, %p5168_p6 }
  0x11   : > { %p5171_p9 = pneg %p5170_p8 }
  0x13   : > { %p5176_p11 = pnand %p5174_p10, %p5171_p9 }
  0x15   : > { %5179 = shalt.err (!%p5176_p11)
}
  0x16   : > { %s5180_s7 = scalar_lea.vmem %s163_s17, 16  ;;  %s5187_s8 = scalar_lea.vmem %s163_s17, 32 }
  0x17   : > { %p5181_p12 = scmp.ne.s32.totalorder %s163_s17, %s5180_s7  ;;  %p5188_p1 = scmp.lt.s32.totalorder %s163_s17, %s163_s17 }
  0x18   : > { %p5189_p4 = scmp.lt.s32.totalorder %s5187_s8, %s5180_s7 }
  0x19   : > { %p5183_p13 = pnand %p5181_p12, %p5338_p7 }
  0x1a   : > { %p5190_p2 = por %p5189_p4, %p5188_p1 }
  0x1b   : > { %p5184_p0 = pneg %p5183_p13 }
  0x1d   : > { %p5191_p3 = pnand %p5190_p2, %p5184_p0 }
  0x1f   : > { %5194 = shalt.err (!%p5191_p3)
}
  0x20   : > { %5106 = dma.hbm_to_vmem [thread:$0]  (!%p5324_p5), %s6248_s2, 16, %s163_s17, [#allocation5]  }
  0x21   : > { %s5195_s13 = scalar_lea.hbm %s6247_s1, 288 }
  0x22   : > { %p5196_p6 = scmp.ne.s32.totalorder %s6247_s1, %s5195_s13  ;;  %p5202_p2 = scmp.lt.u32.totalorder %s5195_s13, %s6247_s1 }
  0x24   : > { %p5198_p8 = pnand %p5196_p6, %p5338_p7 }
  0x26   : > { %p5199_p9 = pneg %p5198_p8 }
  0x28   : > { %p5204_p3 = pnand %p5202_p2, %p5199_p9 }
  0x2a   : > { %5207 = shalt.err (!%p5204_p3)
}
  0x2b   : > { %s5208_s17 = scalar_lea.vmem %s5320_s21, 288  ;;  %p5216_p13 = scmp.lt.s32.totalorder %s5320_s21, %s5320_s21 }
  0x2c   : > { %p5209_p10 = scmp.ne.s32.totalorder %s5320_s21, %s5208_s17  ;;  %p5217_p0 = scmp.lt.s32.totalorder %s5208_s17, %s5208_s17 }
  0x2e   : > { %p5211_p11 = pnand %p5209_p10, %p5338_p7  ;;  %p5218_p1 = por %p5217_p0, %p5216_p13 }
  0x30   : > { %p5212_p12 = pneg %p5211_p11 }
  0x32   : > { %p5219_p4 = pnand %p5218_p1, %p5212_p12 }
  0x34   : > { %5222 = shalt.err (!%p5219_p4)
}
  0x35   : > { %s5270_s25 = smov 32   ;;  %s5271_s26 = smov 2  }
  0x36   : > { %5103 = dma.hbm_to_vmem [thread:$0]  (!%p5324_p5), %s6247_s1, 288, %s5320_s21, [#allocation3], %s5270_s25, %s5270_s25, %s5271_s26  }
  0x37   : > { %s5223_s6 = scalar_lea.hbm %s6249_s3, 8192 }
  0x38   : > { %p5224_p6 = scmp.ne.s32.totalorder %s6249_s3, %s5223_s6  ;;  %p5230_p2 = scmp.lt.u32.totalorder %s5223_s6, %s6249_s3 }
  0x3a   : > { %p5226_p8 = pnand %p5224_p6, %p5338_p7 }
  0x3c   : > { %p5227_p9 = pneg %p5226_p8 }
  0x3e   : > { %p5232_p3 = pnand %p5230_p2, %p5227_p9 }
  0x40   : > { %5235 = shalt.err (!%p5232_p3)
}
  0x41   : > { %s5236_s21 = scalar_lea.vmem %s5328_s24, 8192  ;;  %p5244_p13 = scmp.lt.s32.totalorder %s5328_s24, %s5328_s24 }
  0x42   : > { %p5237_p10 = scmp.ne.s32.totalorder %s5328_s24, %s5236_s21  ;;  %p5245_p0 = scmp.lt.s32.totalorder %s5236_s21, %s5236_s21 }
  0x44   : > { %p5239_p11 = pnand %p5237_p10, %p5338_p7  ;;  %p5246_p1 = por %p5245_p0, %p5244_p13 }
  0x46   : > { %p5240_p12 = pneg %p5239_p11 }
  0x48   : > { %p5247_p4 = pnand %p5246_p1, %p5240_p12 }
  0x4a   : > { %5250 = shalt.err (!%p5247_p4)
}
  0x4b   : > { %s5272_s11 = smov 256   ;;  %s5273_s12 = smov 16  }
  0x4c   : > { %5109 = dma.hbm_to_vmem [thread:$0]  (!%p5324_p5), %s6249_s3, 8192, %s5328_s24, [#allocation5], %s5272_s11, %s5272_s11, %s5273_s12  }
  0x4d   : > { %p6256_p6 = scmp.ne.s32.totalorder %s6253_s19, 0 }
  0x4e   : > { %p6257_p7 = scmp.eq.s32.totalorder (!%p6256_p6), %s5309_s18, 0 }
  0x4f   : > { %196 = sbr.rel (%p6256_p6) target bundleno = 1207 (0x4b7), region = 36 }
  0x56   : > { %5256 = dma.done.wait (%p6257_p7), [#allocation3], 288   ;;  %p6258_p8 = pmov %p6257_p7 }
  0x57   : > { %p6259_p9 = pmov %p6257_p7 }
  0x58   : > { %5258 = vsyncadd (%p6258_p8), [#allocation3], 4294967008 }
  0x59   : > { %5260 = dma.done.wait (%p6259_p9), [#allocation5], 8208   ;;  %p6260_p2 = pmov %p6257_p7 }
  0x5a   : > { %p230_p3 = scmp.lt.s32.totalorder %s5309_s18, 1  ;;  %vm389_vm0 = vcmask 1041408   ;;  %v339_v0 = vld [vmem:[#allocation2 + $0x2] sm:$0x3]  ;;  %v5420_v1 = vld [vmem:[#allocation2 + $0x6] sm:$0x3] }
  0x5b   : > { %5262 = vsyncadd (%p6260_p2), [#allocation5], 4294959088  ;;  %5077 = vmatprep.subr.msk.bf16.mxu1 %vm389_vm0, %v339_v0  ;;  %5080 = vmatprep.subr.msk.bf16.mxu0 %vm389_vm0, %v5420_v1  ;;  %v391_v3 = vsel %vm389_vm0, %v339_v0, 0  ;;  %v5429_v4 = vsel %vm389_vm0, %v5420_v1, 0  ;;  %vm340_vm1 = vcmask 31744   ;;  %s5274_s16 = smov 1  }
  0x5c   : > { %s6262_s18 = smov (!%p230_p3, %s5309_s18), 1  ;;  %4386 = vmatpush3.bf16.msra.mxu1 %v391_v3  ;;  %4488 = vmatpush3.bf16.msra.mxu0 %v5429_v4  ;;  %v1404_v15 = vld [vmem:[#allocation2 + $0x8] sm:$0x3]  ;;  %v1698_v36 = vld [vmem:[#allocation2 + $0xa] sm:$0x3]  ;;  %s5275_s20 = smov 2  }
  0x5d   : > { %s5087_s19 = smul.u32 432, %s6262_s18  ;;  %v1454_v18 = vsel %vm389_vm0, %v1404_v15, 0  ;;  %5082 = vmatprep.subr.msk.bf16.mxu0 %vm389_vm0, %v1404_v15  ;;  %v289_v46 = vld [vmem:[#allocation2] sm:$0x3]  ;;  %v815_v60 = vld [vmem:[#allocation2 + $0x4] sm:$0x3] }
  0x5e   : > { %5078 = vmatprep.subr.msk.bf16.mxu1 %vm389_vm0, %v289_v46  ;;  %v603_v49 = vsel %vm389_vm0, %v289_v46, 0  ;;  %s5276_s23 = smov 127   ;;  %s5277_s17 = smov 126  }
  0x5f   : > { %s5418_s30 = scalar_lea.vmem %s6246_s0, %s5087_s19  ;;  %s4007_s25 = sshll.u32 %s6262_s18, 6 }
  0x60   : > { %v290_v2 = vld [vmem:[%s5418_s30 + $0x1] sm:$0xff]  ;;  %v291_v5 = vld [vmem:[%s5418_s30 + $0x9] sm:$0xff]  ;;  %v3716_v6 = vld [vmem:[%s5418_s30 + $0x18] sm:$0xff]  ;;  %s6223_s28 = scalar_lea.vmem %s6250_s4, %s4007_s25 }
  0x61   : > { %v3717_v7 = vld [vmem:[%s5418_s30 + $0x20] sm:$0xff]  ;;  %v322_v8 = vpack.c.bf16 %v291_v5, %v290_v2  ;;  %v3718_v12 = vld [vmem:[%s5418_s30 + $0x30] sm:$0xff]  ;;  %v3719_v14 = vld [vmem:[%s5418_s30 + $0x38] sm:$0xff]  ;;  %v1748_v5 = vsel %vm389_vm0, %v1698_v36, 0 }
  0x62   : > { %v5435_v9 = vpack.c.bf16 %v3717_v7, %v3716_v6  ;;  %v292_v10 = vld [vmem:[%s5418_s30 + $0x19] sm:$0xff]  ;;  %v293_v11 = vld [vmem:[%s5418_s30 + $0x21] sm:$0xff]  ;;  %v294_v16 = vld [vmem:[%s5418_s30 + $0x31] sm:$0xff]  ;;  %v5447_v17 = vpack.c.bf16 %v3719_v14, %v3718_v12 }
  0x63   : > { %v5440_v13 = vpack.c.bf16 %v293_v11, %v292_v10  ;;  %4387 = vmatprep.mubr.msk.bf16.mxu1 %vm340_vm1, %v322_v8  ;;  %v295_v19 = vld [vmem:[%s5418_s30 + $0x39] sm:$0xff]  ;;  %v3720_v20 = vld [vmem:[%s5418_s30 + $0x48] sm:$0xff]  ;;  %v3721_v21 = vld [vmem:[%s5418_s30 + $0x50] sm:$0xff] }
  0x64   : > { %4489 = vmatprep.mubr.msk.bf16.mxu0 %vm340_vm1, %v5435_v9  ;;  %v5456_v22 = vpack.c.bf16 %v295_v19, %v294_v16  ;;  %v5458_v23 = vpack.c.bf16 %v3721_v21, %v3720_v20  ;;  %v296_v24 = vld [vmem:[%s5418_s30 + $0x49] sm:$0xff]  ;;  %v297_v25 = vld [vmem:[%s5418_s30 + $0x51] sm:$0xff]  ;;  %v3722_v26 = vld [vmem:[%s5418_s30 + $0x60] sm:$0xff] }
  0x65   : > { %4388 = vmatmul.mubr.msk.bf16.vlgmr.msra.gmra.mrb[0].mxu1 %vm340_vm1, %v5440_v13  ;;  %4490 = vmatmul.mubr.msk.bf16.vlgmr.msra.gmra.mrb[0].mxu0 %vm340_vm1, %v5447_v17  ;;  %v3723_v27 = vld [vmem:[%s5418_s30 + $0x68] sm:$0xff]  ;;  %v3724_v30 = vld [vmem:[%s5418_s30 + $0x78] sm:$0xff]  ;;  %v3725_v31 = vld [vmem:[%s5418_s30 + $0x80] sm:$0xff]  ;;  %v5474_v32 = vpack.c.bf16 %v297_v25, %v296_v24 }
  0x66   : > { %4522 = vmatpush3.bf16.msra.mxu0 %v1454_v18  ;;  %4391 = vmatprep.mubr.msk.bf16.mxu1 %vm340_vm1, %v5456_v22  ;;  %v298_v28 = vld [vmem:[%s5418_s30 + $0x61] sm:$0xff]  ;;  %v299_v29 = vld [vmem:[%s5418_s30 + $0x69] sm:$0xff]  ;;  %v5476_v33 = vpack.c.bf16 %v3723_v27, %v3722_v26  ;;  %v5480_v35 = vpack.c.bf16 %v3725_v31, %v3724_v30  ;;  %v300_v37 = vld [vmem:[%s5418_s30 + $0x79] sm:$0xff] }
  0x67   : > { %4493 = vmatprep.mubr.msk.bf16.mxu0 %vm340_vm1, %v5458_v23  ;;  %v5478_v34 = vpack.c.bf16 %v299_v29, %v298_v28  ;;  %v301_v38 = vld [vmem:[%s5418_s30 + $0x81] sm:$0xff]  ;;  %v3726_v39 = vld [vmem:[%s5418_s30 + $0x90] sm:$0xff]  ;;  %v3727_v40 = vld [vmem:[%s5418_s30 + $0x98] sm:$0xff]  ;;  %5083 = vmatprep.subr.msk.bf16.mxu0 %vm389_vm0, %v1698_v36  ;;  %v865_v29 = vsel %vm389_vm0, %v815_v60, 0 }
  0x68   : > { %v302_v41 = vld [vmem:[%s5418_s30 + $0x91] sm:$0xff]  ;;  %v303_v42 = vld [vmem:[%s5418_s30 + $0x99] sm:$0xff]  ;;  %v3728_v43 = vld [vmem:[%s5418_s30 + $0xa8] sm:$0xff]  ;;  %v5499_v45 = vpack.c.bf16 %v301_v38, %v300_v37  ;;  %v5501_v47 = vpack.c.bf16 %v3727_v40, %v3726_v39  ;;  %4420 = vmatpush3.bf16.msra.mxu1 %v603_v49 }
  0x69   : > { %v3729_v44 = vld [vmem:[%s5418_s30 + $0xb0] sm:$0xff]  ;;  %v5503_v48 = vpack.c.bf16 %v303_v42, %v302_v41  ;;  %v3730_v53 = vld [vmem:[%s5418_s30 + $0xc0] sm:$0xff]  ;;  %v3731_v54 = vld [vmem:[%s5418_s30 + $0xc8] sm:$0xff]  ;;  %5079 = vmatprep.subr.msk.bf16.mxu1 %vm389_vm0, %v815_v60 }
  0x6a   : > { %v5507_v50 = vpack.c.bf16 %v3729_v44, %v3728_v43  ;;  %v304_v51 = vld [vmem:[%s5418_s30 + $0xa9] sm:$0xff]  ;;  %v305_v52 = vld [vmem:[%s5418_s30 + $0xb1] sm:$0xff]  ;;  %v306_v55 = vld [vmem:[%s5418_s30 + $0xc1] sm:$0xff]  ;;  %v5525_v58 = vpack.c.bf16 %v3731_v54, %v3730_v53 }
  0x6b   : > { %v307_v56 = vld [vmem:[%s5418_s30 + $0xc9] sm:$0xff]  ;;  %v5523_v57 = vpack.c.bf16 %v305_v52, %v304_v51  ;;  %v308_v61 = vld [vmem:[%s5418_s30 + $0xd9] sm:$0xff]  ;;  %v309_v62 = vld [vmem:[%s5418_s30 + $0xe1] sm:$0xff] }
  0x6c   : > { %v5527_v59 = vpack.c.bf16 %v307_v56, %v306_v55  ;;  %v310_v63 = vld [vmem:[%s5418_s30 + $0xf1] sm:$0xff]  ;;  %v311_v0 = vld [vmem:[%s5418_s30 + $0xf9] sm:$0xff]  ;;  %v5542_v2 = vpack.c.bf16 %v309_v62, %v308_v61  ;;  %v5549_v6 = vld [vmem:[#allocation2 + $0xc] sm:$0x3] }
  0x6d   : > { %4392 = vmatmul.mubr.msk.bf16.gmra.mrb[4].mxu1 %vm340_vm1, %v5474_v32  ;;  %4494 = vmatmul.mubr.msk.bf16.gmra.mrb[4].mxu0 %vm340_vm1, %v5476_v33  ;;  %v5544_v3 = vpack.c.bf16 %v311_v0, %v310_v63  ;;  %v312_v7 = vld [vmem:[%s5418_s30 + $0x109] sm:$0xff]  ;;  %v313_v8 = vld [vmem:[%s5418_s30 + $0x111] sm:$0xff]  ;;  %v314_v10 = vld [vmem:[%s5418_s30 + $0x121] sm:$0xff]  ;;  %v2043_v54 = vsel %vm389_vm0, %v5549_v6, 0 }
  0x6e   : > { %4395 = vmatprep.mubr.msk.bf16.mxu1 %vm340_vm1, %v5478_v34  ;;  %4497 = vmatprep.mubr.msk.bf16.mxu0 %vm340_vm1, %v5480_v35  ;;  %v315_v11 = vld [vmem:[%s5418_s30 + $0x129] sm:$0xff]  ;;  %v5563_v12 = vpack.c.bf16 %v313_v8, %v312_v7  ;;  %v316_v14 = vld [vmem:[%s5418_s30 + $0x139] sm:$0xff]  ;;  %v317_v15 = vld [vmem:[%s5418_s30 + $0x141] sm:$0xff] }
  0x6f   : > { %v318_v16 = vld [vmem:[%s5418_s30 + $0x151] sm:$0xff]  ;;  %v319_v18 = vld [vmem:[%s5418_s30 + $0x159] sm:$0xff]  ;;  %v5579_v19 = vpack.c.bf16 %v317_v15, %v316_v14  ;;  %v320_v21 = vld [vmem:[%s5418_s30 + $0x169] sm:$0xff] }
  0x70   : > { %v5581_v20 = vpack.c.bf16 %v319_v18, %v318_v16  ;;  %v321_v24 = vld [vmem:[%s5418_s30 + $0x171] sm:$0xff]  ;;  %v241_v25 = vld [vmem:[%s5418_s30] sm:$0xff]  ;;  %v242_v26 = vld [vmem:[%s5418_s30 + $0x8] sm:$0xff] }
  0x71   : > { %v5595_v27 = vpack.c.bf16 %v321_v24, %v320_v21  ;;  %v273_v28 = vpack.c.bf16 %v242_v26, %v241_v25  ;;  %v3812_v30 = vld [vmem:[%s5418_s30 + $0x1a] sm:$0xff]  ;;  %v3813_v31 = vld [vmem:[%s5418_s30 + $0x22] sm:$0xff]  ;;  %v3814_v40 = vld [vmem:[%s5418_s30 + $0x32] sm:$0xff] }
  0x72   : > { %v5637_v37 = vpack.c.bf16 %v3813_v31, %v3812_v30  ;;  %v259_v38 = vld [vmem:[%s5418_s30 + $0xd8] sm:$0xff]  ;;  %v260_v39 = vld [vmem:[%s5418_s30 + $0xe0] sm:$0xff]  ;;  %v261_v42 = vld [vmem:[%s5418_s30 + $0xf0] sm:$0xff] }
  0x73   : > { %v3815_v41 = vld [vmem:[%s5418_s30 + $0x3a] sm:$0xff]  ;;  %v3816_v44 = vld [vmem:[%s5418_s30 + $0x4a] sm:$0xff]  ;;  %v3817_v46 = vld [vmem:[%s5418_s30 + $0x52] sm:$0xff]  ;;  %v5655_v49 = vpack.c.bf16 %v260_v39, %v259_v38 }
  0x74   : > { %v262_v43 = vld [vmem:[%s5418_s30 + $0xf8] sm:$0xff]  ;;  %v5657_v51 = vpack.c.bf16 %v3815_v41, %v3814_v40  ;;  %v5661_v53 = vpack.c.bf16 %v3817_v46, %v3816_v44  ;;  %v5667_v55 = vld [vmem:[#allocation2 + $0xe] sm:$0x3]  ;;  %v264_v60 = vld [vmem:[%s5418_s30 + $0x110] sm:$0xff] }
  0x75   : > { %4396 = vmatmul.mubr.msk.bf16.gmra.mrb[8].mxu1 %vm340_vm1, %v5499_v45  ;;  %4498 = vmatmul.mubr.msk.bf16.gmra.mrb[8].mxu0 %vm340_vm1, %v5501_v47  ;;  %v5659_v52 = vpack.c.bf16 %v262_v43, %v261_v42  ;;  %v263_v56 = vld [vmem:[%s5418_s30 + $0x108] sm:$0xff]  ;;  %v265_v63 = vld [vmem:[%s5418_s30 + $0x120] sm:$0xff]  ;;  %v267_v14 = vld [vmem:[%s5418_s30 + $0x138] sm:$0xff] }
  0x76   : > { %4399 = vmatprep.mubr.msk.bf16.mxu1 %vm340_vm1, %v5503_v48  ;;  %4501 = vmatprep.mubr.msk.bf16.mxu0 %vm340_vm1, %v5507_v50  ;;  %v3818_v61 = vld [vmem:[%s5418_s30 + $0x62] sm:$0xff]  ;;  %v3819_v62 = vld [vmem:[%s5418_s30 + $0x6a] sm:$0xff]  ;;  %v5685_v7 = vpack.c.bf16 %v264_v60, %v263_v56  ;;  %v3822_v16 = vld [vmem:[%s5418_s30 + $0x92] sm:$0xff] }
  0x77   : > { %v266_v0 = vld [vmem:[%s5418_s30 + $0x128] sm:$0xff]  ;;  %v5687_v8 = vpack.c.bf16 %v3819_v62, %v3818_v61  ;;  %v268_v15 = vld [vmem:[%s5418_s30 + $0x140] sm:$0xff]  ;;  %v269_v21 = vld [vmem:[%s5418_s30 + $0x150] sm:$0xff] }
  0x78   : > { %v3823_v18 = vld [vmem:[%s5418_s30 + $0x9a] sm:$0xff]  ;;  %v3824_v25 = vld [vmem:[%s5418_s30 + $0xaa] sm:$0xff]  ;;  %v3825_v26 = vld [vmem:[%s5418_s30 + $0xb2] sm:$0xff] }
  0x79   : > { %v270_v24 = vld [vmem:[%s5418_s30 + $0x158] sm:$0xff]  ;;  %v271_v30 = vld [vmem:[%s5418_s30 + $0x168] sm:$0xff]  ;;  %v272_v31 = vld [vmem:[%s5418_s30 + $0x170] sm:$0xff] }
  0x7a   : > { %v3826_v38 = vld [vmem:[%s5418_s30 + $0xc2] sm:$0xff]  ;;  %v3827_v39 = vld [vmem:[%s5418_s30 + $0xca] sm:$0xff]  ;;  %v3828_v42 = vld [vmem:[%s5418_s30 + $0xda] sm:$0xff]  ;;  %v5733_v44 = vpack.c.bf16 %v272_v31, %v271_v30 }
  0x7b   : > { %v766_v40 = vld [vmem:[%s5418_s30 + $0x2] sm:$0xff]  ;;  %v767_v41 = vld [vmem:[%s5418_s30 + $0xa] sm:$0xff]  ;;  %v5735_v46 = vpack.c.bf16 %v3827_v39, %v3826_v38  ;;  %v3830_v60 = vld [vmem:[%s5418_s30 + $0xf2] sm:$0xff] }
  0x7c   : > { %v3829_v43 = vld [vmem:[%s5418_s30 + $0xe2] sm:$0xff]  ;;  %v3831_v61 = vld [vmem:[%s5418_s30 + $0xfa] sm:$0xff]  ;;  %v3832_v62 = vld [vmem:[%s5418_s30 + $0x10a] sm:$0xff] }
  0x7d   : > { %4400 = vmatmul.mubr.msk.bf16.gmra.mrb[12].mxu1 %vm340_vm1, %v5523_v57  ;;  %4502 = vmatmul.mubr.msk.bf16.gmra.mrb[12].mxu0 %vm340_vm1, %v5525_v58  ;;  %v5737_v56 = vpack.c.bf16 %v3829_v43, %v3828_v42  ;;  %v3842_v31 = vld [vmem:[%s5418_s30 + $0x182] sm:$0xff]  ;;  %v3843_v38 = vld [vmem:[%s5418_s30 + $0x18a] sm:$0xff] }
  0x7e   : > { %4403 = vmatprep.mubr.msk.bf16.mxu1 %vm340_vm1, %v5527_v59  ;;  %4523 = vmatprep.mubr.msk.bf16.mxu0 %vm340_vm1, %v5440_v13  ;;  %v5565_v13 = vpack.c.bf16 %v315_v11, %v314_v10  ;;  %v5689_v10 = vpack.c.bf16 %v266_v0, %v265_v63  ;;  %v3833_v63 = vld [vmem:[%s5418_s30 + $0x112] sm:$0xff]  ;;  %v5750_v0 = vpack.c.bf16 %v3831_v61, %v3830_v60 }
  0x7f   : > { %v5797_v39 = vpack.c.bf16 %v3843_v38, %v3842_v31 }
  0x85   : > { %4404 = vmatmul.mubr.msk.bf16.gmra.mrb[16].mxu1 %vm340_vm1, %v5542_v2  ;;  %4524 = vmatmul.mubr.msk.bf16.vlgmr.msra.gmra.mrb[0].mxu0 %vm340_vm1, %v5456_v22 }
  0x86   : > { %4407 = vmatprep.mubr.msk.bf16.mxu1 %vm340_vm1, %v5544_v3  ;;  %4556 = vmatpush3.bf16.msra.mxu0 %v1748_v5  ;;  %v3820_v5 = vld [vmem:[%s5418_s30 + $0x7a] sm:$0xff] }
  0x87   : > { %4527 = vmatprep.mubr.msk.bf16.mxu0 %vm340_vm1, %v5474_v32  ;;  %5084 = vmatprep.subr.msk.bf16.mxu0 %vm389_vm0, %v5549_v6  ;;  %v3821_v6 = vld [vmem:[%s5418_s30 + $0x82] sm:$0xff] }
  0x88   : > { %v5691_v11 = vpack.c.bf16 %v3821_v6, %v3820_v5  ;;  %v5752_v5 = vpack.c.bf16 %v3833_v63, %v3832_v62  ;;  %v3834_v6 = vld [vmem:[%s5418_s30 + $0x122] sm:$0xff] }
  0x8d   : > { %4408 = vmatmul.mubr.msk.bf16.gmra.mrb[20].mxu1 %vm340_vm1, %v5563_v12  ;;  %4528 = vmatmul.mubr.msk.bf16.gmra.mrb[4].mxu0 %vm340_vm1, %v5478_v34 }
  0x8e   : > { %4411 = vmatprep.mubr.msk.bf16.mxu1 %vm340_vm1, %v5565_v13  ;;  %4531 = vmatprep.mubr.msk.bf16.mxu0 %vm340_vm1, %v5499_v45 }
  0x95   : > { %4412 = vmatmul.mubr.msk.bf16.gmra.mrb[24].mxu1 %vm340_vm1, %v5579_v19  ;;  %4532 = vmatmul.mubr.msk.bf16.gmra.mrb[8].mxu0 %vm340_vm1, %v5503_v48 }
  0x96   : > { %4415 = vmatprep.mubr.msk.bf16.mxu1 %vm340_vm1, %v5581_v20  ;;  %4535 = vmatprep.mubr.msk.bf16.mxu0 %vm340_vm1, %v5523_v57 }
  0x9d   : > { %4416 = vmatmul.mubr.msk.bf16.gmra.mrb[28].mxu1 %vm340_vm1, %v5595_v27  ;;  %4536 = vmatmul.mubr.msk.bf16.gmra.mrb[12].mxu0 %vm340_vm1, %v5527_v59 }
  0x9e   : > { %4421 = vmatprep.mubr.msk.bf16.mxu1 %vm340_vm1, %v273_v28  ;;  %4539 = vmatprep.mubr.msk.bf16.mxu0 %vm340_vm1, %v5542_v2  ;;  %v5709_v28 = vpack.c.bf16 %v268_v15, %v267_v14  ;;  %v3835_v14 = vld [vmem:[%s5418_s30 + $0x12a] sm:$0xff]  ;;  %v3836_v15 = vld [vmem:[%s5418_s30 + $0x13a] sm:$0xff] }
  0xa5   : > { %4422 = vmatmul.mubr.msk.bf16.vlgmr.msra.gmra.mrb[0].mxu1 %vm340_vm1, %v5435_v9  ;;  %4540 = vmatmul.mubr.msk.bf16.gmra.mrb[16].mxu0 %vm340_vm1, %v5544_v3  ;;  %v3795_v9 = vld [vmem:[%s5418_s30 + $0x189] sm:$0xff] }
  0xa6   : > { %4425 = vmatprep.mubr.msk.bf16.mxu1 %vm340_vm1, %v5447_v17  ;;  %4543 = vmatprep.mubr.msk.bf16.mxu0 %vm340_vm1, %v5563_v12 }
  0xa7   : > { %4454 = vmatpush3.bf16.msra.mxu1 %v865_v29  ;;  %v5711_v29 = vpack.c.bf16 %v3823_v18, %v3822_v16  ;;  %v3837_v16 = vld [vmem:[%s5418_s30 + $0x142] sm:$0xff]  ;;  %v5767_v18 = vpack.c.bf16 %v3835_v14, %v3834_v6 }
  0xa8   : > { %5081 = vmatprep.subr.msk.bf16.mxu1 %vm389_vm0, %v5420_v1  ;;  %v3794_v1 = vld [vmem:[%s5418_s30 + $0x181] sm:$0xff] }
  0xa9   : > { %v5635_v36 = vpack.c.bf16 %v3795_v9, %v3794_v1  ;;  %v5713_v1 = vpack.c.bf16 %v270_v24, %v269_v21  ;;  %v5715_v9 = vpack.c.bf16 %v3825_v26, %v3824_v25  ;;  %v3839_v21 = vld [vmem:[%s5418_s30 + $0x15a] sm:$0xff]  ;;  %v3840_v24 = vld [vmem:[%s5418_s30 + $0x16a] sm:$0xff]  ;;  %v3841_v25 = vld [vmem:[%s5418_s30 + $0x172] sm:$0xff] }
  0xaa   : > { %v5785_v30 = vpack.c.bf16 %v3841_v25, %v3840_v24 }
  0xad   : > { %4426 = vmatmul.mubr.msk.bf16.gmra.mrb[4].mxu1 %vm340_vm1, %v5458_v23  ;;  %4544 = vmatmul.mubr.msk.bf16.gmra.mrb[20].mxu0 %vm340_vm1, %v5565_v13 }
  0xae   : > { %4429 = vmatprep.mubr.msk.bf16.mxu1 %vm340_vm1, %v5476_v33  ;;  %4547 = vmatprep.mubr.msk.bf16.mxu0 %vm340_vm1, %v5579_v19 }
  0xb5   : > { %4430 = vmatmul.mubr.msk.bf16.gmra.mrb[8].mxu1 %vm340_vm1, %v5480_v35  ;;  %4548 = vmatmul.mubr.msk.bf16.gmra.mrb[24].mxu0 %vm340_vm1, %v5581_v20 }
  0xb6   : > { %4433 = vmatprep.mubr.msk.bf16.mxu1 %vm340_vm1, %v5501_v47  ;;  %4551 = vmatprep.mubr.msk.bf16.mxu0 %vm340_vm1, %v5595_v27 }
  0xbd   : > { %4434 = vmatmul.mubr.msk.bf16.gmra.mrb[12].mxu1 %vm340_vm1, %v5507_v50  ;;  %4552 = vmatmul.mubr.msk.bf16.gmra.mrb[28].mxu0 %vm340_vm1, %v5635_v36 }
  0xbe   : > { %4437 = vmatprep.mubr.msk.bf16.mxu1 %vm340_vm1, %v5525_v58  ;;  %4557 = vmatprep.mubr.msk.bf16.mxu0 %vm340_vm1, %v5637_v37 }
  0xc5   : > { %4438 = vmatmul.mubr.msk.bf16.gmra.mrb[16].mxu1 %vm340_vm1, %v5655_v49  ;;  %4558 = vmatmul.mubr.msk.bf16.vlgmr.msra.gmra.mrb[0].mxu0 %vm340_vm1, %v5657_v51 }
  0xc6   : > { %4441 = vmatprep.mubr.msk.bf16.mxu1 %vm340_vm1, %v5659_v52  ;;  %4590 = vmatpush3.bf16.msra.mxu0 %v2043_v54  ;;  %v798_v54 = vpack.c.bf16 %v767_v41, %v766_v40  ;;  %v2337_v40 = vsel %vm389_vm0, %v5667_v55, 0  ;;  %v2581_v41 = vld [vmem:[#allocation2 + $0x10] sm:$0x3] }
  0xc7   : > { %4561 = vmatprep.mubr.msk.bf16.mxu0 %vm340_vm1, %v5661_v53  ;;  %5085 = vmatprep.subr.msk.bf16.mxu0 %vm389_vm0, %v5667_v55 }
  0xcd   : > { %4442 = vmatmul.mubr.msk.bf16.gmra.mrb[20].mxu1 %vm340_vm1, %v5685_v7  ;;  %4562 = vmatmul.mubr.msk.bf16.gmra.mrb[4].mxu0 %vm340_vm1, %v5687_v8 }
  0xce   : > { %4445 = vmatprep.mubr.msk.bf16.mxu1 %vm340_vm1, %v5689_v10  ;;  %4565 = vmatprep.mubr.msk.bf16.mxu0 %vm340_vm1, %v5691_v11 }
  0xd5   : > { %4446 = vmatmul.mubr.msk.bf16.gmra.mrb[24].mxu1 %vm340_vm1, %v5709_v28  ;;  %4566 = vmatmul.mubr.msk.bf16.gmra.mrb[8].mxu0 %vm340_vm1, %v5711_v29 }
  0xd6   : > { %4449 = vmatprep.mubr.msk.bf16.mxu1 %vm340_vm1, %v5713_v1  ;;  %4569 = vmatprep.mubr.msk.bf16.mxu0 %vm340_vm1, %v5715_v9 }
  0xdd   : > { %4450 = vmatmul.mubr.msk.bf16.gmra.mrb[28].mxu1 %vm340_vm1, %v5733_v44  ;;  %4570 = vmatmul.mubr.msk.bf16.gmra.mrb[12].mxu0 %vm340_vm1, %v5735_v46 }
  0xde   : > { %4455 = vmatprep.mubr.msk.bf16.mxu1 %vm340_vm1, %v798_v54  ;;  %4573 = vmatprep.mubr.msk.bf16.mxu0 %vm340_vm1, %v5737_v56 }
  0xe5   : > { %4456 = vmatmul.mubr.msk.bf16.vlgmr.msra.gmra.mrb[0].mxu1 %vm340_vm1, %v5637_v37  ;;  %4574 = vmatmul.mubr.msk.bf16.gmra.mrb[16].mxu0 %vm340_vm1, %v5750_v0  ;;  %v5769_v37 = vpack.c.bf16 %v3837_v16, %v3836_v15 }
  0xe6   : > { %4459 = vmatprep.mubr.msk.bf16.mxu1 %vm340_vm1, %v5657_v51  ;;  %4577 = vmatprep.mubr.msk.bf16.mxu0 %vm340_vm1, %v5752_v5 }
  0xe7   : > { %4820 = vmatpush3.bf16.msra.mxu1 %v5429_v4  ;;  %v3838_v4 = vld [vmem:[%s5418_s30 + $0x152] sm:$0xff] }
  0xe8   : > { %v5783_v26 = vpack.c.bf16 %v3839_v21, %v3838_v4 }
  0xed   : > { %4460 = vmatmul.mubr.msk.bf16.gmra.mrb[4].mxu1 %vm340_vm1, %v5661_v53  ;;  %4578 = vmatmul.mubr.msk.bf16.gmra.mrb[20].mxu0 %vm340_vm1, %v5767_v18 }
  0xee   : > { %4463 = vmatprep.mubr.msk.bf16.mxu1 %vm340_vm1, %v5687_v8  ;;  %4581 = vmatprep.mubr.msk.bf16.mxu0 %vm340_vm1, %v5769_v37 }
  0xf5   : > { %4464 = vmatmul.mubr.msk.bf16.gmra.mrb[8].mxu1 %vm340_vm1, %v5691_v11  ;;  %4582 = vmatmul.mubr.msk.bf16.gmra.mrb[24].mxu0 %vm340_vm1, %v5783_v26 }
  0xf6   : > { %4467 = vmatprep.mubr.msk.bf16.mxu1 %vm340_vm1, %v5711_v29  ;;  %4585 = vmatprep.mubr.msk.bf16.mxu0 %vm340_vm1, %v5785_v30 }
  0xfd   : > { %4468 = vmatmul.mubr.msk.bf16.gmra.mrb[12].mxu1 %vm340_vm1, %v5715_v9  ;;  %4586 = vmatmul.mubr.msk.bf16.gmra.mrb[28].mxu0 %vm340_vm1, %v5797_v39 }
  0xfe   : > { %4471 = vmatprep.mubr.msk.bf16.mxu1 %vm340_vm1, %v5735_v46  ;;  %4591 = vmatprep.mubr.msk.bf16.mxu0 %vm340_vm1, %v5447_v17  ;;  %v3888_v17 = vld [vmem:[%s5418_s30 + $0x180] sm:$0xff] }
 0x105   : > { %4472 = vmatmul.mubr.msk.bf16.gmra.mrb[16].mxu1 %vm340_vm1, %v5737_v56  ;;  %4592 = vmatmul.mubr.msk.bf16.vlgmr.msra.gmra.mrb[0].mxu0 %vm340_vm1, %v5458_v23  ;;  %v3889_v23 = vld [vmem:[%s5418_s30 + $0x188] sm:$0xff] }
 0x106   : > { %4475 = vmatprep.mubr.msk.bf16.mxu1 %vm340_vm1, %v5750_v0  ;;  %4624 = vmatpush3.bf16.msra.mxu0 %v2337_v40 }
 0x107   : > { %4595 = vmatprep.mubr.msk.bf16.mxu0 %vm340_vm1, %v5476_v33  ;;  %5086 = vmatprep.subr.msk.bf16.mxu0 %vm389_vm0, %v2581_v41  ;;  %v1990_v33 = vpack.c.bf16 %v3889_v23, %v3888_v17 }
 0x10d   : > { %4476 = vmatmul.mubr.msk.bf16.gmra.mrb[20].mxu1 %vm340_vm1, %v5752_v5  ;;  %4596 = vmatmul.mubr.msk.bf16.gmra.mrb[4].mxu0 %vm340_vm1, %v5480_v35  ;;  %v3890_v35 = vld [vmem:[%s5418_s30 + $0x198] sm:$0xff] }
 0x10e   : > { %4479 = vmatprep.mubr.msk.bf16.mxu1 %vm340_vm1, %v5767_v18  ;;  %4599 = vmatprep.mubr.msk.bf16.mxu0 %vm340_vm1, %v5501_v47  ;;  %v3891_v47 = vld [vmem:[%s5418_s30 + $0x1a0] sm:$0xff] }
 0x115   : > { %4480 = vmatmul.mubr.msk.bf16.gmra.mrb[24].mxu1 %vm340_vm1, %v5769_v37  ;;  %4600 = vmatmul.mubr.msk.bf16.gmra.mrb[8].mxu0 %vm340_vm1, %v5507_v50  ;;  %v1991_v50 = vpack.c.bf16 %v3891_v47, %v3890_v35 }
 0x116   : > { %4483 = vmatprep.mubr.msk.bf16.mxu1 %vm340_vm1, %v5783_v26  ;;  %4603 = vmatprep.mubr.msk.bf16.mxu0 %vm340_vm1, %v5525_v58  ;;  %v2631_v58 = vsel %vm389_vm0, %v2581_v41, 0 }
 0x11d   : > { %4484 = vmatmul.mubr.msk.bf16.gmra.mrb[28].mxu1 %vm340_vm1, %v5785_v30  ;;  %4604 = vmatmul.mubr.msk.bf16.gmra.mrb[12].mxu0 %vm340_vm1, %v5655_v49 }
 0x11e   : > { %4505 = vmatprep.mubr.msk.bf16.mxu1 %vm340_vm1, %v5655_v49  ;;  %4607 = vmatprep.mubr.msk.bf16.mxu0 %vm340_vm1, %v5659_v52 }
 0x125   : > { %4506 = vmatmul.mubr.msk.bf16.vlgmr.msra.gmra.mrb[16].mxu1 %vm340_vm1, %v5659_v52  ;;  %4608 = vmatmul.mubr.msk.bf16.gmra.mrb[16].mxu0 %vm340_vm1, %v5685_v7 }
 0x126   : > { %4509 = vmatprep.mubr.msk.bf16.mxu1 %vm340_vm1, %v5685_v7  ;;  %4611 = vmatprep.mubr.msk.bf16.mxu0 %vm340_vm1, %v5689_v10 }
 0x12d   : > { %4510 = vmatmul.mubr.msk.bf16.gmra.mrb[20].mxu1 %vm340_vm1, %v5689_v10  ;;  %4612 = vmatmul.mubr.msk.bf16.gmra.mrb[20].mxu0 %vm340_vm1, %v5709_v28 }
 0x12e   : > { %4513 = vmatprep.mubr.msk.bf16.mxu1 %vm340_vm1, %v5709_v28  ;;  %4615 = vmatprep.mubr.msk.bf16.mxu0 %vm340_vm1, %v5713_v1 }
 0x135   : > { %4514 = vmatmul.mubr.msk.bf16.gmra.mrb[24].mxu1 %vm340_vm1, %v5713_v1  ;;  %4616 = vmatmul.mubr.msk.bf16.gmra.mrb[24].mxu0 %vm340_vm1, %v5733_v44 }
 0x136   : > { %4517 = vmatprep.mubr.msk.bf16.mxu1 %vm340_vm1, %v5733_v44  ;;  %4619 = vmatprep.mubr.msk.bf16.mxu0 %vm340_vm1, %v1990_v33 }
 0x13d   : > { %4518 = vmatmul.mubr.msk.bf16.gmra.mrb[28].mxu1 %vm340_vm1, %v1990_v33  ;;  %4620 = vmatmul.mubr.msk.bf16.gmra.mrb[28].mxu0 %vm340_vm1, %v1991_v50 }
 0x13e   : > { %4625 = vmatprep.mubr.msk.bf16.mxu0 %vm340_vm1, %v5456_v22  ;;  %v3938_v22 = vld [vmem:[%s5418_s30 + $0x199] sm:$0xff] }
 0x145   : > { %4626 = vmatmul.mubr.msk.bf16.vlgmr.msra.gmra.mrb[0].mxu0 %vm340_vm1, %v5474_v32  ;;  %v3939_v32 = vld [vmem:[%s5418_s30 + $0x1a1] sm:$0xff] }
 0x146   : > { %4658 = vmatpush3.bf16.msra.mxu0 %v2631_v58  ;;  %4629 = vmatprep.mubr.msk.bf16.mxu0 %vm340_vm1, %v5478_v34  ;;  %v2285_v34 = vpack.c.bf16 %v3939_v32, %v3938_v22 }
 0x14d   : > { %4630 = vmatmul.mubr.msk.bf16.gmra.mrb[4].mxu0 %vm340_vm1, %v5499_v45  ;;  %v3986_v45 = vld [vmem:[%s5418_s30 + $0x19a] sm:$0xff] }
 0x14e   : > { %4633 = vmatprep.mubr.msk.bf16.mxu0 %vm340_vm1, %v5503_v48  ;;  %v3987_v48 = vld [vmem:[%s5418_s30 + $0x1a2] sm:$0xff] }
 0x155   : > { %4634 = vmatmul.mubr.msk.bf16.gmra.mrb[8].mxu0 %vm340_vm1, %v5523_v57 }
 0x156   : > { %4637 = vmatprep.mubr.msk.bf16.mxu0 %vm340_vm1, %v5527_v59 }
 0x15d   : > { %4638 = vmatmul.mubr.msk.bf16.gmra.mrb[12].mxu0 %vm340_vm1, %v5542_v2 }
 0x15e   : > { %4641 = vmatprep.mubr.msk.bf16.mxu0 %vm340_vm1, %v5544_v3  ;;  %v2579_v3 = vpack.c.bf16 %v3987_v48, %v3986_v45 }
 0x165   : > { %4642 = vmatmul.mubr.msk.bf16.gmra.mrb[16].mxu0 %vm340_vm1, %v5563_v12 }
 0x166   : > { %4645 = vmatprep.mubr.msk.bf16.mxu0 %vm340_vm1, %v5565_v13 }
 0x16d   : > { %4646 = vmatmul.mubr.msk.bf16.gmra.mrb[20].mxu0 %vm340_vm1, %v5579_v19 }
 0x16e   : > { %4649 = vmatprep.mubr.msk.bf16.mxu0 %vm340_vm1, %v5581_v20 }
 0x175   : > { %4650 = vmatmul.mubr.msk.bf16.gmra.mrb[24].mxu0 %vm340_vm1, %v5595_v27 }
 0x176   : > { %4653 = vmatprep.mubr.msk.bf16.mxu0 %vm340_vm1, %v5635_v36 }
 0x17d   : > { %4654 = vmatmul.mubr.msk.bf16.gmra.mrb[28].mxu0 %vm340_vm1, %v2285_v34 }
 0x17e   : > { %4659 = vmatprep.mubr.msk.bf16.mxu0 %vm340_vm1, %v5657_v51 }
 0x185   : > { %4660 = vmatmul.mubr.msk.bf16.vlgmr.msra.gmra.mrb[0].mxu0 %vm340_vm1, %v5661_v53 }
 0x186   : > { %4663 = vmatprep.mubr.msk.bf16.mxu0 %vm340_vm1, %v5687_v8 }
 0x18d   : > { %4664 = vmatmul.mubr.msk.bf16.gmra.mrb[4].mxu0 %vm340_vm1, %v5691_v11 }
 0x18e   : > { %4667 = vmatprep.mubr.msk.bf16.mxu0 %vm340_vm1, %v5711_v29 }
 0x195   : > { %4668 = vmatmul.mubr.msk.bf16.gmra.mrb[8].mxu0 %vm340_vm1, %v5715_v9 }
 0x196   : > { %4671 = vmatprep.mubr.msk.bf16.mxu0 %vm340_vm1, %v5735_v46 }
 0x19d   : > { %4672 = vmatmul.mubr.msk.bf16.gmra.mrb[12].mxu0 %vm340_vm1, %v5737_v56 }
 0x19e   : > { %4675 = vmatprep.mubr.msk.bf16.mxu0 %vm340_vm1, %v5750_v0  ;;  %v2827_v0 = vld [vmem:[#allocation6 + $0x8] sm:$0xff] }
 0x19f   : > { %2906 = vmatprep.mubr.f32.mxu1 %v2827_v0 }
 0x1a5   : > { %4676 = vmatmul.mubr.msk.bf16.gmra.mrb[16].mxu0 %vm340_vm1, %v5752_v5 }
 0x1a6   : > { %4679 = vmatprep.mubr.msk.bf16.mxu0 %vm340_vm1, %v5767_v18 }
 0x1ad   : > { %4680 = vmatmul.mubr.msk.bf16.gmra.mrb[20].mxu0 %vm340_vm1, %v5769_v37 }
 0x1ae   : > { %4683 = vmatprep.mubr.msk.bf16.mxu0 %vm340_vm1, %v5783_v26 }
 0x1b5   : > { %4684 = vmatmul.mubr.msk.bf16.gmra.mrb[24].mxu0 %vm340_vm1, %v5785_v30 }
 0x1b6   : > { %4687 = vmatprep.mubr.msk.bf16.mxu0 %vm340_vm1, %v5797_v39 }
 0x1b8   : > { %v4457_v57 = vpop.f32.mrb[0].mxu1 }
 0x1b9   : > { %v901_v59 = vpop.f32.mrb[1].mxu1 }
 0x1ba   : > { %v4458_v2 = vpop.f32.mrb[2].mxu1 }
 0x1bb   : > { %v904_v12 = vpop.f32.mrb[3].mxu1 }
 0x1bd   : > { %4688 = vmatmul.mubr.msk.bf16.gmra.mrb[28].mxu0 %vm340_vm1, %v2579_v3 }
 0x1c0   : > { %v4461_v13 = vpop.f32.mrb[4].mxu1 }
 0x1c1   : > { %v917_v19 = vpop.f32.mrb[5].mxu1 }
 0x1c2   : > { %v4462_v20 = vpop.f32.mrb[6].mxu1 }
 0x1c3   : > { %v920_v27 = vpop.f32.mrb[7].mxu1 }
 0x1c8   : > { %v4465_v36 = vpop.f32.mrb[8].mxu1 }
 0x1c9   : > { %v933_v49 = vpop.f32.mrb[9].mxu1 }
 0x1ca   : > { %v4466_v51 = vpop.f32.mrb[10].mxu1 }
 0x1cb   : > { %v936_v52 = vpop.f32.mrb[11].mxu1 }
 0x1d0   : > { %v4469_v53 = vpop.f32.mrb[12].mxu1 }
 0x1d1   : > { %v949_v55 = vpop.f32.mrb[13].mxu1 }
 0x1d2   : > { %v4470_v7 = vpop.f32.mrb[14].mxu1 }
 0x1d3   : > { %v952_v8 = vpop.f32.mrb[15].mxu1 }
 0x1f8   : > { %v4507_v10 = vpop.f32.mrb[16].mxu1 }
 0x1f9   : > { %v1260_v11 = vpop.f32.mrb[17].mxu1 }
 0x1fa   : > { %v4508_v28 = vpop.f32.mrb[18].mxu1 }
 0x1fb   : > { %v1263_v29 = vpop.f32.mrb[19].mxu1 }
 0x200   : > { %v5938_v1 = vpop.f32.mrb[20].mxu1 }
 0x201   : > { %v5940_v9 = vpop.f32.mrb[21].mxu1 }
 0x202   : > { %v5942_v42 = vpop.f32.mrb[22].mxu1 }
 0x203   : > { %v5944_v43 = vpop.f32.mrb[23].mxu1 }
 0x208   : > { %v5946_v44 = vpop.f32.mrb[24].mxu1 }
 0x209   : > { %v5948_v46 = vpop.f32.mrb[25].mxu1 }
 0x20a   : > { %v5950_v54 = vpop.f32.mrb[26].mxu1 }
 0x20b   : > { %v5952_v56 = vpop.f32.mrb[27].mxu1 }
 0x210   : > { %v5954_v60 = vpop.f32.mrb[28].mxu1 }
 0x211   : > { %v5956_v61 = vpop.f32.mrb[29].mxu1 }
 0x212   : > { %v5958_v62 = vpop.f32.mrb[30].mxu1 }
 0x213   : > { %v5960_v63 = vpop.f32.mrb[31].mxu1 }
 0x258   : > { %v4661_v5 = vpop.f32.mrb[0].mxu0 }
 0x259   : > { %v4821_v6 = vadd.f32 %v4661_v5, %v4457_v57  ;;  %v2667_v14 = vpop.f32.mrb[1].mxu0 }
 0x25a   : > { %v4822_v15 = vadd.f32 %v2667_v14, %v901_v59  ;;  %v4662_v16 = vpop.f32.mrb[2].mxu0 }
 0x25b   : > { %v4823_v18 = vadd.f32 %v4662_v16, %v4458_v2  ;;  %v2670_v37 = vpop.f32.mrb[3].mxu0 }
 0x25c   : > { %v4824_v4 = vadd.f32 %v2670_v37, %v904_v12 }
 0x25d   : > { %v5962_v21 = vpack.c.bf16 %v4823_v18, %v4821_v6 }
 0x25e   : > { %v5964_v24 = vpack.c.bf16 %v4824_v4, %v4822_v15 }
 0x260   : > { %v4665_v25 = vpop.f32.mrb[4].mxu0 }
 0x261   : > { %v4825_v26 = vadd.f32 %v4665_v25, %v4461_v13  ;;  %v2683_v30 = vpop.f32.mrb[5].mxu0 }
 0x262   : > { %v4826_v31 = vadd.f32 %v2683_v30, %v917_v19  ;;  %v4666_v38 = vpop.f32.mrb[6].mxu0 }
 0x263   : > { %v4827_v39 = vadd.f32 %v4666_v38, %v4462_v20  ;;  %v2686_v40 = vpop.f32.mrb[7].mxu0 }
 0x264   : > { %v4828_v41 = vadd.f32 %v2686_v40, %v920_v27 }
 0x265   : > { %v5966_v17 = vpack.c.bf16 %v4827_v39, %v4825_v26 }
 0x266   : > { %v5968_v23 = vpack.c.bf16 %v4828_v41, %v4826_v31 }
 0x268   : > { %v4669_v33 = vpop.f32.mrb[8].mxu0 }
 0x269   : > { %v4829_v35 = vadd.f32 %v4669_v33, %v4465_v36  ;;  %v2699_v47 = vpop.f32.mrb[9].mxu0 }
 0x26a   : > { %v4830_v50 = vadd.f32 %v2699_v47, %v933_v49  ;;  %v4670_v58 = vpop.f32.mrb[10].mxu0 }
 0x26b   : > { %v4831_v22 = vadd.f32 %v4670_v58, %v4466_v51  ;;  %v2702_v32 = vpop.f32.mrb[11].mxu0  ;;  %v2830_v58 = vld [vmem:[#allocation6 + $0x20] sm:$0xff] }
 0x26c   : > { %v4832_v34 = vadd.f32 %v2702_v32, %v936_v52  ;;  %v2832_v32 = vld [vmem:[#allocation6 + $0x30] sm:$0xff] }
 0x26d   : > { %v5970_v45 = vpack.c.bf16 %v4831_v22, %v4829_v35  ;;  %v2833_v22 = vld [vmem:[#allocation6 + $0x38] sm:$0xff] }
 0x26e   : > { %v5972_v48 = vpack.c.bf16 %v4832_v34, %v4830_v50  ;;  %v2835_v34 = vld [vmem:[#allocation6 + $0x48] sm:$0xff] }
 0x270   : > { %v4673_v57 = vpop.f32.mrb[12].mxu0 }
 0x271   : > { %v4833_v59 = vadd.f32 %v4673_v57, %v4469_v53  ;;  %v2715_v2 = vpop.f32.mrb[13].mxu0  ;;  %v2834_v57 = vld [vmem:[#allocation6 + $0x40] sm:$0xff] }
 0x272   : > { %v4834_v3 = vadd.f32 %v2715_v2, %v949_v55  ;;  %v4674_v12 = vpop.f32.mrb[14].mxu0  ;;  %v2836_v2 = vld [vmem:[#allocation6 + $0x50] sm:$0xff] }
 0x273   : > { %v4835_v13 = vadd.f32 %v4674_v12, %v4470_v7  ;;  %v2718_v19 = vpop.f32.mrb[15].mxu0  ;;  %v2838_v12 = vld [vmem:[#allocation6 + $0x60] sm:$0xff] }
 0x274   : > { %v4836_v20 = vadd.f32 %v2718_v19, %v952_v8  ;;  %v2840_v19 = vld [vmem:[#allocation6 + $0x70] sm:$0xff] }
 0x275   : > { %v5974_v27 = vpack.c.bf16 %v4835_v13, %v4833_v59  ;;  %v2837_v59 = vld [vmem:[#allocation6 + $0x58] sm:$0xff] }
 0x276   : > { %v5976_v36 = vpack.c.bf16 %v4836_v20, %v4834_v3  ;;  %v2839_v3 = vld [vmem:[#allocation6 + $0x68] sm:$0xff]  ;;  %v2841_v13 = vld [vmem:[#allocation6 + $0x78] sm:$0xff] }
 0x277   : > { %v2949_v20 = vld [vmem:[#allocation6 + $0x88] sm:$0xff] }
 0x278   : > { %v4677_v49 = vpop.f32.mrb[16].mxu0 }
 0x279   : > { %v4837_v51 = vadd.f32 %v4677_v49, %v4507_v10  ;;  %v2731_v0 = vpop.f32.mrb[17].mxu0  ;;  %v2948_v49 = vld [vmem:[#allocation6 + $0x80] sm:$0xff] }
 0x27a   : > { %v4838_v52 = vadd.f32 %v2731_v0, %v1260_v11  ;;  %v4678_v5 = vpop.f32.mrb[18].mxu0  ;;  %v2950_v0 = vld [vmem:[#allocation6 + $0x90] sm:$0xff] }
 0x27b   : > { %v4839_v6 = vadd.f32 %v4678_v5, %v4508_v28  ;;  %v2734_v14 = vpop.f32.mrb[19].mxu0  ;;  %v2952_v5 = vld [vmem:[#allocation6 + $0xa0] sm:$0xff] }
 0x27c   : > { %v4840_v15 = vadd.f32 %v2734_v14, %v1263_v29  ;;  %v2954_v14 = vld [vmem:[#allocation6 + $0xb0] sm:$0xff] }
 0x27d   : > { %v5978_v16 = vpack.c.bf16 %v4839_v6, %v4837_v51  ;;  %v2951_v51 = vld [vmem:[#allocation6 + $0x98] sm:$0xff] }
 0x27e   : > { %v5980_v53 = vpack.c.bf16 %v4840_v15, %v4838_v52  ;;  %v2953_v52 = vld [vmem:[#allocation6 + $0xa8] sm:$0xff]  ;;  %v2955_v6 = vld [vmem:[#allocation6 + $0xb8] sm:$0xff] }
 0x27f   : > { %v2957_v15 = vld [vmem:[#allocation6 + $0xc8] sm:$0xff] }
 0x280   : > { %v4681_v55 = vpop.f32.mrb[20].mxu0  ;;  %4692 = vmatprep.subr.bf16.mxu1 %v5980_v53 }
 0x281   : > { %v4841_v7 = vadd.f32 %v4681_v55, %v5938_v1  ;;  %v2747_v8 = vpop.f32.mrb[21].mxu0  ;;  %4694 = vmatpush3.bf16.msra.mxu1 %v5964_v24  ;;  %v2956_v55 = vld [vmem:[#allocation6 + $0xc0] sm:$0xff] }
 0x282   : > { %v4842_v10 = vadd.f32 %v2747_v8, %v5940_v9  ;;  %v4682_v18 = vpop.f32.mrb[22].mxu0  ;;  %4696 = vmatprep.subr.bf16.mxu1 %v5978_v16  ;;  %v2958_v8 = vld [vmem:[#allocation6 + $0xd0] sm:$0xff] }
 0x283   : > { %v4843_v11 = vadd.f32 %v4682_v18, %v5942_v42  ;;  %v2750_v28 = vpop.f32.mrb[23].mxu0  ;;  %v2960_v18 = vld [vmem:[#allocation6 + $0xe0] sm:$0xff] }
 0x284   : > { %v4844_v29 = vadd.f32 %v2750_v28, %v5944_v43  ;;  %v2962_v28 = vld [vmem:[#allocation6 + $0xf0] sm:$0xff] }
 0x285   : > { %v5989_v37 = vpack.c.bf16 %v4843_v11, %v4841_v7  ;;  %4698 = vmatpush3.bf16.msra.mxu1 %v5962_v21  ;;  %v2959_v7 = vld [vmem:[#allocation6 + $0xd8] sm:$0xff] }
 0x286   : > { %v5992_v4 = vpack.c.bf16 %v4844_v29, %v4842_v10  ;;  %v2961_v10 = vld [vmem:[#allocation6 + $0xe8] sm:$0xff]  ;;  %v2963_v11 = vld [vmem:[#allocation6 + $0xf8] sm:$0xff] }
 0x287   : > { %v3079_v29 = vld [vmem:[#allocation6 + $0x108] sm:$0xff] }
 0x288   : > { %v4685_v1 = vpop.f32.mrb[24].mxu0  ;;  %4700 = vmatprep.subr.bf16.mxu1 %v5992_v4 }
 0x289   : > { %v4845_v25 = vadd.f32 %v4685_v1, %v5946_v44  ;;  %v2763_v9 = vpop.f32.mrb[25].mxu0  ;;  %4702 = vmatpush3.bf16.msra.mxu1 %v5968_v23  ;;  %v3078_v1 = vld [vmem:[#allocation6 + $0x100] sm:$0xff] }
 0x28a   : > { %v4846_v26 = vadd.f32 %v2763_v9, %v5948_v46  ;;  %v4686_v42 = vpop.f32.mrb[26].mxu0  ;;  %4704 = vmatprep.subr.bf16.mxu1 %v5989_v37  ;;  %v3080_v9 = vld [vmem:[#allocation6 + $0x110] sm:$0xff] }
 0x28b   : > { %v4847_v43 = vadd.f32 %v4686_v42, %v5950_v54  ;;  %v2766_v30 = vpop.f32.mrb[27].mxu0  ;;  %v3082_v42 = vld [vmem:[#allocation6 + $0x120] sm:$0xff] }
 0x28c   : > { %v4848_v31 = vadd.f32 %v2766_v30, %v5952_v56  ;;  %v3092_v30 = vld [vmem:[#allocation6 + $0x170] sm:$0xff] }
 0x28d   : > { %v6001_v38 = vpack.c.bf16 %v4847_v43, %v4845_v25  ;;  %4706 = vmatpush3.bf16.msra.mxu1 %v5966_v17  ;;  %v3081_v25 = vld [vmem:[#allocation6 + $0x118] sm:$0xff] }
 0x28e   : > { %v6004_v39 = vpack.c.bf16 %v4848_v31, %v4846_v26  ;;  %v3083_v26 = vld [vmem:[#allocation6 + $0x128] sm:$0xff]  ;;  %v3085_v43 = vld [vmem:[#allocation6 + $0x138] sm:$0xff]  ;;  %v3208_v31 = vld [vmem:[#allocation6 + $0x180] sm:$0xff] }
 0x290   : > { %v4689_v44 = vpop.f32.mrb[28].mxu0  ;;  %4708 = vmatprep.subr.bf16.mxu1 %v6004_v39 }
 0x291   : > { %v4849_v40 = vadd.f32 %v4689_v44, %v5954_v60  ;;  %v2779_v46 = vpop.f32.mrb[29].mxu0  ;;  %4710 = vmatpush3.bf16.msra.mxu1 %v5972_v48  ;;  %v2826_v60 = vld [vmem:[#allocation6] sm:$0xff] }
 0x292   : > { %v4850_v41 = vadd.f32 %v2779_v46, %v5956_v61  ;;  %v4690_v54 = vpop.f32.mrb[30].mxu0  ;;  %4712 = vmatprep.subr.bf16.mxu1 %v6001_v38  ;;  %v2829_v61 = vld [vmem:[#allocation6 + $0x18] sm:$0xff]  ;;  %v3212_v44 = vld [vmem:[#allocation6 + $0x1a0] sm:$0xff]  ;;  %v3217_v46 = vld [vmem:[#allocation6 + $0x1c8] sm:$0xff] }
 0x293   : > { %v4851_v56 = vadd.f32 %v4690_v54, %v5958_v62  ;;  %v2782_v33 = vpop.f32.mrb[31].mxu0  ;;  %v2828_v62 = vld [vmem:[#allocation6 + $0x10] sm:$0xff]  ;;  %v3219_v54 = vld [vmem:[#allocation6 + $0x1d8] sm:$0xff] }
 0x294   : > { %v4852_v35 = vadd.f32 %v2782_v33, %v5960_v63  ;;  %v2831_v63 = vld [vmem:[#allocation6 + $0x28] sm:$0xff]  ;;  %v3220_v33 = vld [vmem:[#allocation6 + $0x1e0] sm:$0xff] }
 0x295   : > { %v6013_v47 = vpack.c.bf16 %v4851_v56, %v4849_v40  ;;  %4714 = vmatpush3.bf16.msra.mxu1 %v5970_v45  ;;  %v3215_v40 = vld [vmem:[#allocation6 + $0x1b8] sm:$0xff]  ;;  %v3221_v56 = vld [vmem:[#allocation6 + $0x1e8] sm:$0xff] }
 0x296   : > { %v6016_v50 = vpack.c.bf16 %v4852_v35, %v4850_v41  ;;  %v3216_v41 = vld [vmem:[#allocation6 + $0x1c0] sm:$0xff]  ;;  %v3223_v35 = vld [vmem:[#allocation6 + $0x1f8] sm:$0xff] }
 0x298   : > { %4716 = vmatprep.subr.bf16.mxu1 %v6016_v50 }
 0x299   : > { %4718 = vmatpush3.bf16.msra.mxu1 %v5976_v36 }
 0x29a   : > { %4720 = vmatprep.subr.bf16.mxu1 %v6013_v47 }
 0x29d   : > { %4722 = vmatpush3.bf16.msra.mxu1 %v5974_v27 }
 0x29e   : > { %4724 = vmatprep.subr.bf16.mxu1 %v5980_v53 }
 0x2a0   : > { %2907 = vmatmul.mubr.f32.vlgmr.msra.gmra.mrb[32].mxu1 %v2826_v60 }
 0x2a1   : > { %4726 = vmatpush3.bf16.msra.mxu1 %v5964_v24  ;;  %2911 = vmatprep.mubr.f32.mxu1 %v2829_v61 }
 0x2a2   : > { %4728 = vmatprep.subr.bf16.mxu1 %v5978_v16 }
 0x2a4   : > { %2912 = vmatmul.mubr.f32.gmra.mrb[34].mxu1 %v2828_v62 }
 0x2a5   : > { %4730 = vmatpush3.bf16.msra.mxu1 %v5962_v21  ;;  %2916 = vmatprep.mubr.f32.mxu1 %v2831_v63 }
 0x2a6   : > { %4732 = vmatprep.subr.bf16.mxu1 %v5992_v4 }
 0x2a8   : > { %2917 = vmatmul.mubr.f32.gmra.mrb[36].mxu1 %v2830_v58 }
 0x2a9   : > { %4734 = vmatpush3.bf16.msra.mxu1 %v5968_v23  ;;  %2921 = vmatprep.mubr.f32.mxu1 %v2833_v22 }
 0x2aa   : > { %4736 = vmatprep.subr.bf16.mxu1 %v5989_v37 }
 0x2ac   : > { %2922 = vmatmul.mubr.f32.gmra.mrb[38].mxu1 %v2832_v32 }
 0x2ad   : > { %4738 = vmatpush3.bf16.msra.mxu1 %v5966_v17  ;;  %2926 = vmatprep.mubr.f32.mxu1 %v2835_v34 }
 0x2ae   : > { %4740 = vmatprep.subr.bf16.mxu1 %v6004_v39 }
 0x2b0   : > { %2927 = vmatmul.mubr.f32.gmra.mrb[40].mxu1 %v2834_v57 }
 0x2b1   : > { %4742 = vmatpush3.bf16.msra.mxu1 %v5972_v48  ;;  %2931 = vmatprep.mubr.f32.mxu1 %v2837_v59 }
 0x2b2   : > { %4744 = vmatprep.subr.bf16.mxu1 %v6001_v38 }
 0x2b4   : > { %2932 = vmatmul.mubr.f32.gmra.mrb[42].mxu1 %v2836_v2 }
 0x2b5   : > { %4746 = vmatpush3.bf16.msra.mxu1 %v5970_v45  ;;  %2936 = vmatprep.mubr.f32.mxu1 %v2839_v3 }
 0x2b6   : > { %4748 = vmatprep.subr.bf16.mxu1 %v6016_v50 }
 0x2b8   : > { %2937 = vmatmul.mubr.f32.gmra.mrb[44].mxu1 %v2838_v12 }
 0x2b9   : > { %4750 = vmatpush3.bf16.msra.mxu1 %v5976_v36  ;;  %2941 = vmatprep.mubr.f32.mxu1 %v2841_v13 }
 0x2ba   : > { %4752 = vmatprep.subr.bf16.mxu1 %v6013_v47 }
 0x2bc   : > { %2942 = vmatmul.mubr.f32.gmra.mrb[46].mxu1 %v2840_v19 }
 0x2bd   : > { %4754 = vmatpush3.bf16.msra.mxu1 %v5974_v27  ;;  %3028 = vmatprep.mubr.f32.mxu1 %v2949_v20 }
 0x2be   : > { %4756 = vmatprep.subr.bf16.mxu1 %v5980_v53 }
 0x2c0   : > { %3029 = vmatmul.mubr.f32.vlgmr.msra.gmra.mrb[48].mxu1 %v2948_v49 }
 0x2c1   : > { %4758 = vmatpush3.bf16.msra.mxu1 %v5964_v24  ;;  %3033 = vmatprep.mubr.f32.mxu1 %v2951_v51 }
 0x2c2   : > { %4760 = vmatprep.subr.bf16.mxu1 %v5978_v16 }
 0x2c4   : > { %3034 = vmatmul.mubr.f32.gmra.mrb[50].mxu1 %v2950_v0 }
 0x2c5   : > { %4762 = vmatpush3.bf16.msra.mxu1 %v5962_v21  ;;  %3038 = vmatprep.mubr.f32.mxu1 %v2953_v52 }
 0x2c6   : > { %4764 = vmatprep.subr.bf16.mxu1 %v5992_v4 }
 0x2c8   : > { %3039 = vmatmul.mubr.f32.gmra.mrb[52].mxu1 %v2952_v5 }
 0x2c9   : > { %4766 = vmatpush3.bf16.msra.mxu1 %v5968_v23  ;;  %3043 = vmatprep.mubr.f32.mxu1 %v2955_v6 }
 0x2ca   : > { %4768 = vmatprep.subr.bf16.mxu1 %v5989_v37 }
 0x2cc   : > { %3044 = vmatmul.mubr.f32.gmra.mrb[54].mxu1 %v2954_v14 }
 0x2cd   : > { %4770 = vmatpush3.bf16.msra.mxu1 %v5966_v17  ;;  %3048 = vmatprep.mubr.f32.mxu1 %v2957_v15 }
 0x2ce   : > { %4772 = vmatprep.subr.bf16.mxu1 %v6004_v39 }
 0x2d0   : > { %3049 = vmatmul.mubr.f32.gmra.mrb[56].mxu1 %v2956_v55 }
 0x2d1   : > { %4774 = vmatpush3.bf16.msra.mxu1 %v5972_v48  ;;  %3053 = vmatprep.mubr.f32.mxu1 %v2959_v7 }
 0x2d2   : > { %4776 = vmatprep.subr.bf16.mxu1 %v6001_v38 }
 0x2d4   : > { %3054 = vmatmul.mubr.f32.gmra.mrb[58].mxu1 %v2958_v8 }
 0x2d5   : > { %4778 = vmatpush3.bf16.msra.mxu1 %v5970_v45  ;;  %3058 = vmatprep.mubr.f32.mxu1 %v2961_v10 }
 0x2d6   : > { %4780 = vmatprep.subr.bf16.mxu1 %v6016_v50 }
 0x2d8   : > { %3059 = vmatmul.mubr.f32.gmra.mrb[60].mxu1 %v2960_v18 }
 0x2d9   : > { %4782 = vmatpush3.bf16.msra.mxu1 %v5976_v36  ;;  %3063 = vmatprep.mubr.f32.mxu1 %v2963_v11 }
 0x2da   : > { %4784 = vmatprep.subr.bf16.mxu1 %v6013_v47 }
 0x2dc   : > { %3064 = vmatmul.mubr.f32.gmra.mrb[62].mxu1 %v2962_v28 }
 0x2dd   : > { %4786 = vmatpush3.bf16.msra.mxu1 %v5974_v27  ;;  %3158 = vmatprep.mubr.f32.mxu1 %v3079_v29 }
 0x2de   : > { %4788 = vmatprep.subr.bf16.mxu1 %v5980_v53  ;;  %v3084_v53 = vld [vmem:[#allocation6 + $0x130] sm:$0xff] }
 0x2e0   : > { %3159 = vmatmul.mubr.f32.vlgmr.msra.gmra.mrb[64].mxu1 %v3078_v1 }
 0x2e1   : > { %4790 = vmatpush3.bf16.msra.mxu1 %v5964_v24  ;;  %3163 = vmatprep.mubr.f32.mxu1 %v3081_v25  ;;  %v3087_v24 = vld [vmem:[#allocation6 + $0x148] sm:$0xff] }
 0x2e2   : > { %4792 = vmatprep.subr.bf16.mxu1 %v5978_v16  ;;  %v3086_v16 = vld [vmem:[#allocation6 + $0x140] sm:$0xff] }
 0x2e4   : > { %3164 = vmatmul.mubr.f32.gmra.mrb[66].mxu1 %v3080_v9 }
 0x2e5   : > { %4794 = vmatpush3.bf16.msra.mxu1 %v5962_v21  ;;  %3168 = vmatprep.mubr.f32.mxu1 %v3083_v26  ;;  %v3089_v21 = vld [vmem:[#allocation6 + $0x158] sm:$0xff] }
 0x2e6   : > { %4796 = vmatprep.subr.bf16.mxu1 %v5992_v4  ;;  %v3088_v4 = vld [vmem:[#allocation6 + $0x150] sm:$0xff] }
 0x2e8   : > { %3169 = vmatmul.mubr.f32.gmra.mrb[68].mxu1 %v3082_v42 }
 0x2e9   : > { %4798 = vmatpush3.bf16.msra.mxu1 %v5968_v23  ;;  %3173 = vmatprep.mubr.f32.mxu1 %v3085_v43  ;;  %v3091_v23 = vld [vmem:[#allocation6 + $0x168] sm:$0xff] }
 0x2ea   : > { %4800 = vmatprep.subr.bf16.mxu1 %v5989_v37  ;;  %v3090_v37 = vld [vmem:[#allocation6 + $0x160] sm:$0xff] }
 0x2ec   : > { %3174 = vmatmul.mubr.f32.gmra.mrb[70].mxu1 %v3084_v53 }
 0x2ed   : > { %4802 = vmatpush3.bf16.msra.mxu1 %v5966_v17  ;;  %3178 = vmatprep.mubr.f32.mxu1 %v3087_v24  ;;  %v3093_v17 = vld [vmem:[#allocation6 + $0x178] sm:$0xff] }
 0x2ee   : > { %4804 = vmatprep.subr.bf16.mxu1 %v6004_v39  ;;  %v3213_v39 = vld [vmem:[#allocation6 + $0x1a8] sm:$0xff] }
 0x2f0   : > { %3179 = vmatmul.mubr.f32.gmra.mrb[72].mxu1 %v3086_v16 }
 0x2f1   : > { %4806 = vmatpush3.bf16.msra.mxu1 %v5972_v48  ;;  %3183 = vmatprep.mubr.f32.mxu1 %v3089_v21  ;;  %v3209_v48 = vld [vmem:[#allocation6 + $0x188] sm:$0xff] }
 0x2f2   : > { %4808 = vmatprep.subr.bf16.mxu1 %v6001_v38  ;;  %v3211_v38 = vld [vmem:[#allocation6 + $0x198] sm:$0xff] }
 0x2f4   : > { %3184 = vmatmul.mubr.f32.gmra.mrb[74].mxu1 %v3088_v4 }
 0x2f5   : > { %4810 = vmatpush3.bf16.msra.mxu1 %v5970_v45  ;;  %3188 = vmatprep.mubr.f32.mxu1 %v3091_v23  ;;  %v3210_v45 = vld [vmem:[#allocation6 + $0x190] sm:$0xff] }
 0x2f6   : > { %4812 = vmatprep.subr.bf16.mxu1 %v6016_v50 }
 0x2f8   : > { %3189 = vmatmul.mubr.f32.gmra.mrb[76].mxu1 %v3090_v37 }
 0x2f9   : > { %4814 = vmatpush3.bf16.msra.mxu1 %v5976_v36  ;;  %3193 = vmatprep.mubr.f32.mxu1 %v3093_v17  ;;  %v3214_v36 = vld [vmem:[#allocation6 + $0x1b0] sm:$0xff] }
 0x2fa   : > { %4816 = vmatprep.subr.bf16.mxu1 %v6013_v47  ;;  %v3222_v47 = vld [vmem:[#allocation6 + $0x1f0] sm:$0xff] }
 0x2fc   : > { %3194 = vmatmul.mubr.f32.gmra.mrb[78].mxu1 %v3092_v30 }
 0x2fd   : > { %4818 = vmatpush3.bf16.msra.mxu1 %v5974_v27  ;;  %3288 = vmatprep.mubr.f32.mxu1 %v3209_v48  ;;  %v3218_v27 = vld [vmem:[#allocation6 + $0x1d0] sm:$0xff] }
 0x300   : > { %3289 = vmatmul.mubr.f32.vlgmr.msra.gmra.mrb[80].mxu1 %v3208_v31 }
 0x301   : > { %3293 = vmatprep.mubr.f32.mxu1 %v3211_v38 }
 0x304   : > { %3294 = vmatmul.mubr.f32.gmra.mrb[82].mxu1 %v3210_v45 }
 0x305   : > { %3298 = vmatprep.mubr.f32.mxu1 %v3213_v39 }
 0x308   : > { %3299 = vmatmul.mubr.f32.gmra.mrb[84].mxu1 %v3212_v44 }
 0x309   : > { %3303 = vmatprep.mubr.f32.mxu1 %v3215_v40 }
 0x30c   : > { %3304 = vmatmul.mubr.f32.gmra.mrb[86].mxu1 %v3214_v36 }
 0x30d   : > { %3308 = vmatprep.mubr.f32.mxu1 %v3217_v46 }
 0x310   : > { %3309 = vmatmul.mubr.f32.gmra.mrb[88].mxu1 %v3216_v41 }
 0x311   : > { %3313 = vmatprep.mubr.f32.mxu1 %v3219_v54 }
 0x314   : > { %3314 = vmatmul.mubr.f32.gmra.mrb[90].mxu1 %v3218_v27 }
 0x315   : > { %3318 = vmatprep.mubr.f32.mxu1 %v3221_v56 }
 0x318   : > { %3319 = vmatmul.mubr.f32.gmra.mrb[92].mxu1 %v3220_v33 }
 0x319   : > { %3323 = vmatprep.mubr.f32.mxu1 %v3223_v35 }
 0x31c   : > { %3324 = vmatmul.mubr.f32.gmra.mrb[94].mxu1 %v3222_v47 }
 0x373   : > { %v4193_v50 = vpop.f32.mrb[32].mxu1 }
 0x374   : > { %v4194_v60 = vpop.f32.mrb[33].mxu1 }
 0x375   : > { %v4195_v61 = vadd.f32 %v4194_v60, %v4193_v50 }
 0x377   : > { %v4196_v62 = vpop.f32.mrb[34].mxu1 }
 0x378   : > { %v4197_v63 = vpop.f32.mrb[35].mxu1 }
 0x379   : > { %v4198_v58 = vadd.f32 %v4197_v63, %v4196_v62 }
 0x37b   : > { %v4199_v22 = vpop.f32.mrb[36].mxu1 }
 0x37c   : > { %v4200_v32 = vpop.f32.mrb[37].mxu1 }
 0x37d   : > { %v4201_v34 = vadd.f32 %v4200_v32, %v4199_v22 }
 0x37f   : > { %v4202_v57 = vpop.f32.mrb[38].mxu1 }
 0x380   : > { %v4203_v59 = vpop.f32.mrb[39].mxu1 }
 0x381   : > { %v4204_v2 = vadd.f32 %v4203_v59, %v4202_v57 }
 0x383   : > { %v4205_v3 = vpop.f32.mrb[40].mxu1 }
 0x384   : > { %v4206_v12 = vpop.f32.mrb[41].mxu1 }
 0x385   : > { %v4207_v13 = vadd.f32 %v4206_v12, %v4205_v3 }
 0x387   : > { %v4208_v19 = vpop.f32.mrb[42].mxu1 }
 0x388   : > { %v4209_v20 = vpop.f32.mrb[43].mxu1 }
 0x389   : > { %v6070_v49 = vadd.f32 %v4209_v20, %v4208_v19 }
 0x38b   : > { %v4211_v51 = vpop.f32.mrb[44].mxu1 }
 0x38c   : > { %v4212_v0 = vpop.f32.mrb[45].mxu1 }
 0x38d   : > { %v6072_v52 = vadd.f32 %v4212_v0, %v4211_v51 }
 0x38f   : > { %v4214_v5 = vpop.f32.mrb[46].mxu1 }
 0x390   : > { %v4215_v6 = vpop.f32.mrb[47].mxu1 }
 0x391   : > { %v6074_v14 = vadd.f32 %v4215_v6, %v4214_v5 }
 0x393   : > { %v4249_v15 = vpop.f32.mrb[48].mxu1 }
 0x394   : > { %v4250_v55 = vpop.f32.mrb[49].mxu1 }
 0x395   : > { %v4251_v7 = vadd.f32 %v4250_v55, %v4249_v15 }
 0x397   : > { %v3069_v8 = vmax.f32 %v4195_v61, %v4251_v7  ;;  %v4252_v10 = vpop.f32.mrb[50].mxu1 }
 0x398   : > { %v4253_v18 = vpop.f32.mrb[51].mxu1 }
 0x399   : > { %v4254_v11 = vadd.f32 %v4253_v18, %v4252_v10 }
 0x39b   : > { %v3070_v28 = vmax.f32 %v4198_v58, %v4254_v11  ;;  %v4255_v29 = vpop.f32.mrb[52].mxu1 }
 0x39c   : > { %v4256_v1 = vpop.f32.mrb[53].mxu1 }
 0x39d   : > { %v4257_v25 = vadd.f32 %v4256_v1, %v4255_v29 }
 0x39f   : > { %v3071_v9 = vmax.f32 %v4201_v34, %v4257_v25  ;;  %v4258_v26 = vpop.f32.mrb[54].mxu1 }
 0x3a0   : > { %v4259_v42 = vpop.f32.mrb[55].mxu1 }
 0x3a1   : > { %v4260_v43 = vadd.f32 %v4259_v42, %v4258_v26 }
 0x3a3   : > { %v3072_v53 = vmax.f32 %v4204_v2, %v4260_v43  ;;  %v4261_v24 = vpop.f32.mrb[56].mxu1 }
 0x3a4   : > { %v4262_v16 = vpop.f32.mrb[57].mxu1 }
 0x3a5   : > { %v4263_v21 = vadd.f32 %v4262_v16, %v4261_v24 }
 0x3a7   : > { %v3073_v4 = vmax.f32 %v4207_v13, %v4263_v21  ;;  %v4264_v23 = vpop.f32.mrb[58].mxu1 }
 0x3a8   : > { %v4265_v37 = vpop.f32.mrb[59].mxu1 }
 0x3a9   : > { %v4266_v17 = vadd.f32 %v4265_v37, %v4264_v23 }
 0x3ab   : > { %v3074_v30 = vmax.f32 %v6070_v49, %v4266_v17  ;;  %v4267_v48 = vpop.f32.mrb[60].mxu1 }
 0x3ac   : > { %v4268_v31 = vpop.f32.mrb[61].mxu1 }
 0x3ad   : > { %v4269_v38 = vadd.f32 %v4268_v31, %v4267_v48 }
 0x3af   : > { %v3075_v45 = vmax.f32 %v6072_v52, %v4269_v38  ;;  %v4270_v39 = vpop.f32.mrb[62].mxu1 }
 0x3b0   : > { %v4271_v44 = vpop.f32.mrb[63].mxu1 }
 0x3b1   : > { %v4272_v40 = vadd.f32 %v4271_v44, %v4270_v39 }
 0x3b3   : > { %v3076_v36 = vmax.f32 %v6074_v14, %v4272_v40  ;;  %v4305_v46 = vpop.f32.mrb[64].mxu1 }
 0x3b4   : > { %v4306_v41 = vpop.f32.mrb[65].mxu1 }
 0x3b5   : > { %v4307_v54 = vadd.f32 %v4306_v41, %v4305_v46 }
 0x3b7   : > { %v3199_v27 = vmax.f32 %v3069_v8, %v4307_v54  ;;  %v4308_v56 = vpop.f32.mrb[66].mxu1  ;;  %v6087_v8 = vld [vmem:[#allocation4] ss:$0 sm:$0xff] }
 0x3b8   : > { %v4309_v33 = vpop.f32.mrb[67].mxu1 }
 0x3b9   : > { %v4310_v35 = vadd.f32 %v4309_v33, %v4308_v56 }
 0x3bb   : > { %v3200_v47 = vmax.f32 %v3070_v28, %v4310_v35  ;;  %v4311_v50 = vpop.f32.mrb[68].mxu1 }
 0x3bc   : > { %v4312_v60 = vpop.f32.mrb[69].mxu1 }
 0x3bd   : > { %v4313_v61 = vadd.f32 %v4312_v60, %v4311_v50 }
 0x3bf   : > { %v3201_v62 = vmax.f32 %v3071_v9, %v4313_v61  ;;  %v4314_v63 = vpop.f32.mrb[70].mxu1 }
 0x3c0   : > { %v4315_v58 = vpop.f32.mrb[71].mxu1 }
 0x3c1   : > { %v4316_v22 = vadd.f32 %v4315_v58, %v4314_v63 }
 0x3c3   : > { %v3202_v32 = vmax.f32 %v3072_v53, %v4316_v22  ;;  %v4317_v34 = vpop.f32.mrb[72].mxu1 }
 0x3c4   : > { %v4318_v57 = vpop.f32.mrb[73].mxu1 }
 0x3c5   : > { %v4319_v59 = vadd.f32 %v4318_v57, %v4317_v34 }
 0x3c7   : > { %v6079_v2 = vmax.f32 %v3073_v4, %v4319_v59  ;;  %v4320_v3 = vpop.f32.mrb[74].mxu1 }
 0x3c8   : > { %v4321_v12 = vpop.f32.mrb[75].mxu1 }
 0x3c9   : > { %v4322_v13 = vadd.f32 %v4321_v12, %v4320_v3 }
 0x3cb   : > { %v6081_v19 = vmax.f32 %v3074_v30, %v4322_v13  ;;  %v4323_v20 = vpop.f32.mrb[76].mxu1 }
 0x3cc   : > { %v4324_v49 = vpop.f32.mrb[77].mxu1 }
 0x3cd   : > { %v4325_v51 = vadd.f32 %v4324_v49, %v4323_v20 }
 0x3cf   : > { %v6083_v0 = vmax.f32 %v3075_v45, %v4325_v51  ;;  %v4326_v52 = vpop.f32.mrb[78].mxu1 }
 0x3d0   : > { %v4327_v5 = vpop.f32.mrb[79].mxu1 }
 0x3d1   : > { %v4328_v6 = vadd.f32 %v4327_v5, %v4326_v52 }
 0x3d3   : > { %v6085_v14 = vmax.f32 %v3076_v36, %v4328_v6  ;;  %v4361_v15 = vpop.f32.mrb[80].mxu1 }
 0x3d4   : > { %v4362_v55 = vpop.f32.mrb[81].mxu1 }
 0x3d5   : > { %v4363_v7 = vadd.f32 %v4362_v55, %v4361_v15 }
 0x3d7   : > { %v3329_v10 = vmax.f32 %v3199_v27, %v4363_v7  ;;  %v4364_v18 = vpop.f32.mrb[82].mxu1 }
 0x3d8   : > { %v4365_v11 = vpop.f32.mrb[83].mxu1 }
 0x3d9   : > { %v3344_v28 = vadd.f32 %v6087_v8, %v3329_v10  ;;  %v4366_v29 = vadd.f32 %v4365_v11, %v4364_v18 }
 0x3db   : > { %v6090_v1 = vmax.f32 %v3344_v28, 0.0  ;;  %v3330_v25 = vmax.f32 %v3200_v47, %v4366_v29  ;;  %v4367_v9 = vpop.f32.mrb[84].mxu1 }
 0x3dc   : > { %v4368_v26 = vpop.f32.mrb[85].mxu1 }
 0x3dd   : > { %v6094_v42 = vmul.f32 %v6090_v1, %v6090_v1  ;;  %v3345_v43 = vadd.f32 %v6087_v8, %v3330_v25  ;;  %v4369_v53 = vadd.f32 %v4368_v26, %v4367_v9 }
 0x3df   : > { %v6097_v24 = vmax.f32 %v3345_v43, 0.0  ;;  %v3331_v16 = vmax.f32 %v3201_v62, %v4369_v53  ;;  %v4370_v21 = vpop.f32.mrb[86].mxu1  ;;  %3368 = vrot.lane.b32.xlu0 %v6094_v42, %s5274_s16 }
 0x3e0   : > { %v4371_v4 = vpop.f32.mrb[87].mxu1 }
 0x3e1   : > { %v6103_v23 = vmul.f32 %v6097_v24, %v6097_v24  ;;  %v4372_v37 = vadd.f32 %v4371_v4, %v4370_v21  ;;  %v3346_v31 = vadd.f32 %v6087_v8, %v3331_v16 }
 0x3e3   : > { %v3332_v17 = vmax.f32 %v3202_v32, %v4372_v37  ;;  %v4373_v30 = vpop.f32.mrb[88].mxu1  ;;  %3394 = vrot.lane.b32.xlu1 %v6103_v23, %s5275_s20  ;;  %3392 = vrot.lane.b32.xlu0 %v6094_v42, %s5275_s20  ;;  %v6115_v40 = vmax.f32 %v3346_v31, 0.0 }
 0x3e4   : > { %v4374_v48 = vpop.f32.mrb[89].mxu1 }
 0x3e5   : > { %v4375_v38 = vadd.f32 %v4374_v48, %v4373_v30  ;;  %v3347_v36 = vadd.f32 %v6087_v8, %v3332_v17  ;;  %v6125_v56 = vmul.f32 %v6115_v40, %v6115_v40 }
 0x3e7   : > { %v3333_v45 = vmax.f32 %v6079_v2, %v4375_v38  ;;  %v4376_v39 = vpop.f32.mrb[90].mxu1  ;;  %3418 = vrot.lane.b32.xlu1 %v6103_v23, %s5276_s23  ;;  %3416 = vrot.lane.b32.xlu0 %v6094_v42, %s5276_s23  ;;  %v6127_v33 = vmax.f32 %v3347_v36, 0.0 }
 0x3e8   : > { %v4377_v44 = vpop.f32.mrb[91].mxu1 }
 0x3e9   : > { %v4378_v46 = vadd.f32 %v4377_v44, %v4376_v39  ;;  %v6136_v61 = vmul.f32 %v6127_v33, %v6127_v33  ;;  %v3348_v58 = vadd.f32 %v6087_v8, %v3333_v45 }
 0x3eb   : > { %v3334_v41 = vmax.f32 %v6081_v19, %v4378_v46  ;;  %v4379_v54 = vpop.f32.mrb[92].mxu1  ;;  %3442 = vrot.lane.b32.xlu1 %v6103_v23, %s5277_s17  ;;  %3440 = vrot.lane.b32.xlu0 %v6094_v42, %s5277_s17  ;;  %v6148_v22 = vmax.f32 %v3348_v58, 0.0 }
 0x3ec   : > { %v4380_v27 = vpop.f32.mrb[93].mxu1 }
 0x3ed   : > { %v4381_v35 = vadd.f32 %v4380_v27, %v4379_v54  ;;  %v3349_v32 = vadd.f32 %v6087_v8, %v3334_v41  ;;  %v6157_v34 = vmul.f32 %v6148_v22, %v6148_v22 }
 0x3ef   : > { %v3335_v47 = vmax.f32 %v6083_v0, %v4381_v35  ;;  %v4382_v50 = vpop.f32.mrb[94].mxu1  ;;  %3372 = vrot.lane.b32.xlu1 %v6125_v56, %s5274_s16  ;;  %3370 = vrot.lane.b32.xlu0 %v6103_v23, %s5274_s16  ;;  %v6159_v57 = vmax.f32 %v3349_v32, 0.0 }
 0x3f0   : > { %v4383_v60 = vpop.f32.mrb[95].mxu1 }
 0x3f1   : > { %v4384_v62 = vadd.f32 %v4383_v60, %v4382_v50  ;;  %v6167_v59 = vmul.f32 %v6159_v57, %v6159_v57  ;;  %v3350_v2 = vadd.f32 %v6087_v8, %v3335_v47 }
 0x3f3   : > { %v3336_v63 = vmax.f32 %v6085_v14, %v4384_v62  ;;  %3374 = vrot.lane.b32.xlu1 %v6136_v61, %s5274_s16  ;;  %3396 = vrot.lane.b32.xlu0 %v6125_v56, %s5275_s20  ;;  %v6178_v3 = vmax.f32 %v3350_v2, 0.0 }
 0x3f5   : > { %v3351_v12 = vadd.f32 %v6087_v8, %v3336_v63  ;;  %v6187_v13 = vmul.f32 %v6178_v3, %v6178_v3 }
 0x3f7   : > { %3398 = vrot.lane.b32.xlu1 %v6136_v61, %s5275_s20  ;;  %3420 = vrot.lane.b32.xlu0 %v6125_v56, %s5276_s23  ;;  %v6189_v19 = vmax.f32 %v3351_v12, 0.0 }
 0x3f9   : > { %v6197_v20 = vmul.f32 %v6189_v19, %v6189_v19 }
 0x3fb   : > { %3422 = vrot.lane.b32.xlu1 %v6136_v61, %s5276_s23  ;;  %3444 = vrot.lane.b32.xlu0 %v6125_v56, %s5277_s17 }
 0x3ff   : > { %3446 = vrot.lane.b32.xlu1 %v6136_v61, %s5277_s17  ;;  %3376 = vrot.lane.b32.xlu0 %v6157_v34, %s5274_s16 }
 0x403   : > { %3378 = vrot.lane.b32.xlu1 %v6167_v59, %s5274_s16  ;;  %3400 = vrot.lane.b32.xlu0 %v6157_v34, %s5275_s20 }
 0x407   : > { %3402 = vrot.lane.b32.xlu1 %v6167_v59, %s5275_s20  ;;  %3424 = vrot.lane.b32.xlu0 %v6157_v34, %s5276_s23 }
 0x40b   : > { %3426 = vrot.lane.b32.xlu1 %v6167_v59, %s5276_s23  ;;  %3448 = vrot.lane.b32.xlu0 %v6157_v34, %s5277_s17 }
 0x40f   : > { %3450 = vrot.lane.b32.xlu1 %v6167_v59, %s5277_s17  ;;  %3380 = vrot.lane.b32.xlu0 %v6187_v13, %s5274_s16 }
 0x413   : > { %3382 = vrot.lane.b32.xlu1 %v6197_v20, %s5274_s16  ;;  %3404 = vrot.lane.b32.xlu0 %v6187_v13, %s5275_s20 }
 0x417   : > { %3406 = vrot.lane.b32.xlu1 %v6197_v20, %s5275_s20  ;;  %3428 = vrot.lane.b32.xlu0 %v6187_v13, %s5276_s23 }
 0x41b   : > { %3430 = vrot.lane.b32.xlu1 %v6197_v20, %s5276_s23  ;;  %3452 = vrot.lane.b32.xlu0 %v6187_v13, %s5277_s17 }
 0x41f   : > { %3454 = vrot.lane.b32.xlu1 %v6197_v20, %s5277_s17 }
 0x451   : > { %v3369_v49 = vpop.permute.xlu0 %3368 }
 0x452   : > { %v3384_v52 = vadd.f32 %v3369_v49, %v6094_v42 }
 0x455   : > { %v3395_v51 = vpop.permute.xlu1 %3394  ;;  %v3393_v0 = vpop.permute.xlu0 %3392 }
 0x456   : > { %v3408_v14 = vadd.f32 %v3393_v0, %v3384_v52 }
 0x459   : > { %v3419_v5 = vpop.permute.xlu1 %3418  ;;  %v3417_v6 = vpop.permute.xlu0 %3416 }
 0x45a   : > { %v3432_v15 = vadd.f32 %v3417_v6, %v3408_v14 }
 0x45d   : > { %v3443_v55 = vpop.permute.xlu1 %3442  ;;  %v3441_v7 = vpop.permute.xlu0 %3440 }
 0x45e   : > { %v3456_v8 = vadd.f32 %v3441_v7, %v3432_v15 }
 0x460   : > { %v3464_v10 = vmul.f32 2e-05, %v3456_v8 }
 0x461   : > { %v3373_v18 = vpop.permute.xlu1 %3372  ;;  %v3371_v11 = vpop.permute.xlu0 %3370 }
 0x462   : > { %v3472_v28 = vadd.f32 2.0, %v3464_v10  ;;  %v3385_v29 = vadd.f32 %v3371_v11, %v6103_v23  ;;  %v3386_v42 = vadd.f32 %v3373_v18, %v6125_v56 }
 0x464   : > { %5135 = vrsqrt.f32 %v3472_v28  ;;  %v3409_v25 = vadd.f32 %v3395_v51, %v3385_v29 }
 0x465   : > { %v3375_v9 = vpop.permute.xlu1 %3374  ;;  %v3397_v26 = vpop.permute.xlu0 %3396 }
 0x466   : > { %v3433_v43 = vadd.f32 %v3419_v5, %v3409_v25  ;;  %v3410_v37 = vadd.f32 %v3397_v26, %v3386_v42  ;;  %v3387_v30 = vadd.f32 %v3375_v9, %v6136_v61 }
 0x468   : > { %v3457_v53 = vadd.f32 %v3443_v55, %v3433_v43 }
 0x469   : > { %v3399_v16 = vpop.permute.xlu1 %3398  ;;  %v3421_v21 = vpop.permute.xlu0 %3420 }
 0x46a   : > { %v3465_v4 = vmul.f32 2e-05, %v3457_v53  ;;  %v3434_v48 = vadd.f32 %v3421_v21, %v3410_v37  ;;  %v3411_v23 = vadd.f32 %v3399_v16, %v3387_v30 }
 0x46c   : > { %v3473_v17 = vadd.f32 2.0, %v3465_v4 }
 0x46d   : > { %v3423_v31 = vpop.permute.xlu1 %3422  ;;  %v3445_v38 = vpop.permute.xlu0 %3444 }
 0x46e   : > { %v5136_v45 = vpop.eup %5135  ;;  %5137 = vrsqrt.f32 %v3473_v17  ;;  %v3458_v39 = vadd.f32 %v3445_v38, %v3434_v48  ;;  %v3435_v44 = vadd.f32 %v3423_v31, %v3411_v23 }
 0x46f   : > { %5139 = vrsqrt.f32 %v5136_v45  ;;  %vm3490_vm2 = vcmp.eq.f32.partialorder %v5136_v45, inf  ;;  %v3493_v12 = vand.u32 2147483648, %v5136_v45  ;;  %vm3492_vm3 = vcmp.eq.f32.partialorder %v5136_v45, 0.0 }
 0x470   : > { %v3466_v36 = vmul.f32 2e-05, %v3458_v39 }
 0x471   : > { %v3447_v46 = vpop.permute.xlu1 %3446  ;;  %v3377_v41 = vpop.permute.xlu0 %3376 }
 0x472   : > { %v3474_v54 = vadd.f32 2.0, %v3466_v36  ;;  %v3459_v27 = vadd.f32 %v3447_v46, %v3435_v44  ;;  %v3388_v61 = vadd.f32 %v3377_v41, %v6157_v34 }
 0x474   : > { %5141 = vrsqrt.f32 %v3474_v54  ;;  %v3467_v56 = vmul.f32 2e-05, %v3459_v27 }
 0x475   : > { %v3379_v35 = vpop.permute.xlu1 %3378  ;;  %v3401_v47 = vpop.permute.xlu0 %3400 }
 0x476   : > { %v3475_v50 = vadd.f32 2.0, %v3467_v56  ;;  %v3412_v2 = vadd.f32 %v3401_v47, %v3388_v61  ;;  %v3389_v51 = vadd.f32 %v3379_v35, %v6167_v59 }
 0x478   : > { %v5138_v60 = vpop.eup %5137  ;;  %5143 = vrsqrt.f32 %v3475_v50 }
 0x479   : > { %v5140_v62 = vpop.eup %5139  ;;  %5145 = vrsqrt.f32 %v5138_v60  ;;  %v3403_v63 = vpop.permute.xlu1 %3402  ;;  %vm3497_vm4 = vcmp.eq.f32.partialorder %v5138_v60, inf  ;;  %v3500_v43 = vand.u32 2147483648, %v5138_v60  ;;  %vm3499_vm5 = vcmp.eq.f32.partialorder %v5138_v60, 0.0 }
 0x47a   : > { %v3425_v58 = vpop.permute.xlu0 %3424  ;;  %v3489_v32 = vmul.f32 %v5140_v62, %v5136_v45  ;;  %v3413_v34 = vadd.f32 %v3403_v63, %v3389_v51 }
 0x47b   : > { %v3436_v0 = vadd.f32 %v3425_v58, %v3412_v2 }
 0x47c   : > { %v3491_v49 = vsel %vm3490_vm2, %v5136_v45, %v3489_v32 }
 0x47d   : > { %v3494_v52 = vsel %vm3492_vm3, %v3493_v12, %v3491_v49  ;;  %v3427_v5 = vpop.permute.xlu1 %3426 }
 0x47e   : > { %v3449_v6 = vpop.permute.xlu0 %3448  ;;  %v5142_v14 = vpop.eup %5141  ;;  %v3544_v15 = vmul.f32 %v5136_v45, %v3494_v52  ;;  %v3437_v8 = vadd.f32 %v3427_v5, %v3413_v34 }
 0x47f   : > { %v3460_v55 = vadd.f32 %v3449_v6, %v3436_v0  ;;  %5147 = vrsqrt.f32 %v5142_v14  ;;  %vm3504_vm6 = vcmp.eq.f32.partialorder %v5142_v14, inf  ;;  %v3507_v23 = vand.u32 2147483648, %v5142_v14 }
 0x480   : > { %v3552_v7 = vmul.f32 %v3544_v15, %v6090_v1  ;;  %vm3506_vm7 = vcmp.eq.f32.partialorder %v5142_v14, 0.0 }
 0x481   : > { %v3468_v10 = vmul.f32 2e-05, %v3460_v55  ;;  %v3451_v59 = vpop.permute.xlu1 %3450 }
 0x482   : > { %v3381_v18 = vpop.permute.xlu0 %3380  ;;  %v5144_v11 = vpop.eup %5143  ;;  %3560 = vst [vmem:[%s6223_s28] sm:$0xff] %v3552_v7  ;;  %v3461_v29 = vadd.f32 %v3451_v59, %v3437_v8 }
 0x483   : > { %v3476_v28 = vadd.f32 2.0, %v3468_v10  ;;  %v5146_v25 = vpop.eup %5145  ;;  %5149 = vrsqrt.f32 %v5144_v11  ;;  %v3390_v37 = vadd.f32 %v3381_v18, %v6187_v13  ;;  %vm3511_vm8 = vcmp.eq.f32.partialorder %v5144_v11, inf }
 0x484   : > { %v3496_v9 = vmul.f32 %v5146_v25, %v5138_v60  ;;  %v3469_v26 = vmul.f32 2e-05, %v3461_v29  ;;  %vm3513_vm9 = vcmp.eq.f32.partialorder %v5144_v11, 0.0  ;;  %v3514_v50 = vand.u32 2147483648, %v5144_v11 }
 0x485   : > { %5151 = vrsqrt.f32 %v3476_v28  ;;  %v3383_v42 = vpop.permute.xlu1 %3382 }
 0x486   : > { %v3405_v53 = vpop.permute.xlu0 %3404  ;;  %v3498_v16 = vsel %vm3497_vm4, %v5138_v60, %v3496_v9  ;;  %v3477_v1 = vadd.f32 2.0, %v3469_v26  ;;  %v3391_v44 = vadd.f32 %v3383_v42, %v6197_v20 }
 0x487   : > { %v3501_v21 = vsel %vm3499_vm5, %v3500_v43, %v3498_v16  ;;  %v3414_v45 = vadd.f32 %v3405_v53, %v3390_v37 }
 0x488   : > { %v3545_v4 = vmul.f32 %v5138_v60, %v3501_v21  ;;  %5153 = vrsqrt.f32 %v3477_v1 }
 0x489   : > { %v5148_v17 = vpop.eup %5147  ;;  %v3407_v30 = vpop.permute.xlu1 %3406 }
 0x48a   : > { %v3429_v48 = vpop.permute.xlu0 %3428  ;;  %v3553_v31 = vmul.f32 %v3545_v4, %v6097_v24  ;;  %v3503_v38 = vmul.f32 %v5148_v17, %v5142_v14  ;;  %v3415_v47 = vadd.f32 %v3407_v30, %v3391_v44 }
 0x48b   : > { %v3438_v36 = vadd.f32 %v3429_v48, %v3414_v45 }
 0x48c   : > { %3561 = vst [vmem:[%s6223_s28 + $0x8] sm:$0xff] %v3553_v31  ;;  %v3505_v39 = vsel %vm3504_vm6, %v5142_v14, %v3503_v38 }
 0x48d   : > { %v5150_v46 = vpop.eup %5149  ;;  %v3508_v41 = vsel %vm3506_vm7, %v3507_v23, %v3505_v39  ;;  %v3431_v54 = vpop.permute.xlu1 %3430 }
 0x48e   : > { %v3453_v27 = vpop.permute.xlu0 %3452  ;;  %v3546_v56 = vmul.f32 %v5142_v14, %v3508_v41  ;;  %v3510_v35 = vmul.f32 %v5150_v46, %v5144_v11  ;;  %v3439_v20 = vadd.f32 %v3431_v54, %v3415_v47 }
 0x48f   : > { %v5152_v13 = vpop.eup %5151  ;;  %v3462_v24 = vadd.f32 %v3453_v27, %v3438_v36 }
 0x490   : > { %5155 = vrsqrt.f32 %v5152_v13  ;;  %v3554_v60 = vmul.f32 %v3546_v56, %v6115_v40  ;;  %v3512_v61 = vsel %vm3511_vm8, %v5144_v11, %v3510_v35  ;;  %vm3518_vm10 = vcmp.eq.f32.partialorder %v5152_v13, inf }
 0x491   : > { %v3470_v62 = vmul.f32 2e-05, %v3462_v24  ;;  %v3515_v63 = vsel %vm3513_vm9, %v3514_v50, %v3512_v61  ;;  %v3455_v58 = vpop.permute.xlu1 %3454  ;;  %v3521_v6 = vand.u32 2147483648, %v5152_v13  ;;  %vm3520_vm11 = vcmp.eq.f32.partialorder %v5152_v13, 0.0 }
 0x492   : > { %v5154_v32 = vpop.eup %5153  ;;  %3562 = vst [vmem:[%s6223_s28 + $0x10] sm:$0xff] %v3554_v60  ;;  %v3547_v2 = vmul.f32 %v5144_v11, %v3515_v63  ;;  %v3463_v49 = vadd.f32 %v3455_v58, %v3439_v20 }
 0x493   : > { %v3478_v12 = vadd.f32 2.0, %v3470_v62  ;;  %5157 = vrsqrt.f32 %v5154_v32  ;;  %vm3525_vm12 = vcmp.eq.f32.partialorder %v5154_v32, inf  ;;  %vm3527_vm13 = vcmp.eq.f32.partialorder %v5154_v32, 0.0 }
 0x494   : > { %v3555_v51 = vmul.f32 %v3547_v2, %v6127_v33  ;;  %v3471_v0 = vmul.f32 2e-05, %v3463_v49  ;;  %v3528_v33 = vand.u32 2147483648, %v5154_v32 }
 0x495   : > { %5159 = vrsqrt.f32 %v3478_v12 }
 0x496   : > { %3563 = vst [vmem:[%s6223_s28 + $0x18] sm:$0xff] %v3555_v51  ;;  %v3479_v52 = vadd.f32 2.0, %v3471_v0 }
 0x498   : > { %5161 = vrsqrt.f32 %v3479_v52 }
 0x49a   : > { %v5156_v5 = vpop.eup %5155 }
 0x49b   : > { %v3517_v40 = vmul.f32 %v5156_v5, %v5152_v13 }
 0x49d   : > { %v3519_v14 = vsel %vm3518_vm10, %v5152_v13, %v3517_v40  ;;  %v5158_v15 = vpop.eup %5157 }
 0x49e   : > { %v3522_v34 = vsel %vm3520_vm11, %v3521_v6, %v3519_v14  ;;  %v3524_v8 = vmul.f32 %v5158_v15, %v5154_v32 }
 0x49f   : > { %v5160_v55 = vpop.eup %5159  ;;  %v3548_v7 = vmul.f32 %v5152_v13, %v3522_v34 }
 0x4a0   : > { %5163 = vrsqrt.f32 %v5160_v55  ;;  %v3526_v59 = vsel %vm3525_vm12, %v5154_v32, %v3524_v8  ;;  %vm3532_vm14 = vcmp.eq.f32.partialorder %v5160_v55, inf  ;;  %v3535_v26 = vand.u32 2147483648, %v5160_v55 }
 0x4a1   : > { %v3556_v10 = vmul.f32 %v3548_v7, %v6148_v22  ;;  %v3529_v18 = vsel %vm3527_vm13, %v3528_v33, %v3526_v59  ;;  %vm3534_vm15 = vcmp.eq.f32.partialorder %v5160_v55, 0.0 }
 0x4a2   : > { %v5162_v11 = vpop.eup %5161  ;;  %v3549_v28 = vmul.f32 %v5154_v32, %v3529_v18 }
 0x4a3   : > { %3564 = vst [vmem:[%s6223_s28 + $0x20] sm:$0xff] %v3556_v10  ;;  %5165 = vrsqrt.f32 %v5162_v11  ;;  %vm3539_vm0 = vcmp.eq.f32.partialorder %v5162_v11, inf  ;;  %v3542_v1 = vand.u32 2147483648, %v5162_v11  ;;  %vm3541_vm1 = vcmp.eq.f32.partialorder %v5162_v11, 0.0 }
 0x4a4   : > { %v3557_v29 = vmul.f32 %v3549_v28, %v6159_v57 }
 0x4a6   : > { %3565 = vst [vmem:[%s6223_s28 + $0x28] sm:$0xff] %v3557_v29 }
 0x4aa   : > { %v5164_v25 = vpop.eup %5163 }
 0x4ab   : > { %v3531_v9 = vmul.f32 %v5164_v25, %v5160_v55 }
 0x4ad   : > { %v3533_v43 = vsel %vm3532_vm14, %v5160_v55, %v3531_v9  ;;  %v5166_v42 = vpop.eup %5165 }
 0x4ae   : > { %v3536_v22 = vsel %vm3534_vm15, %v3535_v26, %v3533_v43  ;;  %v3538_v16 = vmul.f32 %v5166_v42, %v5162_v11 }
 0x4af   : > { %v3550_v53 = vmul.f32 %v5160_v55, %v3536_v22 }
 0x4b0   : > { %v3540_v4 = vsel %vm3539_vm0, %v5162_v11, %v3538_v16 }
 0x4b1   : > { %v3558_v21 = vmul.f32 %v3550_v53, %v6178_v3  ;;  %v3543_v57 = vsel %vm3541_vm1, %v3542_v1, %v3540_v4 }
 0x4b2   : > { %v3551_v37 = vmul.f32 %v5162_v11, %v3543_v57 }
 0x4b3   : > { %3566 = vst [vmem:[%s6223_s28 + $0x30] sm:$0xff] %v3558_v21 }
 0x4b4   : > { %v3559_v17 = vmul.f32 %v3551_v37, %v6189_v19 }
 0x4b6   : > { %3567 = vst [vmem:[%s6223_s28 + $0x38] sm:$0xff] %v3559_v17 }
 0x4b7 PF: > { %s16_s15 = sadd.s32 1, %s5265_s15  }
 0x4b8   : > { %p13_p5 = scmp.ge.s32.totalorder %s16_s15, 4  }
 0x4ba   :  { %15 = sbr.rel (!%p13_p5) target bundleno = 2 (0x2), region = 92 }
 0x4c1   :  { %3589 = vsyncpa [#allocation3], 1 }
 0x4c2   :  { %3591 = vsyncpa [#allocation3 + $0x1], 1 }
 0x4c3   :  { %3592 = vsyncpa [#allocation5], 1 }

// kernel: matconvnet_forward.3
= control target key start
LH: loop header
LB: loop body
LE: loop exit
PB: predicated region body
PF: predicated region fallthrough
CT: control target
= control target key end

     0   :  { %v52_v28 = vlaneseq  ;;  %v7633_v36 = vmov 1983009808   ;;  %s9312_s0 = inlined_call_operand.vmem [shape: f32[2,8192], index: 0, kind: input, shape index: {}]   ;;  %s9313_s1 = inlined_call_operand.vmem [shape: bf16[8192,128], index: 1, kind: input, shape index: {}]   ;;  %s9314_s2 = inlined_call_operand.vmem [shape: f32[1,128], index: 2, kind: input, shape index: {}]   ;;  %s9315_s3 = inlined_call_operand.hbm [shape: f32[2,128], index: 3, kind: output, shape index: {}]  }
   0x1   :  { %v7077_v0 = vld [vmem:[%s9313_s1 + $0x40] sm:$0xff]   ;;  %v7081_v4 = vld [vmem:[%s9313_s1 + $0x48] sm:$0xff]   ;;  %v7085_v8 = vld [vmem:[%s9313_s1 + $0x50] sm:$0xff]   ;;  %v50_v37 = vunpack.c.l.s4 %v7633_v36 }
   0x2   :  { %v7078_v1 = vld [vmem:[%s9313_s1 + $0xc0] sm:$0xff]   ;;  %6371 = vmatprep.subr.bf16.mxu0 %v7077_v0  ;;  %v7082_v5 = vld [vmem:[%s9313_s1 + $0xc8] sm:$0xff]   ;;  %v7086_v9 = vld [vmem:[%s9313_s1 + $0xd0] sm:$0xff]   ;;  %v53_v33 = vshrl.u32 %v52_v28, 7 }
   0x3   :  { %v7079_v2 = vld [vmem:[%s9313_s1] sm:$0xff]   ;;  %6393 = vmatprep.subr.bf16.mxu1 %v7078_v1  ;;  %v7083_v6 = vld [vmem:[%s9313_s1 + $0x8] sm:$0xff]   ;;  %v7087_v10 = vld [vmem:[%s9313_s1 + $0x10] sm:$0xff]   ;;  %v51_v39 = vunpack.c.0.s8 %v50_v37 }
   0x4   :  { %v7080_v3 = vld [vmem:[%s9313_s1 + $0x80] sm:$0xff]   ;;  %6372 = vmatpush3.bf16.msra.mxu0 %v7079_v2  ;;  %v7084_v7 = vld [vmem:[%s9313_s1 + $0x88] sm:$0xff]   ;;  %v7088_v11 = vld [vmem:[%s9313_s1 + $0x90] sm:$0xff]  }
   0x5   :  { %6394 = vmatpush3.bf16.msra.mxu1 %v7080_v3  ;;  %6373 = vmatprep.subr.bf16.mxu0 %v7081_v4  ;;  %v7089_v12 = vld [vmem:[%s9313_s1 + $0x58] sm:$0xff]   ;;  %v7093_v16 = vld [vmem:[%s9313_s1 + $0x60] sm:$0xff]   ;;  %v7097_v20 = vld [vmem:[%s9313_s1 + $0x68] sm:$0xff]   ;;  %v7760_v41 = vsub.s32 %v51_v39, %v53_v33 }
   0x6   :  { %6395 = vmatprep.subr.bf16.mxu1 %v7082_v5  ;;  %v7090_v13 = vld [vmem:[%s9313_s1 + $0xd8] sm:$0xff]   ;;  %v7094_v17 = vld [vmem:[%s9313_s1 + $0xe0] sm:$0xff]   ;;  %v7098_v21 = vld [vmem:[%s9313_s1 + $0xe8] sm:$0xff]  }
   0x7   :  { %v7091_v14 = vld [vmem:[%s9313_s1 + $0x18] sm:$0xff]   ;;  %v7095_v18 = vld [vmem:[%s9313_s1 + $0x20] sm:$0xff]   ;;  %v7099_v22 = vld [vmem:[%s9313_s1 + $0x28] sm:$0xff]  }
   0x8   :  { %6374 = vmatpush3.bf16.msra.mxu0 %v7083_v6  ;;  %v7092_v15 = vld [vmem:[%s9313_s1 + $0x98] sm:$0xff]   ;;  %v7096_v19 = vld [vmem:[%s9313_s1 + $0xa0] sm:$0xff]   ;;  %v7100_v23 = vld [vmem:[%s9313_s1 + $0xa8] sm:$0xff]  }
   0x9   :  { %6396 = vmatpush3.bf16.msra.mxu1 %v7084_v7  ;;  %6375 = vmatprep.subr.bf16.mxu0 %v7085_v8  ;;  %v7101_v24 = vld [vmem:[%s9313_s1 + $0x70] sm:$0xff]   ;;  %v7105_v29 = vld [vmem:[%s9313_s1 + $0x78] sm:$0xff]   ;;  %v16_v34 = vld [vmem:[%s9312_s0] sm:$0xff] }
   0xa   :  { %6397 = vmatprep.subr.bf16.mxu1 %v7086_v9  ;;  %v7102_v25 = vld [vmem:[%s9313_s1 + $0xf0] sm:$0xff]   ;;  %v7106_v30 = vld [vmem:[%s9313_s1 + $0xf8] sm:$0xff]   ;;  %v7110_v35 = vld [vmem:[%s9313_s1 + $0x140] sm:$0xff]   ;;  %v48_v40 = vcombine.high %v16_v34, %v16_v34  ;;  %v55_v42 = vrot.slane %v16_v34, %v7760_v41 }
   0xb   :  { %v7103_v26 = vld [vmem:[%s9313_s1 + $0x30] sm:$0xff]   ;;  %v7107_v31 = vld [vmem:[%s9313_s1 + $0x38] sm:$0xff]   ;;  %v7111_v38 = vld [vmem:[%s9313_s1 + $0x1c0] sm:$0xff]  }
   0xc   :  { %6376 = vmatpush3.bf16.msra.mxu0 %v7087_v10  ;;  %v7104_v27 = vld [vmem:[%s9313_s1 + $0xb0] sm:$0xff]   ;;  %v7108_v32 = vld [vmem:[%s9313_s1 + $0xb8] sm:$0xff]   ;;  %v62_v43 = vrot.slane %v48_v40, %v7760_v41  ;;  %v63_v44 = vcombine.high %v55_v42, %v55_v42  ;;  %v7112_v46 = vld [vmem:[%s9313_s1 + $0x100] sm:$0xff]   ;;  %v384_v47 = vpack.c.bf16 %v55_v42, %v55_v42 }
   0xd   :  { %6398 = vmatpush3.bf16.msra.mxu1 %v7088_v11  ;;  %6377 = vmatprep.subr.bf16.mxu0 %v7089_v12  ;;  %v7113_v49 = vld [vmem:[%s9313_s1 + $0x180] sm:$0xff]   ;;  %v7114_v52 = vld [vmem:[%s9313_s1 + $0x148] sm:$0xff]   ;;  %v7118_v56 = vld [vmem:[%s9313_s1 + $0x150] sm:$0xff]  }
   0xe   :  { %6399 = vmatprep.subr.bf16.mxu1 %v7090_v13  ;;  %v64_v45 = vcombine.high %v62_v43, %v62_v43  ;;  %v386_v48 = vpack.c.bf16 %v62_v43, %v62_v43  ;;  %v385_v50 = vpack.c.bf16 %v63_v44, %v63_v44  ;;  %v7115_v53 = vld [vmem:[%s9313_s1 + $0x1c8] sm:$0xff]   ;;  %v7119_v57 = vld [vmem:[%s9313_s1 + $0x1d0] sm:$0xff]   ;;  %v7122_v60 = vld [vmem:[%s9313_s1 + $0x158] sm:$0xff]  }
   0xf   :  { %v7116_v54 = vld [vmem:[%s9313_s1 + $0x108] sm:$0xff]   ;;  %v7120_v58 = vld [vmem:[%s9313_s1 + $0x110] sm:$0xff]   ;;  %v7123_v61 = vld [vmem:[%s9313_s1 + $0x1d8] sm:$0xff]  }
  0x10   :  { %6378 = vmatpush3.bf16.msra.mxu0 %v7091_v14  ;;  %v387_v51 = vpack.c.bf16 %v64_v45, %v64_v45  ;;  %4583 = vmatprep.mubr.bf16.mxu0 %v385_v50  ;;  %v7117_v55 = vld [vmem:[%s9313_s1 + $0x188] sm:$0xff]   ;;  %v7121_v59 = vld [vmem:[%s9313_s1 + $0x190] sm:$0xff]   ;;  %v7124_v62 = vld [vmem:[%s9313_s1 + $0x118] sm:$0xff]  }
  0x11   :  { %6400 = vmatpush3.bf16.msra.mxu1 %v7092_v15  ;;  %6379 = vmatprep.subr.bf16.mxu0 %v7093_v16  ;;  %v7125_v63 = vld [vmem:[%s9313_s1 + $0x198] sm:$0xff]   ;;  %v7126_v0 = vld [vmem:[%s9313_s1 + $0x160] sm:$0xff]   ;;  %v7130_v4 = vld [vmem:[%s9313_s1 + $0x168] sm:$0xff]  }
  0x12   :  { %6401 = vmatprep.subr.bf16.mxu1 %v7094_v17  ;;  %4623 = vmatprep.mubr.bf16.mxu1 %v387_v51  ;;  %v7127_v1 = vld [vmem:[%s9313_s1 + $0x1e0] sm:$0xff]   ;;  %v7131_v5 = vld [vmem:[%s9313_s1 + $0x1e8] sm:$0xff]   ;;  %v7134_v8 = vld [vmem:[%s9313_s1 + $0x170] sm:$0xff]  }
  0x13   :  { %v7128_v2 = vld [vmem:[%s9313_s1 + $0x120] sm:$0xff]   ;;  %v7132_v6 = vld [vmem:[%s9313_s1 + $0x128] sm:$0xff]   ;;  %v7135_v9 = vld [vmem:[%s9313_s1 + $0x1f0] sm:$0xff]  }
  0x14   :  { %6380 = vmatpush3.bf16.msra.mxu0 %v7095_v18  ;;  %v7129_v3 = vld [vmem:[%s9313_s1 + $0x1a0] sm:$0xff]   ;;  %v7133_v7 = vld [vmem:[%s9313_s1 + $0x1a8] sm:$0xff]   ;;  %v7136_v11 = vld [vmem:[%s9313_s1 + $0x130] sm:$0xff]  }
  0x15   :  { %6402 = vmatpush3.bf16.msra.mxu1 %v7096_v19  ;;  %6381 = vmatprep.subr.bf16.mxu0 %v7097_v20  ;;  %v17_v10 = vld [vmem:[%s9312_s0 + $0x8] sm:$0xff]  ;;  %v7137_v14 = vld [vmem:[%s9313_s1 + $0x1b0] sm:$0xff]   ;;  %v7138_v15 = vld [vmem:[%s9313_s1 + $0x178] sm:$0xff]  }
  0x16   :  { %6403 = vmatprep.subr.bf16.mxu1 %v7098_v21  ;;  %v72_v12 = vrot.slane %v17_v10, %v7760_v41  ;;  %v65_v13 = vcombine.high %v17_v10, %v17_v10  ;;  %v7139_v18 = vld [vmem:[%s9313_s1 + $0x1f8] sm:$0xff]   ;;  %v7150_v33 = vld [vmem:[%s9313_s1 + $0x288] sm:$0xff]   ;;  %v7151_v34 = vld [vmem:[%s9313_s1 + $0x250] sm:$0xff]  }
  0x17   :  { %v7140_v19 = vld [vmem:[%s9313_s1 + $0x138] sm:$0xff]   ;;  %v7153_v36 = vld [vmem:[%s9313_s1 + $0x210] sm:$0xff]   ;;  %v7159_v43 = vld [vmem:[%s9313_s1 + $0x260] sm:$0xff]  }
  0x18   :  { %6382 = vmatpush3.bf16.msra.mxu0 %v7099_v22  ;;  %v80_v16 = vcombine.high %v72_v12, %v72_v12  ;;  %v79_v17 = vrot.slane %v65_v13, %v7760_v41  ;;  %v7141_v22 = vld [vmem:[%s9313_s1 + $0x1b8] sm:$0xff]   ;;  %v7154_v37 = vld [vmem:[%s9313_s1 + $0x290] sm:$0xff]   ;;  %v7160_v44 = vld [vmem:[%s9313_s1 + $0x2e0] sm:$0xff]  }
  0x19   :  { %6404 = vmatpush3.bf16.msra.mxu1 %v7100_v23  ;;  %6383 = vmatprep.subr.bf16.mxu0 %v7101_v24  ;;  %v7143_v24 = vld [vmem:[%s9313_s1 + $0x240] sm:$0xff]   ;;  %v7156_v39 = vld [vmem:[%s9313_s1 + $0x2d8] sm:$0xff]   ;;  %v7166_v50 = vld [vmem:[%s9313_s1 + $0x2a8] sm:$0xff]  }
  0x1a   :  { %6405 = vmatprep.subr.bf16.mxu1 %v7102_v25  ;;  %v389_v20 = vpack.c.bf16 %v80_v16, %v80_v16  ;;  %v81_v21 = vcombine.high %v79_v17, %v79_v17  ;;  %v7144_v25 = vld [vmem:[%s9313_s1 + $0x2c0] sm:$0xff]   ;;  %v390_v28 = vpack.c.bf16 %v79_v17, %v79_v17  ;;  %v7157_v40 = vld [vmem:[%s9313_s1 + $0x218] sm:$0xff]   ;;  %v7167_v51 = vld [vmem:[%s9313_s1 + $0x270] sm:$0xff]  }
  0x1b   :  { %v7158_v42 = vld [vmem:[%s9313_s1 + $0x298] sm:$0xff]   ;;  %v7161_v45 = vld [vmem:[%s9313_s1 + $0x220] sm:$0xff]   ;;  %v7181_v10 = vld [vmem:[%s9313_s1 + $0x3c8] sm:$0xff]  }
  0x1c   :  { %6384 = vmatpush3.bf16.msra.mxu0 %v7103_v26  ;;  %v391_v23 = vpack.c.bf16 %v81_v21, %v81_v21  ;;  %v7145_v26 = vld [vmem:[%s9313_s1 + $0x200] sm:$0xff]   ;;  %v7184_v13 = vld [vmem:[%s9313_s1 + $0x350] sm:$0xff]   ;;  %v7188_v17 = vld [vmem:[%s9313_s1 + $0x358] sm:$0xff]  }
  0x1d   :  { %6406 = vmatpush3.bf16.msra.mxu1 %v7104_v27  ;;  %6385 = vmatprep.subr.bf16.mxu0 %v7105_v29  ;;  %v388_v27 = vpack.c.bf16 %v72_v12, %v72_v12  ;;  %v7146_v29 = vld [vmem:[%s9313_s1 + $0x280] sm:$0xff]   ;;  %v7183_v12 = vld [vmem:[%s9313_s1 + $0x388] sm:$0xff]   ;;  %v7187_v16 = vld [vmem:[%s9313_s1 + $0x390] sm:$0xff]  }
  0x1e   :  { %6407 = vmatprep.subr.bf16.mxu1 %v7106_v30  ;;  %v7147_v30 = vld [vmem:[%s9313_s1 + $0x248] sm:$0xff]   ;;  %v7192_v21 = vld [vmem:[%s9313_s1 + $0x360] sm:$0xff]  }
  0x20   :  { %6386 = vmatpush3.bf16.msra.mxu0 %v7107_v31  ;;  %v7148_v31 = vld [vmem:[%s9313_s1 + $0x2c8] sm:$0xff]  }
  0x21   :  { %6408 = vmatpush3.bf16.msra.mxu1 %v7108_v32  ;;  %6415 = vmatprep.subr.bf16.mxu0 %v7110_v35  ;;  %v7149_v32 = vld [vmem:[%s9313_s1 + $0x208] sm:$0xff]   ;;  %v7152_v35 = vld [vmem:[%s9313_s1 + $0x2d0] sm:$0xff]  }
  0x22   :  { %6437 = vmatprep.subr.bf16.mxu1 %v7111_v38  ;;  %v7155_v38 = vld [vmem:[%s9313_s1 + $0x258] sm:$0xff]  }
  0x23   :  { %4584 = vmatmul.mubr.bf16.vlgmr.msra.gmra.mrb[0].mxu0 %v384_v47  ;;  %v7163_v47 = vld [vmem:[%s9313_s1 + $0x268] sm:$0xff]  }
  0x24   :  { %4624 = vmatmul.mubr.bf16.vlgmr.msra.gmra.mrb[0].mxu1 %v386_v48  ;;  %6416 = vmatpush3.bf16.msra.mxu0 %v7112_v46  ;;  %v7162_v46 = vld [vmem:[%s9313_s1 + $0x2a0] sm:$0xff]   ;;  %v7164_v48 = vld [vmem:[%s9313_s1 + $0x2e8] sm:$0xff]  }
  0x25   :  { %6438 = vmatpush3.bf16.msra.mxu1 %v7113_v49  ;;  %6417 = vmatprep.subr.bf16.mxu0 %v7114_v52  ;;  %v7165_v49 = vld [vmem:[%s9313_s1 + $0x228] sm:$0xff]   ;;  %v7168_v52 = vld [vmem:[%s9313_s1 + $0x2f0] sm:$0xff]  }
  0x26   :  { %6439 = vmatprep.subr.bf16.mxu1 %v7115_v53  ;;  %4663 = vmatprep.mubr.bf16.mxu0 %v389_v20  ;;  %v18_v53 = vld [vmem:[%s9312_s0 + $0x10] sm:$0xff]  ;;  %v7191_v20 = vld [vmem:[%s9313_s1 + $0x398] sm:$0xff]  }
  0x27   :  { %4703 = vmatprep.mubr.bf16.mxu1 %v391_v23  ;;  %v7194_v23 = vld [vmem:[%s9313_s1 + $0x320] sm:$0xff]  }
  0x28   :  { %6418 = vmatpush3.bf16.msra.mxu0 %v7116_v54  ;;  %v7169_v54 = vld [vmem:[%s9313_s1 + $0x230] sm:$0xff]  }
  0x29   :  { %6440 = vmatpush3.bf16.msra.mxu1 %v7117_v55  ;;  %6419 = vmatprep.subr.bf16.mxu0 %v7118_v56  ;;  %v89_v55 = vrot.slane %v18_v53, %v7760_v41  ;;  %v82_v56 = vcombine.high %v18_v53, %v18_v53  ;;  %v7214_v53 = vld [vmem:[%s9313_s1 + $0x4c8] sm:$0xff]  }
  0x2a   :  { %6441 = vmatprep.subr.bf16.mxu1 %v7119_v57  ;;  %v7170_v57 = vld [vmem:[%s9313_s1 + $0x2b0] sm:$0xff]  }
  0x2c   :  { %6420 = vmatpush3.bf16.msra.mxu0 %v7120_v58  ;;  %v7171_v58 = vld [vmem:[%s9313_s1 + $0x278] sm:$0xff]  }
  0x2d   :  { %6442 = vmatpush3.bf16.msra.mxu1 %v7121_v59  ;;  %6421 = vmatprep.subr.bf16.mxu0 %v7122_v60  ;;  %v97_v59 = vcombine.high %v89_v55, %v89_v55  ;;  %v96_v60 = vrot.slane %v82_v56, %v7760_v41  ;;  %v7217_v56 = vld [vmem:[%s9313_s1 + $0x450] sm:$0xff]  }
  0x2e   :  { %6443 = vmatprep.subr.bf16.mxu1 %v7123_v61  ;;  %v7172_v61 = vld [vmem:[%s9313_s1 + $0x2f8] sm:$0xff]  }
  0x30   :  { %6422 = vmatpush3.bf16.msra.mxu0 %v7124_v62  ;;  %v7173_v62 = vld [vmem:[%s9313_s1 + $0x238] sm:$0xff]  }
  0x31   :  { %6444 = vmatpush3.bf16.msra.mxu1 %v7125_v63  ;;  %6423 = vmatprep.subr.bf16.mxu0 %v7126_v0  ;;  %v393_v63 = vpack.c.bf16 %v97_v59, %v97_v59  ;;  %v98_v0 = vcombine.high %v96_v60, %v96_v60  ;;  %v7220_v59 = vld [vmem:[%s9313_s1 + $0x490] sm:$0xff]  }
  0x32   :  { %6445 = vmatprep.subr.bf16.mxu1 %v7127_v1  ;;  %v7174_v1 = vld [vmem:[%s9313_s1 + $0x2b8] sm:$0xff]  }
  0x34   :  { %6424 = vmatpush3.bf16.msra.mxu0 %v7128_v2  ;;  %v395_v2 = vpack.c.bf16 %v98_v0, %v98_v0  ;;  %v7225_v0 = vld [vmem:[%s9313_s1 + $0x460] sm:$0xff]  }
  0x35   :  { %6446 = vmatpush3.bf16.msra.mxu1 %v7129_v3  ;;  %6425 = vmatprep.subr.bf16.mxu0 %v7130_v4  ;;  %v7176_v3 = vld [vmem:[%s9313_s1 + $0x340] sm:$0xff]  }
  0x36   :  { %6447 = vmatprep.subr.bf16.mxu1 %v7131_v5  ;;  %v7177_v4 = vld [vmem:[%s9313_s1 + $0x3c0] sm:$0xff]  }
  0x37   :  { %v7178_v5 = vld [vmem:[%s9313_s1 + $0x300] sm:$0xff]  }
  0x38   :  { %6426 = vmatpush3.bf16.msra.mxu0 %v7132_v6  ;;  %v392_v6 = vpack.c.bf16 %v89_v55, %v89_v55  ;;  %v7216_v55 = vld [vmem:[%s9313_s1 + $0x488] sm:$0xff]  }
  0x39   :  { %6448 = vmatpush3.bf16.msra.mxu1 %v7133_v7  ;;  %6427 = vmatprep.subr.bf16.mxu0 %v7134_v8  ;;  %v394_v7 = vpack.c.bf16 %v96_v60, %v96_v60  ;;  %v7179_v8 = vld [vmem:[%s9313_s1 + $0x380] sm:$0xff]   ;;  %v7221_v60 = vld [vmem:[%s9313_s1 + $0x458] sm:$0xff]  }
  0x3a   :  { %6449 = vmatprep.subr.bf16.mxu1 %v7135_v9  ;;  %v7180_v9 = vld [vmem:[%s9313_s1 + $0x348] sm:$0xff]  }
  0x3c   :  { %6428 = vmatpush3.bf16.msra.mxu0 %v7136_v11  ;;  %v7182_v11 = vld [vmem:[%s9313_s1 + $0x308] sm:$0xff]  }
  0x3d   :  { %6450 = vmatpush3.bf16.msra.mxu1 %v7137_v14  ;;  %6429 = vmatprep.subr.bf16.mxu0 %v7138_v15  ;;  %v7185_v14 = vld [vmem:[%s9313_s1 + $0x3d0] sm:$0xff]  }
  0x3e   :  { %6451 = vmatprep.subr.bf16.mxu1 %v7139_v18  ;;  %v7186_v15 = vld [vmem:[%s9313_s1 + $0x310] sm:$0xff]   ;;  %v7189_v18 = vld [vmem:[%s9313_s1 + $0x3d8] sm:$0xff]  }
  0x40   :  { %6430 = vmatpush3.bf16.msra.mxu0 %v7140_v19  ;;  %v7190_v19 = vld [vmem:[%s9313_s1 + $0x318] sm:$0xff]  }
  0x41   :  { %6452 = vmatpush3.bf16.msra.mxu1 %v7141_v22  ;;  %6459 = vmatprep.subr.bf16.mxu0 %v7143_v24  ;;  %v7193_v22 = vld [vmem:[%s9313_s1 + $0x3e0] sm:$0xff]  }
  0x42   :  { %6481 = vmatprep.subr.bf16.mxu1 %v7144_v25  ;;  %v7195_v24 = vld [vmem:[%s9313_s1 + $0x3a0] sm:$0xff]   ;;  %v7196_v25 = vld [vmem:[%s9313_s1 + $0x368] sm:$0xff]  }
  0x43   :  { %4664 = vmatmul.mubr.bf16.vlgmr.msra.gmra.mrb[4].mxu0 %v388_v27  ;;  %v7198_v27 = vld [vmem:[%s9313_s1 + $0x328] sm:$0xff]  }
  0x44   :  { %4704 = vmatmul.mubr.bf16.vlgmr.msra.gmra.mrb[4].mxu1 %v390_v28  ;;  %6460 = vmatpush3.bf16.msra.mxu0 %v7145_v26  ;;  %v7197_v26 = vld [vmem:[%s9313_s1 + $0x3e8] sm:$0xff]  }
  0x45   :  { %6482 = vmatpush3.bf16.msra.mxu1 %v7146_v29  ;;  %6461 = vmatprep.subr.bf16.mxu0 %v7147_v30  ;;  %v7199_v28 = vld [vmem:[%s9313_s1 + $0x3a8] sm:$0xff]   ;;  %v7200_v29 = vld [vmem:[%s9313_s1 + $0x370] sm:$0xff]  }
  0x46   :  { %6483 = vmatprep.subr.bf16.mxu1 %v7148_v31  ;;  %4743 = vmatprep.mubr.bf16.mxu0 %v393_v63  ;;  %v7201_v30 = vld [vmem:[%s9313_s1 + $0x3f0] sm:$0xff]   ;;  %v7224_v63 = vld [vmem:[%s9313_s1 + $0x498] sm:$0xff]  }
  0x47   :  { %4783 = vmatprep.mubr.bf16.mxu1 %v395_v2  ;;  %v7202_v31 = vld [vmem:[%s9313_s1 + $0x330] sm:$0xff]   ;;  %v7227_v2 = vld [vmem:[%s9313_s1 + $0x420] sm:$0xff]  }
  0x48   :  { %6462 = vmatpush3.bf16.msra.mxu0 %v7149_v32  ;;  %v19_v32 = vld [vmem:[%s9312_s0 + $0x18] sm:$0xff] }
  0x49   :  { %6484 = vmatpush3.bf16.msra.mxu1 %v7150_v33  ;;  %6463 = vmatprep.subr.bf16.mxu0 %v7151_v34  ;;  %v7203_v33 = vld [vmem:[%s9313_s1 + $0x3b0] sm:$0xff]   ;;  %v106_v34 = vrot.slane %v19_v32, %v7760_v41 }
  0x4a   :  { %6485 = vmatprep.subr.bf16.mxu1 %v7152_v35  ;;  %v99_v35 = vcombine.high %v19_v32, %v19_v32  ;;  %v7248_v32 = vld [vmem:[%s9313_s1 + $0x508] sm:$0xff]  }
  0x4c   :  { %6464 = vmatpush3.bf16.msra.mxu0 %v7153_v36  ;;  %v7204_v36 = vld [vmem:[%s9313_s1 + $0x378] sm:$0xff]  }
  0x4d   :  { %6486 = vmatpush3.bf16.msra.mxu1 %v7154_v37  ;;  %6465 = vmatprep.subr.bf16.mxu0 %v7155_v38  ;;  %v7205_v37 = vld [vmem:[%s9313_s1 + $0x3f8] sm:$0xff]   ;;  %v114_v38 = vcombine.high %v106_v34, %v106_v34 }
  0x4e   :  { %6487 = vmatprep.subr.bf16.mxu1 %v7156_v39  ;;  %v113_v39 = vrot.slane %v99_v35, %v7760_v41  ;;  %v7251_v35 = vld [vmem:[%s9313_s1 + $0x5d0] sm:$0xff]  }
  0x50   :  { %6466 = vmatpush3.bf16.msra.mxu0 %v7157_v40  ;;  %v7206_v40 = vld [vmem:[%s9313_s1 + $0x338] sm:$0xff]  }
  0x51   :  { %6488 = vmatpush3.bf16.msra.mxu1 %v7158_v42  ;;  %6467 = vmatprep.subr.bf16.mxu0 %v7159_v43  ;;  %v7207_v42 = vld [vmem:[%s9313_s1 + $0x3b8] sm:$0xff]   ;;  %v397_v43 = vpack.c.bf16 %v114_v38, %v114_v38 }
  0x52   :  { %6489 = vmatprep.subr.bf16.mxu1 %v7160_v44  ;;  %v115_v44 = vcombine.high %v113_v39, %v113_v39  ;;  %v7254_v38 = vld [vmem:[%s9313_s1 + $0x558] sm:$0xff]  }
  0x54   :  { %6468 = vmatpush3.bf16.msra.mxu0 %v7161_v45  ;;  %v7209_v45 = vld [vmem:[%s9313_s1 + $0x440] sm:$0xff]  }
  0x55   :  { %6490 = vmatpush3.bf16.msra.mxu1 %v7162_v46  ;;  %6469 = vmatprep.subr.bf16.mxu0 %v7163_v47  ;;  %v399_v46 = vpack.c.bf16 %v115_v44, %v115_v44  ;;  %v7210_v47 = vld [vmem:[%s9313_s1 + $0x4c0] sm:$0xff]  }
  0x56   :  { %6491 = vmatprep.subr.bf16.mxu1 %v7164_v48  ;;  %v7211_v48 = vld [vmem:[%s9313_s1 + $0x400] sm:$0xff]  }
  0x57   :  { %v7259_v44 = vld [vmem:[%s9313_s1 + $0x5e0] sm:$0xff]  }
  0x58   :  { %6470 = vmatpush3.bf16.msra.mxu0 %v7165_v49  ;;  %v396_v49 = vpack.c.bf16 %v106_v34, %v106_v34  ;;  %v7250_v34 = vld [vmem:[%s9313_s1 + $0x550] sm:$0xff]  }
  0x59   :  { %6492 = vmatpush3.bf16.msra.mxu1 %v7166_v50  ;;  %6471 = vmatprep.subr.bf16.mxu0 %v7167_v51  ;;  %v398_v50 = vpack.c.bf16 %v113_v39, %v113_v39  ;;  %v7212_v51 = vld [vmem:[%s9313_s1 + $0x480] sm:$0xff]   ;;  %v7255_v39 = vld [vmem:[%s9313_s1 + $0x5d8] sm:$0xff]  }
  0x5a   :  { %6493 = vmatprep.subr.bf16.mxu1 %v7168_v52  ;;  %v7213_v52 = vld [vmem:[%s9313_s1 + $0x448] sm:$0xff]  }
  0x5c   :  { %6472 = vmatpush3.bf16.msra.mxu0 %v7169_v54  ;;  %v7215_v54 = vld [vmem:[%s9313_s1 + $0x408] sm:$0xff]  }
  0x5d   :  { %6494 = vmatpush3.bf16.msra.mxu1 %v7170_v57  ;;  %6473 = vmatprep.subr.bf16.mxu0 %v7171_v58  ;;  %v7218_v57 = vld [vmem:[%s9313_s1 + $0x4d0] sm:$0xff]  }
  0x5e   :  { %6495 = vmatprep.subr.bf16.mxu1 %v7172_v61  ;;  %v7219_v58 = vld [vmem:[%s9313_s1 + $0x410] sm:$0xff]   ;;  %v7222_v61 = vld [vmem:[%s9313_s1 + $0x4d8] sm:$0xff]  }
  0x60   :  { %6474 = vmatpush3.bf16.msra.mxu0 %v7173_v62  ;;  %v7223_v62 = vld [vmem:[%s9313_s1 + $0x418] sm:$0xff]  }
  0x61   :  { %6496 = vmatpush3.bf16.msra.mxu1 %v7174_v1  ;;  %6503 = vmatprep.subr.bf16.mxu0 %v7176_v3  ;;  %v7226_v1 = vld [vmem:[%s9313_s1 + $0x4e0] sm:$0xff]  }
  0x62   :  { %6525 = vmatprep.subr.bf16.mxu1 %v7177_v4  ;;  %v7228_v3 = vld [vmem:[%s9313_s1 + $0x4a0] sm:$0xff]   ;;  %v7229_v4 = vld [vmem:[%s9313_s1 + $0x468] sm:$0xff]  }
  0x63   :  { %4744 = vmatmul.mubr.bf16.vlgmr.msra.gmra.mrb[8].mxu0 %v392_v6  ;;  %v7231_v6 = vld [vmem:[%s9313_s1 + $0x428] sm:$0xff]  }
  0x64   :  { %4784 = vmatmul.mubr.bf16.vlgmr.msra.gmra.mrb[8].mxu1 %v394_v7  ;;  %6504 = vmatpush3.bf16.msra.mxu0 %v7178_v5  ;;  %v7230_v5 = vld [vmem:[%s9313_s1 + $0x4e8] sm:$0xff]  }
  0x65   :  { %6526 = vmatpush3.bf16.msra.mxu1 %v7179_v8  ;;  %6505 = vmatprep.subr.bf16.mxu0 %v7180_v9  ;;  %v7232_v7 = vld [vmem:[%s9313_s1 + $0x4a8] sm:$0xff]   ;;  %v7233_v8 = vld [vmem:[%s9313_s1 + $0x470] sm:$0xff]  }
  0x66   :  { %6527 = vmatprep.subr.bf16.mxu1 %v7181_v10  ;;  %4823 = vmatprep.mubr.bf16.mxu0 %v397_v43  ;;  %v7234_v9 = vld [vmem:[%s9313_s1 + $0x4f0] sm:$0xff]   ;;  %v7258_v43 = vld [vmem:[%s9313_s1 + $0x560] sm:$0xff]  }
  0x67   :  { %4863 = vmatprep.mubr.bf16.mxu1 %v399_v46  ;;  %v7235_v10 = vld [vmem:[%s9313_s1 + $0x430] sm:$0xff]   ;;  %v7261_v46 = vld [vmem:[%s9313_s1 + $0x5a0] sm:$0xff]  }
  0x68   :  { %6506 = vmatpush3.bf16.msra.mxu0 %v7182_v11  ;;  %v20_v11 = vld [vmem:[%s9312_s0 + $0x20] sm:$0xff] }
  0x69   :  { %6528 = vmatpush3.bf16.msra.mxu1 %v7183_v12  ;;  %6507 = vmatprep.subr.bf16.mxu0 %v7184_v13  ;;  %v7236_v12 = vld [vmem:[%s9313_s1 + $0x4b0] sm:$0xff]   ;;  %v123_v13 = vrot.slane %v20_v11, %v7760_v41 }
  0x6a   :  { %6529 = vmatprep.subr.bf16.mxu1 %v7185_v14  ;;  %v116_v14 = vcombine.high %v20_v11, %v20_v11  ;;  %v7281_v11 = vld [vmem:[%s9313_s1 + $0x608] sm:$0xff]  }
  0x6c   :  { %6508 = vmatpush3.bf16.msra.mxu0 %v7186_v15  ;;  %v7237_v15 = vld [vmem:[%s9313_s1 + $0x478] sm:$0xff]  }
  0x6d   :  { %6530 = vmatpush3.bf16.msra.mxu1 %v7187_v16  ;;  %6509 = vmatprep.subr.bf16.mxu0 %v7188_v17  ;;  %v7238_v16 = vld [vmem:[%s9313_s1 + $0x4f8] sm:$0xff]   ;;  %v131_v17 = vcombine.high %v123_v13, %v123_v13 }
  0x6e   :  { %6531 = vmatprep.subr.bf16.mxu1 %v7189_v18  ;;  %v130_v18 = vrot.slane %v116_v14, %v7760_v41  ;;  %v7284_v14 = vld [vmem:[%s9313_s1 + $0x6d0] sm:$0xff]  }
  0x70   :  { %6510 = vmatpush3.bf16.msra.mxu0 %v7190_v19  ;;  %v7239_v19 = vld [vmem:[%s9313_s1 + $0x438] sm:$0xff]  }
  0x71   :  { %6532 = vmatpush3.bf16.msra.mxu1 %v7191_v20  ;;  %6511 = vmatprep.subr.bf16.mxu0 %v7192_v21  ;;  %v7240_v20 = vld [vmem:[%s9313_s1 + $0x4b8] sm:$0xff]   ;;  %v401_v21 = vpack.c.bf16 %v131_v17, %v131_v17 }
  0x72   :  { %6533 = vmatprep.subr.bf16.mxu1 %v7193_v22  ;;  %v132_v22 = vcombine.high %v130_v18, %v130_v18  ;;  %v7287_v17 = vld [vmem:[%s9313_s1 + $0x658] sm:$0xff]  }
  0x74   :  { %6512 = vmatpush3.bf16.msra.mxu0 %v7194_v23  ;;  %v7242_v23 = vld [vmem:[%s9313_s1 + $0x540] sm:$0xff]  }
  0x75   :  { %6534 = vmatpush3.bf16.msra.mxu1 %v7195_v24  ;;  %6513 = vmatprep.subr.bf16.mxu0 %v7196_v25  ;;  %v403_v24 = vpack.c.bf16 %v132_v22, %v132_v22  ;;  %v7243_v25 = vld [vmem:[%s9313_s1 + $0x5c0] sm:$0xff]  }
  0x76   :  { %6535 = vmatprep.subr.bf16.mxu1 %v7197_v26  ;;  %v7244_v26 = vld [vmem:[%s9313_s1 + $0x500] sm:$0xff]  }
  0x77   :  { %v7292_v22 = vld [vmem:[%s9313_s1 + $0x6e0] sm:$0xff]  }
  0x78   :  { %6514 = vmatpush3.bf16.msra.mxu0 %v7198_v27  ;;  %v400_v27 = vpack.c.bf16 %v123_v13, %v123_v13  ;;  %v7283_v13 = vld [vmem:[%s9313_s1 + $0x650] sm:$0xff]  }
  0x79   :  { %6536 = vmatpush3.bf16.msra.mxu1 %v7199_v28  ;;  %6515 = vmatprep.subr.bf16.mxu0 %v7200_v29  ;;  %v402_v28 = vpack.c.bf16 %v130_v18, %v130_v18  ;;  %v7245_v29 = vld [vmem:[%s9313_s1 + $0x580] sm:$0xff]   ;;  %v7288_v18 = vld [vmem:[%s9313_s1 + $0x6d8] sm:$0xff]  }
  0x7a   :  { %6537 = vmatprep.subr.bf16.mxu1 %v7201_v30  ;;  %v7246_v30 = vld [vmem:[%s9313_s1 + $0x548] sm:$0xff]  }
  0x7c   :  { %6516 = vmatpush3.bf16.msra.mxu0 %v7202_v31  ;;  %v7247_v31 = vld [vmem:[%s9313_s1 + $0x5c8] sm:$0xff]  }
  0x7d   :  { %6538 = vmatpush3.bf16.msra.mxu1 %v7203_v33  ;;  %6517 = vmatprep.subr.bf16.mxu0 %v7204_v36  ;;  %v7249_v33 = vld [vmem:[%s9313_s1 + $0x588] sm:$0xff]   ;;  %v7252_v36 = vld [vmem:[%s9313_s1 + $0x510] sm:$0xff]  }
  0x7e   :  { %6539 = vmatprep.subr.bf16.mxu1 %v7205_v37  ;;  %v7253_v37 = vld [vmem:[%s9313_s1 + $0x590] sm:$0xff]  }
  0x80   :  { %6518 = vmatpush3.bf16.msra.mxu0 %v7206_v40  ;;  %v7256_v40 = vld [vmem:[%s9313_s1 + $0x518] sm:$0xff]  }
  0x81   :  { %6540 = vmatpush3.bf16.msra.mxu1 %v7207_v42  ;;  %6547 = vmatprep.subr.bf16.mxu0 %v7209_v45  ;;  %v7257_v42 = vld [vmem:[%s9313_s1 + $0x598] sm:$0xff]   ;;  %v7260_v45 = vld [vmem:[%s9313_s1 + $0x520] sm:$0xff]  }
  0x82   :  { %6569 = vmatprep.subr.bf16.mxu1 %v7210_v47  ;;  %v7262_v47 = vld [vmem:[%s9313_s1 + $0x568] sm:$0xff]  }
  0x83   :  { %4824 = vmatmul.mubr.bf16.vlgmr.msra.gmra.mrb[12].mxu0 %v396_v49  ;;  %v7264_v49 = vld [vmem:[%s9313_s1 + $0x528] sm:$0xff]  }
  0x84   :  { %4864 = vmatmul.mubr.bf16.vlgmr.msra.gmra.mrb[12].mxu1 %v398_v50  ;;  %6548 = vmatpush3.bf16.msra.mxu0 %v7211_v48  ;;  %v7263_v48 = vld [vmem:[%s9313_s1 + $0x5e8] sm:$0xff]  }
  0x85   :  { %6570 = vmatpush3.bf16.msra.mxu1 %v7212_v51  ;;  %6549 = vmatprep.subr.bf16.mxu0 %v7213_v52  ;;  %v7265_v50 = vld [vmem:[%s9313_s1 + $0x5a8] sm:$0xff]   ;;  %v7266_v51 = vld [vmem:[%s9313_s1 + $0x570] sm:$0xff]  }
  0x86   :  { %6571 = vmatprep.subr.bf16.mxu1 %v7214_v53  ;;  %4903 = vmatprep.mubr.bf16.mxu0 %v401_v21  ;;  %v7267_v52 = vld [vmem:[%s9313_s1 + $0x5f0] sm:$0xff]   ;;  %v7291_v21 = vld [vmem:[%s9313_s1 + $0x660] sm:$0xff]  }
  0x87   :  { %4943 = vmatprep.mubr.bf16.mxu1 %v403_v24  ;;  %v7268_v53 = vld [vmem:[%s9313_s1 + $0x530] sm:$0xff]   ;;  %v7294_v24 = vld [vmem:[%s9313_s1 + $0x6a0] sm:$0xff]  }
  0x88   :  { %6550 = vmatpush3.bf16.msra.mxu0 %v7215_v54  ;;  %v21_v54 = vld [vmem:[%s9312_s0 + $0x28] sm:$0xff] }
  0x89   :  { %6572 = vmatpush3.bf16.msra.mxu1 %v7216_v55  ;;  %6551 = vmatprep.subr.bf16.mxu0 %v7217_v56  ;;  %v7269_v55 = vld [vmem:[%s9313_s1 + $0x5b0] sm:$0xff]   ;;  %v140_v56 = vrot.slane %v21_v54, %v7760_v41 }
  0x8a   :  { %6573 = vmatprep.subr.bf16.mxu1 %v7218_v57  ;;  %v133_v57 = vcombine.high %v21_v54, %v21_v54  ;;  %v7314_v54 = vld [vmem:[%s9313_s1 + $0x708] sm:$0xff]  }
  0x8c   :  { %6552 = vmatpush3.bf16.msra.mxu0 %v7219_v58  ;;  %v7270_v58 = vld [vmem:[%s9313_s1 + $0x578] sm:$0xff]  }
  0x8d   :  { %6574 = vmatpush3.bf16.msra.mxu1 %v7220_v59  ;;  %6553 = vmatprep.subr.bf16.mxu0 %v7221_v60  ;;  %v7271_v59 = vld [vmem:[%s9313_s1 + $0x5f8] sm:$0xff]   ;;  %v148_v60 = vcombine.high %v140_v56, %v140_v56 }
  0x8e   :  { %6575 = vmatprep.subr.bf16.mxu1 %v7222_v61  ;;  %v147_v61 = vrot.slane %v133_v57, %v7760_v41  ;;  %v7317_v57 = vld [vmem:[%s9313_s1 + $0x7d0] sm:$0xff]  }
  0x90   :  { %6554 = vmatpush3.bf16.msra.mxu0 %v7223_v62  ;;  %v7272_v62 = vld [vmem:[%s9313_s1 + $0x538] sm:$0xff]  }
  0x91   :  { %6576 = vmatpush3.bf16.msra.mxu1 %v7224_v63  ;;  %6555 = vmatprep.subr.bf16.mxu0 %v7225_v0  ;;  %v7273_v63 = vld [vmem:[%s9313_s1 + $0x5b8] sm:$0xff]   ;;  %v405_v0 = vpack.c.bf16 %v148_v60, %v148_v60 }
  0x92   :  { %6577 = vmatprep.subr.bf16.mxu1 %v7226_v1  ;;  %v149_v1 = vcombine.high %v147_v61, %v147_v61  ;;  %v7320_v60 = vld [vmem:[%s9313_s1 + $0x758] sm:$0xff]  }
  0x94   :  { %6556 = vmatpush3.bf16.msra.mxu0 %v7227_v2  ;;  %v7275_v2 = vld [vmem:[%s9313_s1 + $0x640] sm:$0xff]  }
  0x95   :  { %6578 = vmatpush3.bf16.msra.mxu1 %v7228_v3  ;;  %6557 = vmatprep.subr.bf16.mxu0 %v7229_v4  ;;  %v407_v3 = vpack.c.bf16 %v149_v1, %v149_v1  ;;  %v7276_v4 = vld [vmem:[%s9313_s1 + $0x6c0] sm:$0xff]  }
  0x96   :  { %6579 = vmatprep.subr.bf16.mxu1 %v7230_v5  ;;  %v7277_v5 = vld [vmem:[%s9313_s1 + $0x600] sm:$0xff]  }
  0x97   :  { %v7325_v1 = vld [vmem:[%s9313_s1 + $0x7e0] sm:$0xff]  }
  0x98   :  { %6558 = vmatpush3.bf16.msra.mxu0 %v7231_v6  ;;  %v404_v6 = vpack.c.bf16 %v140_v56, %v140_v56  ;;  %v7316_v56 = vld [vmem:[%s9313_s1 + $0x750] sm:$0xff]  }
  0x99   :  { %6580 = vmatpush3.bf16.msra.mxu1 %v7232_v7  ;;  %6559 = vmatprep.subr.bf16.mxu0 %v7233_v8  ;;  %v406_v7 = vpack.c.bf16 %v147_v61, %v147_v61  ;;  %v7278_v8 = vld [vmem:[%s9313_s1 + $0x680] sm:$0xff]   ;;  %v7321_v61 = vld [vmem:[%s9313_s1 + $0x7d8] sm:$0xff]  }
  0x9a   :  { %6581 = vmatprep.subr.bf16.mxu1 %v7234_v9  ;;  %v7279_v9 = vld [vmem:[%s9313_s1 + $0x648] sm:$0xff]  }
  0x9c   :  { %6560 = vmatpush3.bf16.msra.mxu0 %v7235_v10  ;;  %v7280_v10 = vld [vmem:[%s9313_s1 + $0x6c8] sm:$0xff]  }
  0x9d   :  { %6582 = vmatpush3.bf16.msra.mxu1 %v7236_v12  ;;  %6561 = vmatprep.subr.bf16.mxu0 %v7237_v15  ;;  %v7282_v12 = vld [vmem:[%s9313_s1 + $0x688] sm:$0xff]   ;;  %v7285_v15 = vld [vmem:[%s9313_s1 + $0x610] sm:$0xff]  }
  0x9e   :  { %6583 = vmatprep.subr.bf16.mxu1 %v7238_v16  ;;  %v7286_v16 = vld [vmem:[%s9313_s1 + $0x690] sm:$0xff]  }
  0xa0   :  { %6562 = vmatpush3.bf16.msra.mxu0 %v7239_v19  ;;  %v7289_v19 = vld [vmem:[%s9313_s1 + $0x618] sm:$0xff]  }
  0xa1   :  { %6584 = vmatpush3.bf16.msra.mxu1 %v7240_v20  ;;  %6591 = vmatprep.subr.bf16.mxu0 %v7242_v23  ;;  %v7290_v20 = vld [vmem:[%s9313_s1 + $0x698] sm:$0xff]   ;;  %v7293_v23 = vld [vmem:[%s9313_s1 + $0x620] sm:$0xff]  }
  0xa2   :  { %6613 = vmatprep.subr.bf16.mxu1 %v7243_v25  ;;  %v7295_v25 = vld [vmem:[%s9313_s1 + $0x668] sm:$0xff]  }
  0xa3   :  { %4904 = vmatmul.mubr.bf16.vlgmr.msra.gmra.mrb[16].mxu0 %v400_v27  ;;  %v7297_v27 = vld [vmem:[%s9313_s1 + $0x628] sm:$0xff]  }
  0xa4   :  { %4944 = vmatmul.mubr.bf16.vlgmr.msra.gmra.mrb[16].mxu1 %v402_v28  ;;  %6592 = vmatpush3.bf16.msra.mxu0 %v7244_v26  ;;  %v7296_v26 = vld [vmem:[%s9313_s1 + $0x6e8] sm:$0xff]  }
  0xa5   :  { %6614 = vmatpush3.bf16.msra.mxu1 %v7245_v29  ;;  %6593 = vmatprep.subr.bf16.mxu0 %v7246_v30  ;;  %v7298_v28 = vld [vmem:[%s9313_s1 + $0x6a8] sm:$0xff]   ;;  %v7299_v29 = vld [vmem:[%s9313_s1 + $0x670] sm:$0xff]  }
  0xa6   :  { %6615 = vmatprep.subr.bf16.mxu1 %v7247_v31  ;;  %4983 = vmatprep.mubr.bf16.mxu0 %v405_v0  ;;  %v7300_v30 = vld [vmem:[%s9313_s1 + $0x6f0] sm:$0xff]   ;;  %v7324_v0 = vld [vmem:[%s9313_s1 + $0x760] sm:$0xff]  }
  0xa7   :  { %5023 = vmatprep.mubr.bf16.mxu1 %v407_v3  ;;  %v7301_v31 = vld [vmem:[%s9313_s1 + $0x630] sm:$0xff]   ;;  %v7327_v3 = vld [vmem:[%s9313_s1 + $0x7a0] sm:$0xff]  }
  0xa8   :  { %6594 = vmatpush3.bf16.msra.mxu0 %v7248_v32  ;;  %v7302_v32 = vld [vmem:[%s9313_s1 + $0x6b0] sm:$0xff]  }
  0xa9   :  { %6616 = vmatpush3.bf16.msra.mxu1 %v7249_v33  ;;  %6595 = vmatprep.subr.bf16.mxu0 %v7250_v34  ;;  %v22_v33 = vld [vmem:[%s9312_s0 + $0x30] sm:$0xff]  ;;  %v7303_v34 = vld [vmem:[%s9313_s1 + $0x678] sm:$0xff]  }
  0xaa   :  { %6617 = vmatprep.subr.bf16.mxu1 %v7251_v35  ;;  %v157_v35 = vrot.slane %v22_v33, %v7760_v41 }
  0xac   :  { %6596 = vmatpush3.bf16.msra.mxu0 %v7252_v36  ;;  %v150_v36 = vcombine.high %v22_v33, %v22_v33 }
  0xad   :  { %6618 = vmatpush3.bf16.msra.mxu1 %v7253_v37  ;;  %6597 = vmatprep.subr.bf16.mxu0 %v7254_v38  ;;  %v7304_v37 = vld [vmem:[%s9313_s1 + $0x6f8] sm:$0xff]  }
  0xae   :  { %6619 = vmatprep.subr.bf16.mxu1 %v7255_v39  ;;  %v7305_v38 = vld [vmem:[%s9313_s1 + $0x638] sm:$0xff]   ;;  %v165_v39 = vcombine.high %v157_v35, %v157_v35 }
  0xb0   :  { %6598 = vmatpush3.bf16.msra.mxu0 %v7256_v40  ;;  %v164_v40 = vrot.slane %v150_v36, %v7760_v41 }
  0xb1   :  { %6620 = vmatpush3.bf16.msra.mxu1 %v7257_v42  ;;  %6599 = vmatprep.subr.bf16.mxu0 %v7258_v43  ;;  %v7306_v42 = vld [vmem:[%s9313_s1 + $0x6b8] sm:$0xff]   ;;  %v409_v43 = vpack.c.bf16 %v165_v39, %v165_v39 }
  0xb2   :  { %6621 = vmatprep.subr.bf16.mxu1 %v7259_v44  ;;  %v166_v44 = vcombine.high %v164_v40, %v164_v40 }
  0xb4   :  { %6600 = vmatpush3.bf16.msra.mxu0 %v7260_v45  ;;  %v7308_v45 = vld [vmem:[%s9313_s1 + $0x740] sm:$0xff]  }
  0xb5   :  { %6622 = vmatpush3.bf16.msra.mxu1 %v7261_v46  ;;  %6601 = vmatprep.subr.bf16.mxu0 %v7262_v47  ;;  %v7309_v46 = vld [vmem:[%s9313_s1 + $0x7c0] sm:$0xff]   ;;  %v411_v47 = vpack.c.bf16 %v166_v44, %v166_v44  ;;  %v7345_v44 = vld [vmem:[%s9313_s1 + $0x848] sm:$0xff]  }
  0xb6   :  { %6623 = vmatprep.subr.bf16.mxu1 %v7263_v48  ;;  %v7310_v48 = vld [vmem:[%s9313_s1 + $0x700] sm:$0xff]  }
  0xb8   :  { %6602 = vmatpush3.bf16.msra.mxu0 %v7264_v49  ;;  %v408_v49 = vpack.c.bf16 %v157_v35, %v157_v35 }
  0xb9   :  { %6624 = vmatpush3.bf16.msra.mxu1 %v7265_v50  ;;  %6603 = vmatprep.subr.bf16.mxu0 %v7266_v51  ;;  %v410_v50 = vpack.c.bf16 %v164_v40, %v164_v40  ;;  %v7311_v51 = vld [vmem:[%s9313_s1 + $0x780] sm:$0xff]  }
  0xba   :  { %6625 = vmatprep.subr.bf16.mxu1 %v7267_v52  ;;  %v7312_v52 = vld [vmem:[%s9313_s1 + $0x748] sm:$0xff]  }
  0xbc   :  { %6604 = vmatpush3.bf16.msra.mxu0 %v7268_v53  ;;  %v7313_v53 = vld [vmem:[%s9313_s1 + $0x7c8] sm:$0xff]  }
  0xbd   :  { %6626 = vmatpush3.bf16.msra.mxu1 %v7269_v55  ;;  %6605 = vmatprep.subr.bf16.mxu0 %v7270_v58  ;;  %v7315_v55 = vld [vmem:[%s9313_s1 + $0x788] sm:$0xff]   ;;  %v7318_v58 = vld [vmem:[%s9313_s1 + $0x710] sm:$0xff]  }
  0xbe   :  { %6627 = vmatprep.subr.bf16.mxu1 %v7271_v59  ;;  %v7319_v59 = vld [vmem:[%s9313_s1 + $0x790] sm:$0xff]  }
  0xc0   :  { %6606 = vmatpush3.bf16.msra.mxu0 %v7272_v62  ;;  %v7322_v62 = vld [vmem:[%s9313_s1 + $0x718] sm:$0xff]  }
  0xc1   :  { %6628 = vmatpush3.bf16.msra.mxu1 %v7273_v63  ;;  %6635 = vmatprep.subr.bf16.mxu0 %v7275_v2  ;;  %v7323_v63 = vld [vmem:[%s9313_s1 + $0x798] sm:$0xff]   ;;  %v7326_v2 = vld [vmem:[%s9313_s1 + $0x720] sm:$0xff]  }
  0xc2   :  { %6657 = vmatprep.subr.bf16.mxu1 %v7276_v4  ;;  %v7328_v4 = vld [vmem:[%s9313_s1 + $0x768] sm:$0xff]  }
  0xc3   :  { %4984 = vmatmul.mubr.bf16.vlgmr.msra.gmra.mrb[20].mxu0 %v404_v6  ;;  %v7330_v6 = vld [vmem:[%s9313_s1 + $0x728] sm:$0xff]  }
  0xc4   :  { %5024 = vmatmul.mubr.bf16.vlgmr.msra.gmra.mrb[20].mxu1 %v406_v7  ;;  %6636 = vmatpush3.bf16.msra.mxu0 %v7277_v5  ;;  %v7329_v5 = vld [vmem:[%s9313_s1 + $0x7e8] sm:$0xff]  }
  0xc5   :  { %6658 = vmatpush3.bf16.msra.mxu1 %v7278_v8  ;;  %6637 = vmatprep.subr.bf16.mxu0 %v7279_v9  ;;  %v7331_v7 = vld [vmem:[%s9313_s1 + $0x7a8] sm:$0xff]   ;;  %v7332_v8 = vld [vmem:[%s9313_s1 + $0x770] sm:$0xff]   ;;  %v5858_v9 = vld [vmem:[%s9314_s2] ss:$0 sm:$0xff] }
  0xc6   :  { %6659 = vmatprep.subr.bf16.mxu1 %v7280_v10  ;;  %5063 = vmatprep.mubr.bf16.mxu0 %v409_v43  ;;  %v7333_v10 = vld [vmem:[%s9313_s1 + $0x7f0] sm:$0xff]   ;;  %v7344_v43 = vld [vmem:[%s9313_s1 + $0x880] sm:$0xff]  }
  0xc7   :  { %5103 = vmatprep.mubr.bf16.mxu1 %v411_v47  ;;  %v7348_v47 = vld [vmem:[%s9313_s1 + $0x888] sm:$0xff]  }
  0xc8   :  { %6638 = vmatpush3.bf16.msra.mxu0 %v7281_v11 }
  0xc9   :  { %6660 = vmatpush3.bf16.msra.mxu1 %v7282_v12  ;;  %6639 = vmatprep.subr.bf16.mxu0 %v7283_v13  ;;  %v7334_v13 = vld [vmem:[%s9313_s1 + $0x730] sm:$0xff]  }
  0xca   :  { %6661 = vmatprep.subr.bf16.mxu1 %v7284_v14  ;;  %v7335_v14 = vld [vmem:[%s9313_s1 + $0x7b0] sm:$0xff]  }
  0xcc   :  { %6640 = vmatpush3.bf16.msra.mxu0 %v7285_v15 }
  0xcd   :  { %6662 = vmatpush3.bf16.msra.mxu1 %v7286_v16  ;;  %6641 = vmatprep.subr.bf16.mxu0 %v7287_v17  ;;  %v7336_v17 = vld [vmem:[%s9313_s1 + $0x778] sm:$0xff]  }
  0xce   :  { %6663 = vmatprep.subr.bf16.mxu1 %v7288_v18 }
  0xd0   :  { %6642 = vmatpush3.bf16.msra.mxu0 %v7289_v19 }
  0xd1   :  { %6664 = vmatpush3.bf16.msra.mxu1 %v7290_v20  ;;  %6643 = vmatprep.subr.bf16.mxu0 %v7291_v21 }
  0xd2   :  { %6665 = vmatprep.subr.bf16.mxu1 %v7292_v22  ;;  %v7337_v22 = vld [vmem:[%s9313_s1 + $0x7f8] sm:$0xff]  }
  0xd4   :  { %6644 = vmatpush3.bf16.msra.mxu0 %v7293_v23  ;;  %v23_v23 = vld [vmem:[%s9312_s0 + $0x38] sm:$0xff] }
  0xd5   :  { %6666 = vmatpush3.bf16.msra.mxu1 %v7294_v24  ;;  %6645 = vmatprep.subr.bf16.mxu0 %v7295_v25 }
  0xd6   :  { %6667 = vmatprep.subr.bf16.mxu1 %v7296_v26  ;;  %v174_v26 = vrot.slane %v23_v23, %v7760_v41 }
  0xd8   :  { %6646 = vmatpush3.bf16.msra.mxu0 %v7297_v27  ;;  %v167_v27 = vcombine.high %v23_v23, %v23_v23  ;;  %v412_v40 = vpack.c.bf16 %v174_v26, %v174_v26 }
  0xd9   :  { %6668 = vmatpush3.bf16.msra.mxu1 %v7298_v28  ;;  %6647 = vmatprep.subr.bf16.mxu0 %v7299_v29  ;;  %v7338_v29 = vld [vmem:[%s9313_s1 + $0x738] sm:$0xff]  }
  0xda   :  { %6669 = vmatprep.subr.bf16.mxu1 %v7300_v30  ;;  %v7339_v30 = vld [vmem:[%s9313_s1 + $0x7b8] sm:$0xff]  }
  0xdc   :  { %6648 = vmatpush3.bf16.msra.mxu0 %v7301_v31  ;;  %v182_v31 = vcombine.high %v174_v26, %v174_v26  ;;  %v7375_v26 = vld [vmem:[%s9313_s1 + $0x9c0] sm:$0xff]  }
  0xdd   :  { %6670 = vmatpush3.bf16.msra.mxu1 %v7302_v32  ;;  %6649 = vmatprep.subr.bf16.mxu0 %v7303_v34  ;;  %v181_v32 = vrot.slane %v167_v27, %v7760_v41  ;;  %v7341_v34 = vld [vmem:[%s9313_s1 + $0x840] sm:$0xff]  }
  0xde   :  { %6671 = vmatprep.subr.bf16.mxu1 %v7304_v37  ;;  %v413_v35 = vpack.c.bf16 %v182_v31, %v182_v31  ;;  %v7342_v37 = vld [vmem:[%s9313_s1 + $0x8c0] sm:$0xff]  }
  0xdf   :  { %v183_v36 = vcombine.high %v181_v32, %v181_v32 }
  0xe0   :  { %6650 = vmatpush3.bf16.msra.mxu0 %v7305_v38  ;;  %v7343_v38 = vld [vmem:[%s9313_s1 + $0x800] sm:$0xff]  }
  0xe1   :  { %6672 = vmatpush3.bf16.msra.mxu1 %v7306_v42  ;;  %6679 = vmatprep.subr.bf16.mxu0 %v7308_v45  ;;  %v415_v39 = vpack.c.bf16 %v183_v36, %v183_v36  ;;  %v414_v42 = vpack.c.bf16 %v181_v32, %v181_v32  ;;  %v7346_v45 = vld [vmem:[%s9313_s1 + $0x8c8] sm:$0xff]   ;;  %v7377_v32 = vld [vmem:[%s9313_s1 + $0x980] sm:$0xff]  }
  0xe2   :  { %6701 = vmatprep.subr.bf16.mxu1 %v7309_v46  ;;  %v7347_v46 = vld [vmem:[%s9313_s1 + $0x808] sm:$0xff]  }
  0xe3   :  { %5064 = vmatmul.mubr.bf16.vlgmr.msra.gmra.mrb[24].mxu0 %v408_v49  ;;  %v7350_v49 = vld [vmem:[%s9313_s1 + $0x8d0] sm:$0xff]   ;;  %v7380_v36 = vld [vmem:[%s9313_s1 + $0x908] sm:$0xff]  }
  0xe4   :  { %5104 = vmatmul.mubr.bf16.vlgmr.msra.gmra.mrb[24].mxu1 %v410_v50  ;;  %6680 = vmatpush3.bf16.msra.mxu0 %v7310_v48  ;;  %v7349_v48 = vld [vmem:[%s9313_s1 + $0x850] sm:$0xff]  }
  0xe5   :  { %6702 = vmatpush3.bf16.msra.mxu1 %v7311_v51  ;;  %6681 = vmatprep.subr.bf16.mxu0 %v7312_v52  ;;  %v7351_v50 = vld [vmem:[%s9313_s1 + $0x810] sm:$0xff]   ;;  %v7353_v52 = vld [vmem:[%s9313_s1 + $0x858] sm:$0xff]  }
  0xe6   :  { %6703 = vmatprep.subr.bf16.mxu1 %v7313_v53  ;;  %5143 = vmatprep.mubr.bf16.mxu0 %v413_v35  ;;  %v7352_v51 = vld [vmem:[%s9313_s1 + $0x890] sm:$0xff]   ;;  %v7354_v53 = vld [vmem:[%s9313_s1 + $0x8d8] sm:$0xff]   ;;  %v7379_v35 = vld [vmem:[%s9313_s1 + $0x9c8] sm:$0xff]  }
  0xe7   :  { %5183 = vmatprep.mubr.bf16.mxu1 %v415_v39  ;;  %v7383_v39 = vld [vmem:[%s9313_s1 + $0x9d0] sm:$0xff]  }
  0xe8   :  { %6682 = vmatpush3.bf16.msra.mxu0 %v7314_v54  ;;  %v7355_v54 = vld [vmem:[%s9313_s1 + $0x818] sm:$0xff]  }
  0xe9   :  { %6704 = vmatpush3.bf16.msra.mxu1 %v7315_v55  ;;  %6683 = vmatprep.subr.bf16.mxu0 %v7316_v56  ;;  %v7356_v55 = vld [vmem:[%s9313_s1 + $0x898] sm:$0xff]   ;;  %v7357_v56 = vld [vmem:[%s9313_s1 + $0x860] sm:$0xff]  }
  0xea   :  { %6705 = vmatprep.subr.bf16.mxu1 %v7317_v57  ;;  %v7358_v57 = vld [vmem:[%s9313_s1 + $0x8e0] sm:$0xff]  }
  0xec   :  { %6684 = vmatpush3.bf16.msra.mxu0 %v7318_v58  ;;  %v7359_v58 = vld [vmem:[%s9313_s1 + $0x820] sm:$0xff]  }
  0xed   :  { %6706 = vmatpush3.bf16.msra.mxu1 %v7319_v59  ;;  %6685 = vmatprep.subr.bf16.mxu0 %v7320_v60  ;;  %v7360_v59 = vld [vmem:[%s9313_s1 + $0x8a0] sm:$0xff]   ;;  %v7361_v60 = vld [vmem:[%s9313_s1 + $0x868] sm:$0xff]  }
  0xee   :  { %6707 = vmatprep.subr.bf16.mxu1 %v7321_v61  ;;  %v7362_v61 = vld [vmem:[%s9313_s1 + $0x8e8] sm:$0xff]  }
  0xf0   :  { %6686 = vmatpush3.bf16.msra.mxu0 %v7322_v62  ;;  %v7363_v62 = vld [vmem:[%s9313_s1 + $0x828] sm:$0xff]  }
  0xf1   :  { %6708 = vmatpush3.bf16.msra.mxu1 %v7323_v63  ;;  %6687 = vmatprep.subr.bf16.mxu0 %v7324_v0  ;;  %v7364_v63 = vld [vmem:[%s9313_s1 + $0x8a8] sm:$0xff]   ;;  %v7365_v0 = vld [vmem:[%s9313_s1 + $0x870] sm:$0xff]  }
  0xf2   :  { %6709 = vmatprep.subr.bf16.mxu1 %v7325_v1  ;;  %v7366_v1 = vld [vmem:[%s9313_s1 + $0x8f0] sm:$0xff]  }
  0xf4   :  { %6688 = vmatpush3.bf16.msra.mxu0 %v7326_v2 }
  0xf5   :  { %6710 = vmatpush3.bf16.msra.mxu1 %v7327_v3  ;;  %6689 = vmatprep.subr.bf16.mxu0 %v7328_v4  ;;  %v7367_v4 = vld [vmem:[%s9313_s1 + $0x830] sm:$0xff]  }
  0xf6   :  { %6711 = vmatprep.subr.bf16.mxu1 %v7329_v5  ;;  %v6387_v11 = vpop.f32.mrb[0].mxu0  ;;  %v7368_v5 = vld [vmem:[%s9313_s1 + $0x8b0] sm:$0xff]  }
  0xf7   :  { %v6409_v12 = vpop.f32.mrb[0].mxu1  ;;  %v6388_v15 = vpop.f32.mrb[1].mxu0 }
  0xf8   :  { %v6410_v16 = vpop.f32.mrb[1].mxu1  ;;  %v6389_v18 = vadd.f32 %v6388_v15, %v6387_v11  ;;  %v6390_v20 = vpop.f32.mrb[2].mxu0  ;;  %6690 = vmatpush3.bf16.msra.mxu0 %v7330_v6  ;;  %v7370_v15 = vld [vmem:[%s9313_s1 + $0x8f8] sm:$0xff]  }
  0xf9   :  { %v6411_v19 = vadd.f32 %v6410_v16, %v6409_v12  ;;  %v6412_v21 = vpop.f32.mrb[2].mxu1  ;;  %6712 = vmatpush3.bf16.msra.mxu1 %v7331_v7  ;;  %v6391_v24 = vpop.f32.mrb[3].mxu0  ;;  %6691 = vmatprep.subr.bf16.mxu0 %v7332_v8  ;;  %v7369_v8 = vld [vmem:[%s9313_s1 + $0x878] sm:$0xff]   ;;  %v24_v16 = vld [vmem:[%s9312_s0 + $0x40] sm:$0xff] }
  0xfa   :  { %v6413_v25 = vpop.f32.mrb[3].mxu1  ;;  %6713 = vmatprep.subr.bf16.mxu1 %v7333_v10  ;;  %v4586_v28 = vadd.f32 %v6389_v18, %v5858_v9  ;;  %v7371_v18 = vld [vmem:[%s9313_s1 + $0x838] sm:$0xff]   ;;  %v184_v20 = vcombine.high %v24_v16, %v24_v16 }
  0xfb   :  { %v7372_v21 = vld [vmem:[%s9313_s1 + $0x8b8] sm:$0xff]   ;;  %v7374_v25 = vld [vmem:[%s9313_s1 + $0x940] sm:$0xff]  }
  0xfc   :  { %v8468_v33 = vadd.f32 %v6411_v19, %v4586_v28  ;;  %6692 = vmatpush3.bf16.msra.mxu0 %v7334_v13  ;;  %v191_v19 = vrot.slane %v24_v16, %v7760_v41  ;;  %v198_v24 = vrot.slane %v184_v20, %v7760_v41  ;;  %v7407_v16 = vld [vmem:[%s9313_s1 + $0xa40] sm:$0xff]  }
  0xfd   :  { %6714 = vmatpush3.bf16.msra.mxu1 %v7335_v14  ;;  %6693 = vmatprep.subr.bf16.mxu0 %v7336_v17 }
  0xfe   :  { %6715 = vmatprep.subr.bf16.mxu1 %v7337_v22  ;;  %v199_v23 = vcombine.high %v191_v19, %v191_v19  ;;  %v200_v28 = vcombine.high %v198_v24, %v198_v24  ;;  %v418_v31 = vpack.c.bf16 %v198_v24, %v198_v24 }
 0x100   :  { %6694 = vmatpush3.bf16.msra.mxu0 %v7338_v29  ;;  %v417_v27 = vpack.c.bf16 %v199_v23, %v199_v23  ;;  %v7376_v29 = vld [vmem:[%s9313_s1 + $0x900] sm:$0xff]  }
 0x101   :  { %6716 = vmatpush3.bf16.msra.mxu1 %v7339_v30  ;;  %6723 = vmatprep.subr.bf16.mxu0 %v7341_v34  ;;  %v416_v30 = vpack.c.bf16 %v191_v19, %v191_v19  ;;  %v7378_v34 = vld [vmem:[%s9313_s1 + $0x948] sm:$0xff]   ;;  %v7410_v23 = vld [vmem:[%s9313_s1 + $0xa80] sm:$0xff]  }
 0x102   :  { %6745 = vmatprep.subr.bf16.mxu1 %v7342_v37  ;;  %v7381_v37 = vld [vmem:[%s9313_s1 + $0x988] sm:$0xff]  }
 0x103   :  { %5144 = vmatmul.mubr.bf16.vlgmr.msra.gmra.mrb[28].mxu0 %v412_v40  ;;  %v7384_v40 = vld [vmem:[%s9313_s1 + $0x910] sm:$0xff]  }
 0x104   :  { %5184 = vmatmul.mubr.bf16.vlgmr.msra.gmra.mrb[28].mxu1 %v414_v42  ;;  %6724 = vmatpush3.bf16.msra.mxu0 %v7343_v38  ;;  %v7382_v38 = vld [vmem:[%s9313_s1 + $0x950] sm:$0xff]  }
 0x105   :  { %6746 = vmatpush3.bf16.msra.mxu1 %v7344_v43  ;;  %6725 = vmatprep.subr.bf16.mxu0 %v7345_v44  ;;  %v7385_v42 = vld [vmem:[%s9313_s1 + $0x990] sm:$0xff]   ;;  %v7386_v43 = vld [vmem:[%s9313_s1 + $0x958] sm:$0xff]  }
 0x106   :  { %6747 = vmatprep.subr.bf16.mxu1 %v7346_v45  ;;  %5223 = vmatprep.mubr.bf16.mxu0 %v417_v27  ;;  %v7387_v44 = vld [vmem:[%s9313_s1 + $0x9d8] sm:$0xff]   ;;  %v7413_v27 = vld [vmem:[%s9313_s1 + $0xa08] sm:$0xff]  }
 0x107   :  { %v7388_v45 = vld [vmem:[%s9313_s1 + $0x918] sm:$0xff]  }
 0x108   :  { %6726 = vmatpush3.bf16.msra.mxu0 %v7347_v46  ;;  %v7389_v46 = vld [vmem:[%s9313_s1 + $0x998] sm:$0xff]  }
 0x109   :  { %6748 = vmatpush3.bf16.msra.mxu1 %v7348_v47  ;;  %6727 = vmatprep.subr.bf16.mxu0 %v7349_v48  ;;  %v7390_v47 = vld [vmem:[%s9313_s1 + $0x960] sm:$0xff]  }
 0x10a   :  { %6749 = vmatprep.subr.bf16.mxu1 %v7350_v49  ;;  %v7391_v48 = vld [vmem:[%s9313_s1 + $0x9e0] sm:$0xff]  }
 0x10b   :  { %v7392_v49 = vld [vmem:[%s9313_s1 + $0x920] sm:$0xff]  }
 0x10c   :  { %6728 = vmatpush3.bf16.msra.mxu0 %v7351_v50  ;;  %v7393_v50 = vld [vmem:[%s9313_s1 + $0x9a0] sm:$0xff]  }
 0x10d   :  { %6750 = vmatpush3.bf16.msra.mxu1 %v7352_v51  ;;  %6729 = vmatprep.subr.bf16.mxu0 %v7353_v52  ;;  %v7394_v51 = vld [vmem:[%s9313_s1 + $0x968] sm:$0xff]  }
 0x10e   :  { %6751 = vmatprep.subr.bf16.mxu1 %v7354_v53  ;;  %v7395_v52 = vld [vmem:[%s9313_s1 + $0x9e8] sm:$0xff]  }
 0x10f   :  { %v7396_v53 = vld [vmem:[%s9313_s1 + $0x928] sm:$0xff]  }
 0x110   :  { %6730 = vmatpush3.bf16.msra.mxu0 %v7355_v54  ;;  %v7397_v54 = vld [vmem:[%s9313_s1 + $0x9a8] sm:$0xff]  }
 0x111   :  { %6752 = vmatpush3.bf16.msra.mxu1 %v7356_v55  ;;  %6731 = vmatprep.subr.bf16.mxu0 %v7357_v56  ;;  %v7398_v55 = vld [vmem:[%s9313_s1 + $0x970] sm:$0xff]  }
 0x112   :  { %6753 = vmatprep.subr.bf16.mxu1 %v7358_v57  ;;  %v7399_v56 = vld [vmem:[%s9313_s1 + $0x9f0] sm:$0xff]  }
 0x114   :  { %6732 = vmatpush3.bf16.msra.mxu0 %v7359_v58 }
 0x115   :  { %6754 = vmatpush3.bf16.msra.mxu1 %v7360_v59  ;;  %6733 = vmatprep.subr.bf16.mxu0 %v7361_v60  ;;  %v7400_v59 = vld [vmem:[%s9313_s1 + $0x930] sm:$0xff]  }
 0x116   :  { %6755 = vmatprep.subr.bf16.mxu1 %v7362_v61  ;;  %v6431_v2 = vpop.f32.mrb[4].mxu0  ;;  %v7401_v60 = vld [vmem:[%s9313_s1 + $0x9b0] sm:$0xff]  }
 0x117   :  { %v6453_v3 = vpop.f32.mrb[4].mxu1  ;;  %v6432_v6 = vpop.f32.mrb[5].mxu0 }
 0x118   :  { %v6454_v7 = vpop.f32.mrb[5].mxu1  ;;  %v6433_v9 = vadd.f32 %v6432_v6, %v6431_v2  ;;  %v6434_v11 = vpop.f32.mrb[6].mxu0  ;;  %6734 = vmatpush3.bf16.msra.mxu0 %v7363_v62  ;;  %v7403_v6 = vld [vmem:[%s9313_s1 + $0x9f8] sm:$0xff]  }
 0x119   :  { %v6455_v10 = vadd.f32 %v6454_v7, %v6453_v3  ;;  %v6456_v12 = vpop.f32.mrb[6].mxu1  ;;  %6756 = vmatpush3.bf16.msra.mxu1 %v7364_v63  ;;  %v6435_v13 = vpop.f32.mrb[7].mxu0  ;;  %6735 = vmatprep.subr.bf16.mxu0 %v7365_v0 }
 0x11a   :  { %v6457_v14 = vpop.f32.mrb[7].mxu1  ;;  %6757 = vmatprep.subr.bf16.mxu1 %v7366_v1  ;;  %v4666_v17 = vadd.f32 %v6433_v9, %v8468_v33  ;;  %v419_v33 = vpack.c.bf16 %v200_v28, %v200_v28  ;;  %v7404_v9 = vld [vmem:[%s9313_s1 + $0x938] sm:$0xff]   ;;  %v7414_v28 = vld [vmem:[%s9313_s1 + $0xa88] sm:$0xff]  }
 0x11b   :  { %v7405_v13 = vld [vmem:[%s9313_s1 + $0x9b8] sm:$0xff]  }
 0x11c   :  { %v8571_v22 = vadd.f32 %v6455_v10, %v4666_v17  ;;  %6736 = vmatpush3.bf16.msra.mxu0 %v7367_v4  ;;  %5263 = vmatprep.mubr.bf16.mxu1 %v419_v33  ;;  %v7408_v17 = vld [vmem:[%s9313_s1 + $0xac0] sm:$0xff]   ;;  %v7419_v33 = vld [vmem:[%s9313_s1 + $0xa58] sm:$0xff]  }
 0x11d   :  { %6758 = vmatpush3.bf16.msra.mxu1 %v7368_v5  ;;  %6737 = vmatprep.subr.bf16.mxu0 %v7369_v8  ;;  %v7402_v5 = vld [vmem:[%s9313_s1 + $0x978] sm:$0xff]   ;;  %v25_v8 = vld [vmem:[%s9312_s0 + $0x48] sm:$0xff] }
 0x11e   :  { %6759 = vmatprep.subr.bf16.mxu1 %v7370_v15  ;;  %v208_v10 = vrot.slane %v25_v8, %v7760_v41  ;;  %v201_v11 = vcombine.high %v25_v8, %v25_v8  ;;  %v7441_v8 = vld [vmem:[%s9313_s1 + $0xbc0] sm:$0xff]  }
 0x120   :  { %6738 = vmatpush3.bf16.msra.mxu0 %v7371_v18  ;;  %v216_v14 = vcombine.high %v208_v10, %v208_v10  ;;  %v215_v15 = vrot.slane %v201_v11, %v7760_v41  ;;  %v420_v20 = vpack.c.bf16 %v208_v10, %v208_v10  ;;  %v7442_v10 = vld [vmem:[%s9313_s1 + $0xb00] sm:$0xff]  }
 0x121   :  { %6760 = vmatpush3.bf16.msra.mxu1 %v7372_v21  ;;  %6767 = vmatprep.subr.bf16.mxu0 %v7374_v25  ;;  %v7409_v21 = vld [vmem:[%s9313_s1 + $0xa00] sm:$0xff]   ;;  %v7411_v25 = vld [vmem:[%s9313_s1 + $0xa48] sm:$0xff]  }
 0x122   :  { %6789 = vmatprep.subr.bf16.mxu1 %v7375_v26  ;;  %v421_v18 = vpack.c.bf16 %v216_v14, %v216_v14  ;;  %v217_v19 = vcombine.high %v215_v15, %v215_v15  ;;  %v7412_v26 = vld [vmem:[%s9313_s1 + $0xac8] sm:$0xff]  }
 0x123   :  { %5224 = vmatmul.mubr.bf16.vlgmr.msra.gmra.mrb[32].mxu0 %v416_v30  ;;  %v7416_v30 = vld [vmem:[%s9313_s1 + $0xad0] sm:$0xff]  }
 0x124   :  { %5264 = vmatmul.mubr.bf16.vlgmr.msra.gmra.mrb[32].mxu1 %v418_v31  ;;  %6768 = vmatpush3.bf16.msra.mxu0 %v7376_v29  ;;  %v423_v24 = vpack.c.bf16 %v217_v19, %v217_v19  ;;  %v7415_v29 = vld [vmem:[%s9313_s1 + $0xa50] sm:$0xff]   ;;  %v7447_v19 = vld [vmem:[%s9313_s1 + $0xb88] sm:$0xff]  }
 0x125   :  { %6790 = vmatpush3.bf16.msra.mxu1 %v7377_v32  ;;  %6769 = vmatprep.subr.bf16.mxu0 %v7378_v34  ;;  %v7417_v31 = vld [vmem:[%s9313_s1 + $0xa10] sm:$0xff]   ;;  %v7420_v34 = vld [vmem:[%s9313_s1 + $0xad8] sm:$0xff]  }
 0x126   :  { %6791 = vmatprep.subr.bf16.mxu1 %v7379_v35  ;;  %5303 = vmatprep.mubr.bf16.mxu0 %v421_v18  ;;  %v7418_v32 = vld [vmem:[%s9313_s1 + $0xa90] sm:$0xff]   ;;  %v7421_v35 = vld [vmem:[%s9313_s1 + $0xa18] sm:$0xff]   ;;  %v7446_v18 = vld [vmem:[%s9313_s1 + $0xb08] sm:$0xff]  }
 0x127   :  { %5343 = vmatprep.mubr.bf16.mxu1 %v423_v24  ;;  %v7452_v24 = vld [vmem:[%s9313_s1 + $0xb58] sm:$0xff]  }
 0x128   :  { %6770 = vmatpush3.bf16.msra.mxu0 %v7380_v36  ;;  %v7422_v36 = vld [vmem:[%s9313_s1 + $0xa98] sm:$0xff]  }
 0x129   :  { %6792 = vmatpush3.bf16.msra.mxu1 %v7381_v37  ;;  %6771 = vmatprep.subr.bf16.mxu0 %v7382_v38  ;;  %v7423_v37 = vld [vmem:[%s9313_s1 + $0xa60] sm:$0xff]  }
 0x12a   :  { %6793 = vmatprep.subr.bf16.mxu1 %v7383_v39  ;;  %v7424_v38 = vld [vmem:[%s9313_s1 + $0xae0] sm:$0xff]  }
 0x12b   :  { %v7425_v39 = vld [vmem:[%s9313_s1 + $0xa20] sm:$0xff]  }
 0x12c   :  { %6772 = vmatpush3.bf16.msra.mxu0 %v7384_v40  ;;  %v7426_v40 = vld [vmem:[%s9313_s1 + $0xaa0] sm:$0xff]  }
 0x12d   :  { %6794 = vmatpush3.bf16.msra.mxu1 %v7385_v42  ;;  %6773 = vmatprep.subr.bf16.mxu0 %v7386_v43  ;;  %v7427_v42 = vld [vmem:[%s9313_s1 + $0xa68] sm:$0xff]  }
 0x12e   :  { %6795 = vmatprep.subr.bf16.mxu1 %v7387_v44  ;;  %v7428_v43 = vld [vmem:[%s9313_s1 + $0xae8] sm:$0xff]  }
 0x12f   :  { %v7429_v44 = vld [vmem:[%s9313_s1 + $0xa28] sm:$0xff]  }
 0x130   :  { %6774 = vmatpush3.bf16.msra.mxu0 %v7388_v45  ;;  %v7430_v45 = vld [vmem:[%s9313_s1 + $0xaa8] sm:$0xff]  }
 0x131   :  { %6796 = vmatpush3.bf16.msra.mxu1 %v7389_v46  ;;  %6775 = vmatprep.subr.bf16.mxu0 %v7390_v47  ;;  %v7431_v46 = vld [vmem:[%s9313_s1 + $0xa70] sm:$0xff]  }
 0x132   :  { %6797 = vmatprep.subr.bf16.mxu1 %v7391_v48 }
 0x134   :  { %6776 = vmatpush3.bf16.msra.mxu0 %v7392_v49  ;;  %v7432_v49 = vld [vmem:[%s9313_s1 + $0xaf0] sm:$0xff]  }
 0x135   :  { %6798 = vmatpush3.bf16.msra.mxu1 %v7393_v50  ;;  %6777 = vmatprep.subr.bf16.mxu0 %v7394_v51  ;;  %v7433_v50 = vld [vmem:[%s9313_s1 + $0xa30] sm:$0xff]  }
 0x136   :  { %6799 = vmatprep.subr.bf16.mxu1 %v7395_v52  ;;  %v6475_v57 = vpop.f32.mrb[8].mxu0 }
 0x137   :  { %v6497_v58 = vpop.f32.mrb[8].mxu1  ;;  %v6476_v61 = vpop.f32.mrb[9].mxu0 }
 0x138   :  { %v6498_v62 = vpop.f32.mrb[9].mxu1  ;;  %v6477_v63 = vadd.f32 %v6476_v61, %v6475_v57  ;;  %v6478_v1 = vpop.f32.mrb[10].mxu0  ;;  %6778 = vmatpush3.bf16.msra.mxu0 %v7396_v53  ;;  %v7434_v53 = vld [vmem:[%s9313_s1 + $0xab0] sm:$0xff]   ;;  %v7436_v61 = vld [vmem:[%s9313_s1 + $0xaf8] sm:$0xff]  }
 0x139   :  { %v6499_v0 = vadd.f32 %v6498_v62, %v6497_v58  ;;  %v6500_v2 = vpop.f32.mrb[10].mxu1  ;;  %6800 = vmatpush3.bf16.msra.mxu1 %v7397_v54  ;;  %v6479_v3 = vpop.f32.mrb[11].mxu0  ;;  %6779 = vmatprep.subr.bf16.mxu0 %v7398_v55 }
 0x13a   :  { %v6501_v4 = vpop.f32.mrb[11].mxu1  ;;  %6801 = vmatprep.subr.bf16.mxu1 %v7399_v56  ;;  %v4746_v7 = vadd.f32 %v6477_v63, %v8571_v22  ;;  %v422_v22 = vpack.c.bf16 %v215_v15, %v215_v15  ;;  %v7437_v63 = vld [vmem:[%s9313_s1 + $0xa38] sm:$0xff]   ;;  %v7444_v15 = vld [vmem:[%s9313_s1 + $0xb48] sm:$0xff]  }
 0x13b   :  { %v7438_v2 = vld [vmem:[%s9313_s1 + $0xab8] sm:$0xff]  }
 0x13c   :  { %v8672_v12 = vadd.f32 %v6499_v0, %v4746_v7  ;;  %6780 = vmatpush3.bf16.msra.mxu0 %v7400_v59  ;;  %v26_v0 = vld [vmem:[%s9312_s0 + $0x50] sm:$0xff] }
 0x13d   :  { %6802 = vmatpush3.bf16.msra.mxu1 %v7401_v60  ;;  %6781 = vmatprep.subr.bf16.mxu0 %v7402_v5  ;;  %v7435_v60 = vld [vmem:[%s9313_s1 + $0xa78] sm:$0xff]   ;;  %v225_v3 = vrot.slane %v26_v0, %v7760_v41  ;;  %v218_v4 = vcombine.high %v26_v0, %v26_v0  ;;  %v7440_v5 = vld [vmem:[%s9313_s1 + $0xb40] sm:$0xff]  }
 0x13e   :  { %6803 = vmatprep.subr.bf16.mxu1 %v7403_v6 }
 0x13f   :  { %v233_v6 = vcombine.high %v225_v3, %v225_v3  ;;  %v232_v7 = vrot.slane %v218_v4, %v7760_v41  ;;  %v7476_v4 = vld [vmem:[%s9313_s1 + $0xc80] sm:$0xff]  }
 0x140   :  { %6782 = vmatpush3.bf16.msra.mxu0 %v7404_v9  ;;  %v424_v9 = vpack.c.bf16 %v225_v3, %v225_v3 }
 0x141   :  { %6804 = vmatpush3.bf16.msra.mxu1 %v7405_v13  ;;  %6811 = vmatprep.subr.bf16.mxu0 %v7407_v16  ;;  %v425_v11 = vpack.c.bf16 %v233_v6, %v233_v6  ;;  %v7443_v13 = vld [vmem:[%s9313_s1 + $0xb80] sm:$0xff]   ;;  %v426_v14 = vpack.c.bf16 %v232_v7, %v232_v7  ;;  %v7477_v6 = vld [vmem:[%s9313_s1 + $0xc48] sm:$0xff]  }
 0x142   :  { %6833 = vmatprep.subr.bf16.mxu1 %v7408_v17  ;;  %v7445_v17 = vld [vmem:[%s9313_s1 + $0xbc8] sm:$0xff]  }
 0x143   :  { %5304 = vmatmul.mubr.bf16.vlgmr.msra.gmra.mrb[36].mxu0 %v420_v20  ;;  %v7448_v20 = vld [vmem:[%s9313_s1 + $0xb50] sm:$0xff]  }
 0x144   :  { %5344 = vmatmul.mubr.bf16.vlgmr.msra.gmra.mrb[36].mxu1 %v422_v22  ;;  %6812 = vmatpush3.bf16.msra.mxu0 %v7409_v21  ;;  %v7449_v21 = vld [vmem:[%s9313_s1 + $0xbd0] sm:$0xff]  }
 0x145   :  { %6834 = vmatpush3.bf16.msra.mxu1 %v7410_v23  ;;  %6813 = vmatprep.subr.bf16.mxu0 %v7411_v25  ;;  %v7450_v22 = vld [vmem:[%s9313_s1 + $0xb10] sm:$0xff]   ;;  %v7453_v25 = vld [vmem:[%s9313_s1 + $0xbd8] sm:$0xff]  }
 0x146   :  { %6835 = vmatprep.subr.bf16.mxu1 %v7412_v26  ;;  %5383 = vmatprep.mubr.bf16.mxu0 %v425_v11  ;;  %v7451_v23 = vld [vmem:[%s9313_s1 + $0xb90] sm:$0xff]   ;;  %v7454_v26 = vld [vmem:[%s9313_s1 + $0xb18] sm:$0xff]  }
 0x147   :  { %v7481_v11 = vld [vmem:[%s9313_s1 + $0xc50] sm:$0xff]  }
 0x148   :  { %6814 = vmatpush3.bf16.msra.mxu0 %v7413_v27  ;;  %v7455_v27 = vld [vmem:[%s9313_s1 + $0xb98] sm:$0xff]  }
 0x149   :  { %6836 = vmatpush3.bf16.msra.mxu1 %v7414_v28  ;;  %6815 = vmatprep.subr.bf16.mxu0 %v7415_v29  ;;  %v7456_v28 = vld [vmem:[%s9313_s1 + $0xb60] sm:$0xff]  }
 0x14a   :  { %6837 = vmatprep.subr.bf16.mxu1 %v7416_v30  ;;  %v7457_v29 = vld [vmem:[%s9313_s1 + $0xbe0] sm:$0xff]  }
 0x14b   :  { %v7458_v30 = vld [vmem:[%s9313_s1 + $0xb20] sm:$0xff]  }
 0x14c   :  { %6816 = vmatpush3.bf16.msra.mxu0 %v7417_v31  ;;  %v7459_v31 = vld [vmem:[%s9313_s1 + $0xba0] sm:$0xff]  }
 0x14d   :  { %6838 = vmatpush3.bf16.msra.mxu1 %v7418_v32  ;;  %6817 = vmatprep.subr.bf16.mxu0 %v7419_v33  ;;  %v7460_v32 = vld [vmem:[%s9313_s1 + $0xb68] sm:$0xff]  }
 0x14e   :  { %6839 = vmatprep.subr.bf16.mxu1 %v7420_v34  ;;  %v7461_v33 = vld [vmem:[%s9313_s1 + $0xbe8] sm:$0xff]  }
 0x14f   :  { %v7462_v34 = vld [vmem:[%s9313_s1 + $0xb28] sm:$0xff]  }
 0x150   :  { %6818 = vmatpush3.bf16.msra.mxu0 %v7421_v35  ;;  %v7463_v35 = vld [vmem:[%s9313_s1 + $0xba8] sm:$0xff]  }
 0x151   :  { %6840 = vmatpush3.bf16.msra.mxu1 %v7422_v36  ;;  %6819 = vmatprep.subr.bf16.mxu0 %v7423_v37  ;;  %v7464_v36 = vld [vmem:[%s9313_s1 + $0xb70] sm:$0xff]  }
 0x152   :  { %6841 = vmatprep.subr.bf16.mxu1 %v7424_v38 }
 0x154   :  { %6820 = vmatpush3.bf16.msra.mxu0 %v7425_v39  ;;  %v7465_v39 = vld [vmem:[%s9313_s1 + $0xbf0] sm:$0xff]  }
 0x155   :  { %6842 = vmatpush3.bf16.msra.mxu1 %v7426_v40  ;;  %6821 = vmatprep.subr.bf16.mxu0 %v7427_v42  ;;  %v7466_v40 = vld [vmem:[%s9313_s1 + $0xb30] sm:$0xff]  }
 0x156   :  { %v6519_v47 = vpop.f32.mrb[12].mxu0  ;;  %6843 = vmatprep.subr.bf16.mxu1 %v7428_v43 }
 0x157   :  { %v6541_v48 = vpop.f32.mrb[12].mxu1  ;;  %v6520_v51 = vpop.f32.mrb[13].mxu0 }
 0x158   :  { %v6542_v52 = vpop.f32.mrb[13].mxu1  ;;  %v6521_v54 = vadd.f32 %v6520_v51, %v6519_v47  ;;  %v6522_v56 = vpop.f32.mrb[14].mxu0  ;;  %6822 = vmatpush3.bf16.msra.mxu0 %v7429_v44  ;;  %v7468_v51 = vld [vmem:[%s9313_s1 + $0xb78] sm:$0xff]  }
 0x159   :  { %v6543_v55 = vadd.f32 %v6542_v52, %v6541_v48  ;;  %v6544_v57 = vpop.f32.mrb[14].mxu1  ;;  %6844 = vmatpush3.bf16.msra.mxu1 %v7430_v45  ;;  %v6523_v58 = vpop.f32.mrb[15].mxu0  ;;  %6823 = vmatprep.subr.bf16.mxu0 %v7431_v46  ;;  %v27_v56 = vld [vmem:[%s9312_s0 + $0x58] sm:$0xff] }
 0x15a   :  { %v6545_v59 = vpop.f32.mrb[15].mxu1  ;;  %v4826_v62 = vadd.f32 %v6521_v54, %v8672_v12  ;;  %6845 = vmatprep.subr.bf16.mxu1 %v7432_v49  ;;  %v234_v12 = vcombine.high %v232_v7, %v232_v7  ;;  %v242_v57 = vrot.slane %v27_v56, %v7760_v41  ;;  %v235_v58 = vcombine.high %v27_v56, %v27_v56  ;;  %v7508_v56 = vld [vmem:[%s9313_s1 + $0xd00] sm:$0xff]  }
 0x15b   :  { %v7473_v59 = vld [vmem:[%s9313_s1 + $0xc40] sm:$0xff]  }
 0x15c   :  { %v8775_v1 = vadd.f32 %v6543_v55, %v4826_v62  ;;  %6824 = vmatpush3.bf16.msra.mxu0 %v7433_v50  ;;  %v427_v16 = vpack.c.bf16 %v234_v12, %v234_v12  ;;  %v7467_v50 = vld [vmem:[%s9313_s1 + $0xbb0] sm:$0xff]   ;;  %v7470_v55 = vld [vmem:[%s9313_s1 + $0xb38] sm:$0xff]   ;;  %v249_v62 = vrot.slane %v235_v58, %v7760_v41  ;;  %v428_v0 = vpack.c.bf16 %v242_v57, %v242_v57 }
 0x15d   :  { %6846 = vmatpush3.bf16.msra.mxu1 %v7434_v53  ;;  %6825 = vmatprep.subr.bf16.mxu0 %v7435_v60  ;;  %v7469_v53 = vld [vmem:[%s9313_s1 + $0xbf8] sm:$0xff]   ;;  %v7482_v12 = vld [vmem:[%s9313_s1 + $0xcd0] sm:$0xff]  }
 0x15e   :  { %6847 = vmatprep.subr.bf16.mxu1 %v7436_v61  ;;  %5423 = vmatprep.mubr.bf16.mxu1 %v427_v16  ;;  %v7471_v60 = vld [vmem:[%s9313_s1 + $0xbb8] sm:$0xff]   ;;  %v250_v61 = vcombine.high %v242_v57, %v242_v57  ;;  %v251_v3 = vcombine.high %v249_v62, %v249_v62 }
 0x15f   :  { %v7486_v16 = vld [vmem:[%s9313_s1 + $0xcd8] sm:$0xff]  }
 0x160   :  { %6826 = vmatpush3.bf16.msra.mxu0 %v7437_v63  ;;  %v7474_v63 = vld [vmem:[%s9313_s1 + $0xcc0] sm:$0xff]   ;;  %v431_v7 = vpack.c.bf16 %v251_v3, %v251_v3  ;;  %v7515_v3 = vld [vmem:[%s9313_s1 + $0xdd0] sm:$0xff]  }
 0x161   :  { %6848 = vmatpush3.bf16.msra.mxu1 %v7438_v2  ;;  %6855 = vmatprep.subr.bf16.mxu0 %v7440_v5  ;;  %v429_v2 = vpack.c.bf16 %v250_v61, %v250_v61  ;;  %v430_v5 = vpack.c.bf16 %v249_v62, %v249_v62  ;;  %v7510_v61 = vld [vmem:[%s9313_s1 + $0xd48] sm:$0xff]  }
 0x162   :  { %6877 = vmatprep.subr.bf16.mxu1 %v7441_v8  ;;  %v7478_v8 = vld [vmem:[%s9313_s1 + $0xcc8] sm:$0xff]  }
 0x163   :  { %5384 = vmatmul.mubr.bf16.vlgmr.msra.gmra.mrb[40].mxu0 %v424_v9  ;;  %v7479_v9 = vld [vmem:[%s9313_s1 + $0xc08] sm:$0xff]  }
 0x164   :  { %6856 = vmatpush3.bf16.msra.mxu0 %v7442_v10  ;;  %5424 = vmatmul.mubr.bf16.vlgmr.msra.gmra.mrb[40].mxu1 %v426_v14  ;;  %v7480_v10 = vld [vmem:[%s9313_s1 + $0xc88] sm:$0xff]   ;;  %v7484_v14 = vld [vmem:[%s9313_s1 + $0xc90] sm:$0xff]  }
 0x165   :  { %6857 = vmatprep.subr.bf16.mxu0 %v7444_v15  ;;  %6878 = vmatpush3.bf16.msra.mxu1 %v7443_v13  ;;  %v7483_v13 = vld [vmem:[%s9313_s1 + $0xc10] sm:$0xff]   ;;  %v7485_v15 = vld [vmem:[%s9313_s1 + $0xc58] sm:$0xff]  }
 0x166   :  { %6879 = vmatprep.subr.bf16.mxu1 %v7445_v17  ;;  %5463 = vmatprep.mubr.bf16.mxu0 %v429_v2  ;;  %v7487_v17 = vld [vmem:[%s9313_s1 + $0xc18] sm:$0xff]   ;;  %v7514_v2 = vld [vmem:[%s9313_s1 + $0xd50] sm:$0xff]  }
 0x167   :  { %5503 = vmatprep.mubr.bf16.mxu1 %v431_v7  ;;  %v7519_v7 = vld [vmem:[%s9313_s1 + $0xdd8] sm:$0xff]  }
 0x168   :  { %6858 = vmatpush3.bf16.msra.mxu0 %v7446_v18  ;;  %v7488_v18 = vld [vmem:[%s9313_s1 + $0xc98] sm:$0xff]  }
 0x169   :  { %6859 = vmatprep.subr.bf16.mxu0 %v7448_v20  ;;  %6880 = vmatpush3.bf16.msra.mxu1 %v7447_v19  ;;  %v7489_v19 = vld [vmem:[%s9313_s1 + $0xc60] sm:$0xff]  }
 0x16a   :  { %6881 = vmatprep.subr.bf16.mxu1 %v7449_v21  ;;  %v7490_v20 = vld [vmem:[%s9313_s1 + $0xce0] sm:$0xff]  }
 0x16b   :  { %v7491_v21 = vld [vmem:[%s9313_s1 + $0xc20] sm:$0xff]  }
 0x16c   :  { %6860 = vmatpush3.bf16.msra.mxu0 %v7450_v22  ;;  %v7492_v22 = vld [vmem:[%s9313_s1 + $0xca0] sm:$0xff]  }
 0x16d   :  { %6861 = vmatprep.subr.bf16.mxu0 %v7452_v24  ;;  %6882 = vmatpush3.bf16.msra.mxu1 %v7451_v23  ;;  %v7493_v23 = vld [vmem:[%s9313_s1 + $0xc68] sm:$0xff]  }
 0x16e   :  { %6883 = vmatprep.subr.bf16.mxu1 %v7453_v25  ;;  %v7494_v24 = vld [vmem:[%s9313_s1 + $0xce8] sm:$0xff]  }
 0x16f   :  { %v7495_v25 = vld [vmem:[%s9313_s1 + $0xc28] sm:$0xff]  }
 0x170   :  { %6862 = vmatpush3.bf16.msra.mxu0 %v7454_v26  ;;  %v7496_v26 = vld [vmem:[%s9313_s1 + $0xca8] sm:$0xff]  }
 0x171   :  { %6863 = vmatprep.subr.bf16.mxu0 %v7456_v28  ;;  %6884 = vmatpush3.bf16.msra.mxu1 %v7455_v27 }
 0x172   :  { %6885 = vmatprep.subr.bf16.mxu1 %v7457_v29  ;;  %v7497_v29 = vld [vmem:[%s9313_s1 + $0xc70] sm:$0xff]  }
 0x174   :  { %6864 = vmatpush3.bf16.msra.mxu0 %v7458_v30  ;;  %v7498_v30 = vld [vmem:[%s9313_s1 + $0xcf0] sm:$0xff]  }
 0x175   :  { %6865 = vmatprep.subr.bf16.mxu0 %v7460_v32  ;;  %6886 = vmatpush3.bf16.msra.mxu1 %v7459_v31 }
 0x176   :  { %v6563_v37 = vpop.f32.mrb[16].mxu0  ;;  %6887 = vmatprep.subr.bf16.mxu1 %v7461_v33 }
 0x177   :  { %v6585_v38 = vpop.f32.mrb[16].mxu1  ;;  %v6564_v42 = vpop.f32.mrb[17].mxu0 }
 0x178   :  { %v6586_v43 = vpop.f32.mrb[17].mxu1  ;;  %v6565_v44 = vadd.f32 %v6564_v42, %v6563_v37  ;;  %v6566_v46 = vpop.f32.mrb[18].mxu0  ;;  %6866 = vmatpush3.bf16.msra.mxu0 %v7462_v34 }
 0x179   :  { %v6587_v45 = vadd.f32 %v6586_v43, %v6585_v38  ;;  %v6588_v47 = vpop.f32.mrb[18].mxu1  ;;  %v6567_v48 = vpop.f32.mrb[19].mxu0  ;;  %6867 = vmatprep.subr.bf16.mxu0 %v7464_v36  ;;  %6888 = vmatpush3.bf16.msra.mxu1 %v7463_v35  ;;  %v7500_v43 = vld [vmem:[%s9313_s1 + $0xcb0] sm:$0xff]   ;;  %v7503_v46 = vld [vmem:[%s9313_s1 + $0xc38] sm:$0xff]  }
 0x17a   :  { %v6589_v49 = vpop.f32.mrb[19].mxu1  ;;  %v4906_v52 = vadd.f32 %v6565_v44, %v8775_v1  ;;  %6889 = vmatprep.subr.bf16.mxu1 %v7465_v39  ;;  %v7475_v1 = vld [vmem:[%s9313_s1 + $0xc00] sm:$0xff]   ;;  %v7499_v39 = vld [vmem:[%s9313_s1 + $0xc30] sm:$0xff]  }
 0x17b   :  { %v28_v47 = vld [vmem:[%s9312_s0 + $0x60] sm:$0xff] }
 0x17c   :  { %v8873_v54 = vadd.f32 %v6587_v45, %v4906_v52  ;;  %6868 = vmatpush3.bf16.msra.mxu0 %v7466_v40  ;;  %v7501_v40 = vld [vmem:[%s9313_s1 + $0xc78] sm:$0xff]   ;;  %v259_v48 = vrot.slane %v28_v47, %v7760_v41  ;;  %v252_v49 = vcombine.high %v28_v47, %v28_v47  ;;  %v7541_v47 = vld [vmem:[%s9313_s1 + $0xe00] sm:$0xff]  }
 0x17d   :  { %6869 = vmatprep.subr.bf16.mxu0 %v7468_v51  ;;  %6890 = vmatpush3.bf16.msra.mxu1 %v7467_v50  ;;  %v7502_v45 = vld [vmem:[%s9313_s1 + $0xcf8] sm:$0xff]   ;;  %v7506_v50 = vld [vmem:[%s9313_s1 + $0xd40] sm:$0xff]  }
 0x17e   :  { %6891 = vmatprep.subr.bf16.mxu1 %v7469_v53  ;;  %v7504_v51 = vld [vmem:[%s9313_s1 + $0xcb8] sm:$0xff]   ;;  %v267_v52 = vcombine.high %v259_v48, %v259_v48  ;;  %v266_v53 = vrot.slane %v252_v49, %v7760_v41 }
 0x180   :  { %6870 = vmatpush3.bf16.msra.mxu0 %v7470_v55  ;;  %v432_v55 = vpack.c.bf16 %v259_v48, %v259_v48  ;;  %v433_v57 = vpack.c.bf16 %v267_v52, %v267_v52  ;;  %v268_v58 = vcombine.high %v266_v53, %v266_v53  ;;  %v7543_v52 = vld [vmem:[%s9313_s1 + $0xe48] sm:$0xff]  }
 0x181   :  { %6899 = vmatprep.subr.bf16.mxu0 %v7473_v59  ;;  %6892 = vmatpush3.bf16.msra.mxu1 %v7471_v60  ;;  %v7509_v59 = vld [vmem:[%s9313_s1 + $0xd80] sm:$0xff]   ;;  %v434_v60 = vpack.c.bf16 %v266_v53, %v266_v53 }
 0x182   :  { %6921 = vmatprep.subr.bf16.mxu1 %v7474_v63  ;;  %v435_v62 = vpack.c.bf16 %v268_v58, %v268_v58  ;;  %v7511_v63 = vld [vmem:[%s9313_s1 + $0xdc8] sm:$0xff]   ;;  %v7548_v58 = vld [vmem:[%s9313_s1 + $0xed0] sm:$0xff]  }
 0x183   :  { %5464 = vmatmul.mubr.bf16.vlgmr.msra.gmra.mrb[44].mxu0 %v428_v0  ;;  %v7512_v0 = vld [vmem:[%s9313_s1 + $0xd08] sm:$0xff]  }
 0x184   :  { %6900 = vmatpush3.bf16.msra.mxu0 %v7475_v1  ;;  %5504 = vmatmul.mubr.bf16.vlgmr.msra.gmra.mrb[44].mxu1 %v430_v5  ;;  %v7513_v1 = vld [vmem:[%s9313_s1 + $0xd88] sm:$0xff]   ;;  %v7517_v5 = vld [vmem:[%s9313_s1 + $0xd90] sm:$0xff]  }
 0x185   :  { %6901 = vmatprep.subr.bf16.mxu0 %v7477_v6  ;;  %6922 = vmatpush3.bf16.msra.mxu1 %v7476_v4  ;;  %v7516_v4 = vld [vmem:[%s9313_s1 + $0xd10] sm:$0xff]   ;;  %v7518_v6 = vld [vmem:[%s9313_s1 + $0xd58] sm:$0xff]  }
 0x186   :  { %6923 = vmatprep.subr.bf16.mxu1 %v7478_v8  ;;  %5543 = vmatprep.mubr.bf16.mxu0 %v433_v57  ;;  %v7520_v8 = vld [vmem:[%s9313_s1 + $0xd18] sm:$0xff]   ;;  %v7547_v57 = vld [vmem:[%s9313_s1 + $0xe50] sm:$0xff]  }
 0x187   :  { %5583 = vmatprep.mubr.bf16.mxu1 %v435_v62  ;;  %v7552_v62 = vld [vmem:[%s9313_s1 + $0xed8] sm:$0xff]  }
 0x188   :  { %6902 = vmatpush3.bf16.msra.mxu0 %v7479_v9  ;;  %v7521_v9 = vld [vmem:[%s9313_s1 + $0xd98] sm:$0xff]  }
 0x189   :  { %6903 = vmatprep.subr.bf16.mxu0 %v7481_v11  ;;  %6924 = vmatpush3.bf16.msra.mxu1 %v7480_v10  ;;  %v7522_v10 = vld [vmem:[%s9313_s1 + $0xd60] sm:$0xff]  }
 0x18a   :  { %6925 = vmatprep.subr.bf16.mxu1 %v7482_v12  ;;  %v7523_v11 = vld [vmem:[%s9313_s1 + $0xde0] sm:$0xff]  }
 0x18b   :  { %v7524_v12 = vld [vmem:[%s9313_s1 + $0xd20] sm:$0xff]  }
 0x18c   :  { %6904 = vmatpush3.bf16.msra.mxu0 %v7483_v13  ;;  %v7525_v13 = vld [vmem:[%s9313_s1 + $0xda0] sm:$0xff]  }
 0x18d   :  { %6905 = vmatprep.subr.bf16.mxu0 %v7485_v15  ;;  %6926 = vmatpush3.bf16.msra.mxu1 %v7484_v14  ;;  %v7526_v14 = vld [vmem:[%s9313_s1 + $0xd68] sm:$0xff]  }
 0x18e   :  { %6927 = vmatprep.subr.bf16.mxu1 %v7486_v16  ;;  %v7527_v15 = vld [vmem:[%s9313_s1 + $0xde8] sm:$0xff]  }
 0x18f   :  { %v7528_v16 = vld [vmem:[%s9313_s1 + $0xd28] sm:$0xff]  }
 0x190   :  { %6906 = vmatpush3.bf16.msra.mxu0 %v7487_v17 }
 0x191   :  { %6907 = vmatprep.subr.bf16.mxu0 %v7489_v19  ;;  %6928 = vmatpush3.bf16.msra.mxu1 %v7488_v18  ;;  %v7529_v19 = vld [vmem:[%s9313_s1 + $0xda8] sm:$0xff]  }
 0x192   :  { %6929 = vmatprep.subr.bf16.mxu1 %v7490_v20  ;;  %v7530_v20 = vld [vmem:[%s9313_s1 + $0xd70] sm:$0xff]  }
 0x194   :  { %6908 = vmatpush3.bf16.msra.mxu0 %v7491_v21 }
 0x195   :  { %6909 = vmatprep.subr.bf16.mxu0 %v7493_v23  ;;  %6930 = vmatpush3.bf16.msra.mxu1 %v7492_v22 }
 0x196   :  { %v6607_v27 = vpop.f32.mrb[20].mxu0  ;;  %6931 = vmatprep.subr.bf16.mxu1 %v7494_v24 }
 0x197   :  { %v6629_v28 = vpop.f32.mrb[20].mxu1  ;;  %v6608_v31 = vpop.f32.mrb[21].mxu0 }
 0x198   :  { %v6630_v32 = vpop.f32.mrb[21].mxu1  ;;  %v6609_v33 = vadd.f32 %v6608_v31, %v6607_v27  ;;  %v6610_v35 = vpop.f32.mrb[22].mxu0  ;;  %6910 = vmatpush3.bf16.msra.mxu0 %v7495_v25 }
 0x199   :  { %v6631_v34 = vadd.f32 %v6630_v32, %v6629_v28  ;;  %v6632_v36 = vpop.f32.mrb[22].mxu1  ;;  %v6611_v37 = vpop.f32.mrb[23].mxu0  ;;  %6911 = vmatprep.subr.bf16.mxu0 %v7497_v29  ;;  %6932 = vmatpush3.bf16.msra.mxu1 %v7496_v26  ;;  %v7531_v29 = vld [vmem:[%s9313_s1 + $0xdf0] sm:$0xff]   ;;  %v7534_v32 = vld [vmem:[%s9313_s1 + $0xd78] sm:$0xff]  }
 0x19a   :  { %v6633_v38 = vpop.f32.mrb[23].mxu1  ;;  %v4986_v42 = vadd.f32 %v6609_v33, %v8873_v54  ;;  %6933 = vmatprep.subr.bf16.mxu1 %v7498_v30  ;;  %v7507_v54 = vld [vmem:[%s9313_s1 + $0xdc0] sm:$0xff]   ;;  %v7532_v30 = vld [vmem:[%s9313_s1 + $0xd30] sm:$0xff]   ;;  %v7535_v35 = vld [vmem:[%s9313_s1 + $0xdf8] sm:$0xff]  }
 0x19b   :  { %v7536_v36 = vld [vmem:[%s9313_s1 + $0xd38] sm:$0xff]   ;;  %v29_v37 = vld [vmem:[%s9312_s0 + $0x68] sm:$0xff] }
 0x19c   :  { %v8974_v44 = vadd.f32 %v6631_v34, %v4986_v42  ;;  %6912 = vmatpush3.bf16.msra.mxu0 %v7499_v39  ;;  %v7533_v34 = vld [vmem:[%s9313_s1 + $0xdb0] sm:$0xff]   ;;  %v276_v38 = vrot.slane %v29_v37, %v7760_v41  ;;  %v269_v39 = vcombine.high %v29_v37, %v29_v37  ;;  %v7537_v42 = vld [vmem:[%s9313_s1 + $0xdb8] sm:$0xff]   ;;  %v7574_v37 = vld [vmem:[%s9313_s1 + $0xf00] sm:$0xff]  }
 0x19d   :  { %6913 = vmatprep.subr.bf16.mxu0 %v7501_v40  ;;  %6934 = vmatpush3.bf16.msra.mxu1 %v7500_v43  ;;  %v7539_v40 = vld [vmem:[%s9313_s1 + $0xe40] sm:$0xff]  }
 0x19e   :  { %6935 = vmatprep.subr.bf16.mxu1 %v7502_v45  ;;  %v284_v43 = vcombine.high %v276_v38, %v276_v38  ;;  %v7540_v45 = vld [vmem:[%s9313_s1 + $0xec0] sm:$0xff]  }
 0x1a0   :  { %6914 = vmatpush3.bf16.msra.mxu0 %v7503_v46  ;;  %v436_v46 = vpack.c.bf16 %v276_v38, %v276_v38  ;;  %v437_v48 = vpack.c.bf16 %v284_v43, %v284_v43  ;;  %v7576_v43 = vld [vmem:[%s9313_s1 + $0xf48] sm:$0xff]  }
 0x1a1   :  { %6943 = vmatprep.subr.bf16.mxu0 %v7506_v50  ;;  %6936 = vmatpush3.bf16.msra.mxu1 %v7504_v51  ;;  %v7542_v50 = vld [vmem:[%s9313_s1 + $0xe80] sm:$0xff]  }
 0x1a2   :  { %6965 = vmatprep.subr.bf16.mxu1 %v7507_v54  ;;  %v7544_v54 = vld [vmem:[%s9313_s1 + $0xec8] sm:$0xff]  }
 0x1a3   :  { %5544 = vmatmul.mubr.bf16.vlgmr.msra.gmra.mrb[48].mxu0 %v432_v55  ;;  %v7545_v55 = vld [vmem:[%s9313_s1 + $0xe08] sm:$0xff]  }
 0x1a4   :  { %6944 = vmatpush3.bf16.msra.mxu0 %v7508_v56  ;;  %5584 = vmatmul.mubr.bf16.vlgmr.msra.gmra.mrb[48].mxu1 %v434_v60  ;;  %v7546_v56 = vld [vmem:[%s9313_s1 + $0xe88] sm:$0xff]   ;;  %v7550_v60 = vld [vmem:[%s9313_s1 + $0xe90] sm:$0xff]  }
 0x1a5   :  { %6945 = vmatprep.subr.bf16.mxu0 %v7510_v61  ;;  %6966 = vmatpush3.bf16.msra.mxu1 %v7509_v59  ;;  %v7549_v59 = vld [vmem:[%s9313_s1 + $0xe10] sm:$0xff]   ;;  %v7551_v61 = vld [vmem:[%s9313_s1 + $0xe58] sm:$0xff]  }
 0x1a6   :  { %6967 = vmatprep.subr.bf16.mxu1 %v7511_v63  ;;  %5623 = vmatprep.mubr.bf16.mxu0 %v437_v48  ;;  %v7553_v63 = vld [vmem:[%s9313_s1 + $0xe18] sm:$0xff]   ;;  %v7580_v48 = vld [vmem:[%s9313_s1 + $0xf50] sm:$0xff]  }
 0x1a8   :  { %6946 = vmatpush3.bf16.msra.mxu0 %v7512_v0  ;;  %v7554_v0 = vld [vmem:[%s9313_s1 + $0xe98] sm:$0xff]  }
 0x1a9   :  { %6947 = vmatprep.subr.bf16.mxu0 %v7514_v2  ;;  %6968 = vmatpush3.bf16.msra.mxu1 %v7513_v1  ;;  %v7555_v1 = vld [vmem:[%s9313_s1 + $0xe60] sm:$0xff]  }
 0x1aa   :  { %6969 = vmatprep.subr.bf16.mxu1 %v7515_v3  ;;  %v7556_v2 = vld [vmem:[%s9313_s1 + $0xee0] sm:$0xff]  }
 0x1ab   :  { %v7557_v3 = vld [vmem:[%s9313_s1 + $0xe20] sm:$0xff]  }
 0x1ac   :  { %6948 = vmatpush3.bf16.msra.mxu0 %v7516_v4  ;;  %v7558_v4 = vld [vmem:[%s9313_s1 + $0xea0] sm:$0xff]  }
 0x1ad   :  { %6949 = vmatprep.subr.bf16.mxu0 %v7518_v6  ;;  %6970 = vmatpush3.bf16.msra.mxu1 %v7517_v5  ;;  %v7559_v5 = vld [vmem:[%s9313_s1 + $0xe68] sm:$0xff]  }
 0x1ae   :  { %6971 = vmatprep.subr.bf16.mxu1 %v7519_v7  ;;  %v7560_v6 = vld [vmem:[%s9313_s1 + $0xee8] sm:$0xff]  }
 0x1b0   :  { %6950 = vmatpush3.bf16.msra.mxu0 %v7520_v8 }
 0x1b1   :  { %6951 = vmatprep.subr.bf16.mxu0 %v7522_v10  ;;  %6972 = vmatpush3.bf16.msra.mxu1 %v7521_v9  ;;  %v7561_v9 = vld [vmem:[%s9313_s1 + $0xe28] sm:$0xff]   ;;  %v7563_v10 = vld [vmem:[%s9313_s1 + $0xe70] sm:$0xff]  }
 0x1b2   :  { %6973 = vmatprep.subr.bf16.mxu1 %v7523_v11 }
 0x1b4   :  { %6952 = vmatpush3.bf16.msra.mxu0 %v7524_v12 }
 0x1b5   :  { %6953 = vmatprep.subr.bf16.mxu0 %v7526_v14  ;;  %6974 = vmatpush3.bf16.msra.mxu1 %v7525_v13 }
 0x1b6   :  { %v6651_v17 = vpop.f32.mrb[24].mxu0  ;;  %6975 = vmatprep.subr.bf16.mxu1 %v7527_v15 }
 0x1b7   :  { %v6673_v18 = vpop.f32.mrb[24].mxu1  ;;  %v6652_v21 = vpop.f32.mrb[25].mxu0 }
 0x1b8   :  { %v6674_v22 = vpop.f32.mrb[25].mxu1  ;;  %v6653_v23 = vadd.f32 %v6652_v21, %v6651_v17  ;;  %v6654_v25 = vpop.f32.mrb[26].mxu0  ;;  %6954 = vmatpush3.bf16.msra.mxu0 %v7528_v16  ;;  %v7562_v17 = vld [vmem:[%s9313_s1 + $0xea8] sm:$0xff]  }
 0x1b9   :  { %v6675_v24 = vadd.f32 %v6674_v22, %v6673_v18  ;;  %v6676_v26 = vpop.f32.mrb[26].mxu1  ;;  %v6655_v27 = vpop.f32.mrb[27].mxu0  ;;  %6955 = vmatprep.subr.bf16.mxu0 %v7530_v20  ;;  %6976 = vmatpush3.bf16.msra.mxu1 %v7529_v19  ;;  %v7564_v20 = vld [vmem:[%s9313_s1 + $0xef0] sm:$0xff]  }
 0x1ba   :  { %v6677_v28 = vpop.f32.mrb[27].mxu1  ;;  %v5066_v31 = vadd.f32 %v6653_v23, %v8974_v44  ;;  %6977 = vmatprep.subr.bf16.mxu1 %v7531_v29  ;;  %v283_v44 = vrot.slane %v269_v39, %v7760_v41  ;;  %v7565_v22 = vld [vmem:[%s9313_s1 + $0xe30] sm:$0xff]   ;;  %v7568_v26 = vld [vmem:[%s9313_s1 + $0xef8] sm:$0xff]  }
 0x1bb   :  { %v7566_v25 = vld [vmem:[%s9313_s1 + $0xeb0] sm:$0xff]   ;;  %v7569_v27 = vld [vmem:[%s9313_s1 + $0xe38] sm:$0xff]  }
 0x1bc   :  { %v9075_v33 = vadd.f32 %v6675_v24, %v5066_v31  ;;  %6956 = vmatpush3.bf16.msra.mxu0 %v7532_v30  ;;  %v285_v49 = vcombine.high %v283_v44, %v283_v44  ;;  %v438_v51 = vpack.c.bf16 %v283_v44, %v283_v44  ;;  %v7567_v24 = vld [vmem:[%s9313_s1 + $0xe78] sm:$0xff]   ;;  %v30_v28 = vld [vmem:[%s9312_s0 + $0x70] sm:$0xff]  ;;  %v7572_v31 = vld [vmem:[%s9313_s1 + $0xf40] sm:$0xff]  }
 0x1bd   :  { %6957 = vmatprep.subr.bf16.mxu0 %v7534_v32  ;;  %6978 = vmatpush3.bf16.msra.mxu1 %v7533_v34  ;;  %v293_v29 = vrot.slane %v30_v28, %v7760_v41  ;;  %v286_v30 = vcombine.high %v30_v28, %v30_v28  ;;  %v7570_v32 = vld [vmem:[%s9313_s1 + $0xeb8] sm:$0xff]  }
 0x1be   :  { %6979 = vmatprep.subr.bf16.mxu1 %v7535_v35  ;;  %v439_v53 = vpack.c.bf16 %v285_v49, %v285_v49  ;;  %v7573_v35 = vld [vmem:[%s9313_s1 + $0xfc0] sm:$0xff]   ;;  %v7581_v49 = vld [vmem:[%s9313_s1 + $0xfd0] sm:$0xff]  }
 0x1bf   :  { %v300_v34 = vrot.slane %v286_v30, %v7760_v41 }
 0x1c0   :  { %6958 = vmatpush3.bf16.msra.mxu0 %v7536_v36  ;;  %5663 = vmatprep.mubr.bf16.mxu1 %v439_v53  ;;  %v440_v36 = vpack.c.bf16 %v293_v29, %v293_v29  ;;  %v7585_v53 = vld [vmem:[%s9313_s1 + $0xfd8] sm:$0xff]  }
 0x1c1   :  { %6987 = vmatprep.subr.bf16.mxu0 %v7539_v40  ;;  %6980 = vmatpush3.bf16.msra.mxu1 %v7537_v42  ;;  %v302_v39 = vcombine.high %v300_v34, %v300_v34  ;;  %v7575_v40 = vld [vmem:[%s9313_s1 + $0xf80] sm:$0xff]   ;;  %v442_v42 = vpack.c.bf16 %v300_v34, %v300_v34 }
 0x1c2   :  { %7009 = vmatprep.subr.bf16.mxu1 %v7540_v45  ;;  %v7577_v45 = vld [vmem:[%s9313_s1 + $0xfc8] sm:$0xff]  }
 0x1c3   :  { %5624 = vmatmul.mubr.bf16.vlgmr.msra.gmra.mrb[52].mxu0 %v436_v46  ;;  %v443_v44 = vpack.c.bf16 %v302_v39, %v302_v39  ;;  %v7578_v46 = vld [vmem:[%s9313_s1 + $0xf08] sm:$0xff]  }
 0x1c4   :  { %6988 = vmatpush3.bf16.msra.mxu0 %v7541_v47  ;;  %5664 = vmatmul.mubr.bf16.vlgmr.msra.gmra.mrb[52].mxu1 %v438_v51  ;;  %v7579_v47 = vld [vmem:[%s9313_s1 + $0xf88] sm:$0xff]   ;;  %v7583_v51 = vld [vmem:[%s9313_s1 + $0xf90] sm:$0xff]  }
 0x1c5   :  { %6989 = vmatprep.subr.bf16.mxu0 %v7543_v52  ;;  %7010 = vmatpush3.bf16.msra.mxu1 %v7542_v50  ;;  %v7582_v50 = vld [vmem:[%s9313_s1 + $0xf10] sm:$0xff]   ;;  %v7584_v52 = vld [vmem:[%s9313_s1 + $0xf58] sm:$0xff]  }
 0x1c6   :  { %7011 = vmatprep.subr.bf16.mxu1 %v7544_v54  ;;  %5743 = vmatprep.mubr.bf16.mxu1 %v443_v44  ;;  %v7586_v54 = vld [vmem:[%s9313_s1 + $0xf18] sm:$0xff]  }
 0x1c8   :  { %6990 = vmatpush3.bf16.msra.mxu0 %v7545_v55  ;;  %v7587_v55 = vld [vmem:[%s9313_s1 + $0xf98] sm:$0xff]  }
 0x1c9   :  { %6991 = vmatprep.subr.bf16.mxu0 %v7547_v57  ;;  %7012 = vmatpush3.bf16.msra.mxu1 %v7546_v56  ;;  %v7588_v56 = vld [vmem:[%s9313_s1 + $0xf60] sm:$0xff]  }
 0x1ca   :  { %7013 = vmatprep.subr.bf16.mxu1 %v7548_v58  ;;  %v7589_v57 = vld [vmem:[%s9313_s1 + $0xfe0] sm:$0xff]  }
 0x1cb   :  { %v7590_v58 = vld [vmem:[%s9313_s1 + $0xf20] sm:$0xff]  }
 0x1cc   :  { %6992 = vmatpush3.bf16.msra.mxu0 %v7549_v59  ;;  %v7591_v59 = vld [vmem:[%s9313_s1 + $0xfa0] sm:$0xff]  }
 0x1cd   :  { %6993 = vmatprep.subr.bf16.mxu0 %v7551_v61  ;;  %7014 = vmatpush3.bf16.msra.mxu1 %v7550_v60  ;;  %v7592_v60 = vld [vmem:[%s9313_s1 + $0xf68] sm:$0xff]  }
 0x1ce   :  { %7015 = vmatprep.subr.bf16.mxu1 %v7552_v62 }
 0x1d0   :  { %6994 = vmatpush3.bf16.msra.mxu0 %v7553_v63  ;;  %v7593_v63 = vld [vmem:[%s9313_s1 + $0xfe8] sm:$0xff]  }
 0x1d1   :  { %6995 = vmatprep.subr.bf16.mxu0 %v7555_v1  ;;  %7016 = vmatpush3.bf16.msra.mxu1 %v7554_v0  ;;  %v7594_v0 = vld [vmem:[%s9313_s1 + $0xf28] sm:$0xff]  }
 0x1d2   :  { %7017 = vmatprep.subr.bf16.mxu1 %v7556_v2 }
 0x1d4   :  { %6996 = vmatpush3.bf16.msra.mxu0 %v7557_v3 }
 0x1d5   :  { %6997 = vmatprep.subr.bf16.mxu0 %v7559_v5  ;;  %7018 = vmatpush3.bf16.msra.mxu1 %v7558_v4 }
 0x1d6   :  { %v6695_v7 = vpop.f32.mrb[28].mxu0  ;;  %7019 = vmatprep.subr.bf16.mxu1 %v7560_v6 }
 0x1d7   :  { %v6717_v8 = vpop.f32.mrb[28].mxu1  ;;  %v6696_v11 = vpop.f32.mrb[29].mxu0 }
 0x1d8   :  { %v6718_v12 = vpop.f32.mrb[29].mxu1  ;;  %v6697_v13 = vadd.f32 %v6696_v11, %v6695_v7  ;;  %v6698_v15 = vpop.f32.mrb[30].mxu0  ;;  %6998 = vmatpush3.bf16.msra.mxu0 %v7561_v9  ;;  %v7595_v7 = vld [vmem:[%s9313_s1 + $0xfa8] sm:$0xff]  }
 0x1d9   :  { %v6719_v14 = vadd.f32 %v6718_v12, %v6717_v8  ;;  %v6720_v16 = vpop.f32.mrb[30].mxu1  ;;  %v6699_v18 = vpop.f32.mrb[31].mxu0  ;;  %6999 = vmatprep.subr.bf16.mxu0 %v7563_v10  ;;  %7020 = vmatpush3.bf16.msra.mxu1 %v7562_v17  ;;  %v7596_v10 = vld [vmem:[%s9313_s1 + $0xf70] sm:$0xff]   ;;  %v7600_v15 = vld [vmem:[%s9313_s1 + $0xf78] sm:$0xff]  }
 0x1da   :  { %v6721_v19 = vpop.f32.mrb[31].mxu1  ;;  %v5146_v21 = vadd.f32 %v6697_v13, %v9075_v33  ;;  %7021 = vmatprep.subr.bf16.mxu1 %v7564_v20  ;;  %v301_v33 = vcombine.high %v293_v29, %v293_v29  ;;  %v7597_v12 = vld [vmem:[%s9313_s1 + $0xff0] sm:$0xff]   ;;  %v7601_v17 = vld [vmem:[%s9313_s1 + $0xff8] sm:$0xff]  }
 0x1db   :  { %v7599_v16 = vld [vmem:[%s9313_s1 + $0xfb0] sm:$0xff]   ;;  %v7602_v18 = vld [vmem:[%s9313_s1 + $0xf38] sm:$0xff]  }
 0x1dc   :  { %v9176_v23 = vadd.f32 %v6719_v14, %v5146_v21  ;;  %7000 = vmatpush3.bf16.msra.mxu0 %v7565_v22  ;;  %v441_v38 = vpack.c.bf16 %v301_v33, %v301_v33  ;;  %v7598_v14 = vld [vmem:[%s9313_s1 + $0xf30] sm:$0xff]   ;;  %v31_v19 = vld [vmem:[%s9312_s0 + $0x78] sm:$0xff] }
 0x1dd   :  { %7001 = vmatprep.subr.bf16.mxu0 %v7567_v24  ;;  %7022 = vmatpush3.bf16.msra.mxu1 %v7566_v25 }
 0x1de   :  { %7023 = vmatprep.subr.bf16.mxu1 %v7568_v26  ;;  %5703 = vmatprep.mubr.bf16.mxu0 %v441_v38 }
 0x1e0   :  { %7002 = vmatpush3.bf16.msra.mxu0 %v7569_v27 }
 0x1e1   :  { %7031 = vmatprep.subr.bf16.mxu0 %v7572_v31  ;;  %7024 = vmatpush3.bf16.msra.mxu1 %v7570_v32 }
 0x1e2   :  { %7053 = vmatprep.subr.bf16.mxu1 %v7573_v35 }
 0x1e3   :  { %5704 = vmatmul.mubr.bf16.vlgmr.msra.gmra.mrb[56].mxu0 %v440_v36 }
 0x1e4   :  { %7032 = vmatpush3.bf16.msra.mxu0 %v7574_v37  ;;  %5744 = vmatmul.mubr.bf16.vlgmr.msra.gmra.mrb[56].mxu1 %v442_v42 }
 0x1e5   :  { %7033 = vmatprep.subr.bf16.mxu0 %v7576_v43  ;;  %7054 = vmatpush3.bf16.msra.mxu1 %v7575_v40 }
 0x1e6   :  { %7055 = vmatprep.subr.bf16.mxu1 %v7577_v45 }
 0x1e8   :  { %7034 = vmatpush3.bf16.msra.mxu0 %v7578_v46 }
 0x1e9   :  { %7035 = vmatprep.subr.bf16.mxu0 %v7580_v48  ;;  %7056 = vmatpush3.bf16.msra.mxu1 %v7579_v47 }
 0x1ea   :  { %7057 = vmatprep.subr.bf16.mxu1 %v7581_v49 }
 0x1ec   :  { %7036 = vmatpush3.bf16.msra.mxu0 %v7582_v50 }
 0x1ed   :  { %7037 = vmatprep.subr.bf16.mxu0 %v7584_v52  ;;  %7058 = vmatpush3.bf16.msra.mxu1 %v7583_v51 }
 0x1ee   :  { %7059 = vmatprep.subr.bf16.mxu1 %v7585_v53 }
 0x1f0   :  { %7038 = vmatpush3.bf16.msra.mxu0 %v7586_v54 }
 0x1f1   :  { %7039 = vmatprep.subr.bf16.mxu0 %v7588_v56  ;;  %7060 = vmatpush3.bf16.msra.mxu1 %v7587_v55 }
 0x1f2   :  { %7061 = vmatprep.subr.bf16.mxu1 %v7589_v57 }
 0x1f4   :  { %7040 = vmatpush3.bf16.msra.mxu0 %v7590_v58 }
 0x1f5   :  { %7041 = vmatprep.subr.bf16.mxu0 %v7592_v60  ;;  %7062 = vmatpush3.bf16.msra.mxu1 %v7591_v59 }
 0x1f6   :  { %v6739_v61 = vpop.f32.mrb[32].mxu0  ;;  %7063 = vmatprep.subr.bf16.mxu1 %v7593_v63 }
 0x1f7   :  { %v6761_v62 = vpop.f32.mrb[32].mxu1  ;;  %v6740_v1 = vpop.f32.mrb[33].mxu0 }
 0x1f8   :  { %v6762_v2 = vpop.f32.mrb[33].mxu1  ;;  %v6741_v3 = vadd.f32 %v6740_v1, %v6739_v61  ;;  %v6742_v5 = vpop.f32.mrb[34].mxu0  ;;  %7042 = vmatpush3.bf16.msra.mxu0 %v7594_v0 }
 0x1f9   :  { %v6763_v4 = vadd.f32 %v6762_v2, %v6761_v62  ;;  %v6764_v6 = vpop.f32.mrb[34].mxu1  ;;  %v6743_v8 = vpop.f32.mrb[35].mxu0  ;;  %7043 = vmatprep.subr.bf16.mxu0 %v7596_v10  ;;  %7064 = vmatpush3.bf16.msra.mxu1 %v7595_v7 }
 0x1fa   :  { %v6765_v9 = vpop.f32.mrb[35].mxu1  ;;  %v5226_v11 = vadd.f32 %v6741_v3, %v9176_v23  ;;  %7065 = vmatprep.subr.bf16.mxu1 %v7597_v12 }
 0x1fc   :  { %v5266_v13 = vadd.f32 %v6763_v4, %v5226_v11  ;;  %7044 = vmatpush3.bf16.msra.mxu0 %v7598_v14 }
 0x1fd   :  { %8 = vsyncpa [#allocation3], 0  ;;  %7045 = vmatprep.subr.bf16.mxu0 %v7600_v15  ;;  %v310_v20 = vrot.slane %v31_v19, %v7760_v41  ;;  %v303_v21 = vcombine.high %v31_v19, %v31_v19  ;;  %7066 = vmatpush3.bf16.msra.mxu1 %v7599_v16  ;;  %v7603_v22 = vld [vmem:[%s9313_s1 + $0xfb8] sm:$0xff]   ;;  %vm5831_vm0 = vcmask 1041408   ;;  %s7634_s0 = smov [#allocation2]  }
 0x1fe   :  { %7067 = vmatprep.subr.bf16.mxu1 %v7601_v17  ;;  %s5850_s1 = sshll.u32 %s7634_s0, 4  ;;  %s5851_s1 = int_to_ptr.vmem [resolvable:$true] %s5850_s1 }
 0x1ff   :  { %v318_v23 = vcombine.high %v310_v20, %v310_v20  ;;  %v317_v24 = vrot.slane %v303_v21, %v7760_v41  ;;  %v444_v25 = vpack.c.bf16 %v310_v20, %v310_v20  ;;  %s7609_s24 = scalar_lea.vmem %s5851_s1, 32  ;;  %p7614_p1 = scmp.lt.s32.totalorder %s5851_s1, %s5851_s1 }
 0x200   :  { %7046 = vmatpush3.bf16.msra.mxu0 %v7602_v18  ;;  %p7610_p0 = scmp.ne.s32.totalorder %s5851_s1, %s7609_s24  ;;  %p7615_p2 = scmp.lt.s32.totalorder %s7609_s24, %s7609_s24 }
 0x201   :  { %v445_v26 = vpack.c.bf16 %v318_v23, %v318_v23  ;;  %v319_v27 = vcombine.high %v317_v24, %v317_v24  ;;  %7068 = vmatpush3.bf16.msra.mxu1 %v7603_v22  ;;  %v446_v28 = vpack.c.bf16 %v317_v24, %v317_v24 }
 0x202   :  { %p7616_p3 = por %p7615_p2, %p7614_p1 }
 0x203   :  { %5783 = vmatprep.mubr.bf16.mxu0 %v445_v26  ;;  %v447_v29 = vpack.c.bf16 %v319_v27, %v319_v27 }
 0x204   :  { %5784 = vmatmul.mubr.bf16.vlgmr.msra.gmra.mrb[60].mxu0 %v444_v25  ;;  %p7617_p4 = pnand %p7616_p3, %p7610_p0 }
 0x205   :  { %5823 = vmatprep.mubr.bf16.mxu1 %v447_v29 }
 0x206   :  { %5824 = vmatmul.mubr.bf16.vlgmr.msra.gmra.mrb[60].mxu1 %v446_v28 }
 0x216   :  { %v6783_v30 = vpop.f32.mrb[36].mxu0 }
 0x217   :  { %v6805_v31 = vpop.f32.mrb[36].mxu1  ;;  %v6784_v32 = vpop.f32.mrb[37].mxu0 }
 0x218   :  { %v6785_v33 = vadd.f32 %v6784_v32, %v6783_v30  ;;  %v6806_v34 = vpop.f32.mrb[37].mxu1  ;;  %v6786_v35 = vpop.f32.mrb[38].mxu0 }
 0x219   :  { %v6807_v36 = vadd.f32 %v6806_v34, %v6805_v31  ;;  %v6808_v37 = vpop.f32.mrb[38].mxu1  ;;  %v6787_v41 = vpop.f32.mrb[39].mxu0 }
 0x21a   :  { %v5306_v38 = vadd.f32 %v6785_v33, %v5266_v13  ;;  %v6809_v39 = vpop.f32.mrb[39].mxu1 }
 0x21c   :  { %v5346_v40 = vadd.f32 %v6807_v36, %v5306_v38 }
 0x236   :  { %v6827_v42 = vpop.f32.mrb[40].mxu0 }
 0x237   :  { %v6828_v43 = vpop.f32.mrb[41].mxu0  ;;  %v6849_v44 = vpop.f32.mrb[40].mxu1 }
 0x238   :  { %v6829_v45 = vadd.f32 %v6828_v43, %v6827_v42  ;;  %v6830_v46 = vpop.f32.mrb[42].mxu0  ;;  %v6850_v47 = vpop.f32.mrb[41].mxu1 }
 0x239   :  { %v6831_v48 = vpop.f32.mrb[43].mxu0  ;;  %v6851_v50 = vadd.f32 %v6850_v47, %v6849_v44  ;;  %v6852_v51 = vpop.f32.mrb[42].mxu1 }
 0x23a   :  { %v5386_v49 = vadd.f32 %v6829_v45, %v5346_v40  ;;  %v6853_v52 = vpop.f32.mrb[43].mxu1 }
 0x23c   :  { %v5426_v53 = vadd.f32 %v6851_v50, %v5386_v49 }
 0x256   :  { %v6871_v54 = vpop.f32.mrb[44].mxu0 }
 0x257   :  { %v6872_v55 = vpop.f32.mrb[45].mxu0  ;;  %v6893_v56 = vpop.f32.mrb[44].mxu1 }
 0x258   :  { %v6873_v57 = vadd.f32 %v6872_v55, %v6871_v54  ;;  %v6874_v58 = vpop.f32.mrb[46].mxu0  ;;  %v6894_v59 = vpop.f32.mrb[45].mxu1 }
 0x259   :  { %v6875_v60 = vpop.f32.mrb[47].mxu0  ;;  %v6895_v62 = vadd.f32 %v6894_v59, %v6893_v56  ;;  %v6896_v63 = vpop.f32.mrb[46].mxu1 }
 0x25a   :  { %v5466_v61 = vadd.f32 %v6873_v57, %v5426_v53  ;;  %v6897_v0 = vpop.f32.mrb[47].mxu1 }
 0x25c   :  { %v5506_v1 = vadd.f32 %v6895_v62, %v5466_v61 }
 0x276   :  { %v6915_v2 = vpop.f32.mrb[48].mxu0 }
 0x277   :  { %v6916_v3 = vpop.f32.mrb[49].mxu0  ;;  %v6937_v4 = vpop.f32.mrb[48].mxu1 }
 0x278   :  { %v6917_v5 = vadd.f32 %v6916_v3, %v6915_v2  ;;  %v6918_v6 = vpop.f32.mrb[50].mxu0  ;;  %v6938_v7 = vpop.f32.mrb[49].mxu1 }
 0x279   :  { %v6919_v8 = vpop.f32.mrb[51].mxu0  ;;  %v6939_v10 = vadd.f32 %v6938_v7, %v6937_v4  ;;  %v6940_v11 = vpop.f32.mrb[50].mxu1 }
 0x27a   :  { %v5546_v9 = vadd.f32 %v6917_v5, %v5506_v1  ;;  %v6941_v12 = vpop.f32.mrb[51].mxu1 }
 0x27c   :  { %v5586_v13 = vadd.f32 %v6939_v10, %v5546_v9 }
 0x296   :  { %v6959_v14 = vpop.f32.mrb[52].mxu0 }
 0x297   :  { %v6960_v15 = vpop.f32.mrb[53].mxu0  ;;  %v6981_v16 = vpop.f32.mrb[52].mxu1 }
 0x298   :  { %v6961_v17 = vadd.f32 %v6960_v15, %v6959_v14  ;;  %v6962_v18 = vpop.f32.mrb[54].mxu0  ;;  %v6982_v19 = vpop.f32.mrb[53].mxu1 }
 0x299   :  { %v6963_v20 = vpop.f32.mrb[55].mxu0  ;;  %v6983_v22 = vadd.f32 %v6982_v19, %v6981_v16  ;;  %v6984_v23 = vpop.f32.mrb[54].mxu1 }
 0x29a   :  { %v5626_v21 = vadd.f32 %v6961_v17, %v5586_v13  ;;  %v6985_v24 = vpop.f32.mrb[55].mxu1 }
 0x29c   :  { %v5666_v25 = vadd.f32 %v6983_v22, %v5626_v21 }
 0x2b6   :  { %v7003_v26 = vpop.f32.mrb[56].mxu0 }
 0x2b7   :  { %v7004_v27 = vpop.f32.mrb[57].mxu0  ;;  %v7025_v28 = vpop.f32.mrb[56].mxu1 }
 0x2b8   :  { %v7005_v29 = vadd.f32 %v7004_v27, %v7003_v26  ;;  %v7006_v30 = vpop.f32.mrb[58].mxu0  ;;  %v7026_v31 = vpop.f32.mrb[57].mxu1 }
 0x2b9   :  { %v7007_v32 = vpop.f32.mrb[59].mxu0  ;;  %v7027_v34 = vadd.f32 %v7026_v31, %v7025_v28  ;;  %v7028_v35 = vpop.f32.mrb[58].mxu1 }
 0x2ba   :  { %v5706_v33 = vadd.f32 %v7005_v29, %v5666_v25  ;;  %v7029_v36 = vpop.f32.mrb[59].mxu1 }
 0x2bc   :  { %v5746_v37 = vadd.f32 %v7027_v34, %v5706_v33 }
 0x2d7   :  { %v7047_v41 = vpop.f32.mrb[60].mxu0 }
 0x2d8   :  { %v7048_v38 = vpop.f32.mrb[61].mxu0 }
 0x2d9   :  { %v7069_v39 = vpop.f32.mrb[60].mxu1  ;;  %v7049_v40 = vadd.f32 %v7048_v38, %v7047_v41  ;;  %v7050_v42 = vpop.f32.mrb[62].mxu0 }
 0x2da   :  { %v7070_v43 = vpop.f32.mrb[61].mxu1  ;;  %v7051_v44 = vpop.f32.mrb[63].mxu0 }
 0x2db   :  { %v5786_v45 = vadd.f32 %v7049_v40, %v5746_v37  ;;  %v7071_v46 = vadd.f32 %v7070_v43, %v7069_v39  ;;  %v7072_v47 = vpop.f32.mrb[62].mxu1 }
 0x2dc   :  { %v7073_v48 = vpop.f32.mrb[63].mxu1 }
 0x2dd   :  { %v5826_v49 = vadd.f32 %v7071_v46, %v5786_v45 }
 0x2df   :  { %v5832_v50 = vsel %vm5831_vm0, %v5826_v49, -inf }
 0x2e0   :  { %5833 = vmax.xlane.f32.xlu0 %v5832_v50 }
 0x36d   :  { %v5834_v51 = vpop.xlane.xlu0 %5833 }
 0x36e   :  { %v5835_v52 = vsub.f32 %v5826_v49, %v5834_v51 }
 0x370   :  { %v5836_v53 = vmul.f32 1.442695, %v5835_v52 }
 0x372   :  { %7605 = vpow2.f32 %v5836_v53 }
 0x37c   :  { %v7606_v54 = vpop.eup %7605 }
 0x37d   :  { %v5838_v55 = vsel %vm5831_vm0, %v7606_v54, 0.0 }
 0x37e   :  { %5839 = vadd.xlane.f32.xlu0 %v5838_v55 }
 0x40b   :  { %v5840_v56 = vpop.xlane.xlu0 %5839 }
 0x40c   :  { %7607 = vrcp.f32 %v5840_v56 }
 0x416   :  { %v7608_v57 = vpop.eup %7607 }
 0x417   :  { %v5842_v58 = vmul.f32 %v7608_v57, %v7606_v54 }
 0x419   :  { %5843 = vst [vmem:[#allocation2] sm:$0x3] %v5842_v58 }
 0x41a   :  { %7620 = shalt.err (!%p7617_p4)
}
 0x41b   :  { %s7621_s27 = scalar_lea.hbm %s9315_s3, 32 }
 0x41c   :  { %p7622_p5 = scmp.ne.s32.totalorder %s9315_s3, %s7621_s27  ;;  %p7625_p6 = scmp.lt.u32.totalorder %s7621_s27, %s9315_s3 }
 0x41e   :  { %p7627_p7 = pnand %p7625_p6, %p7622_p5 }
 0x420   :  { %7630 = shalt.err (!%p7627_p7)
}
 0x421   :  { %5853 = dma.vmem_to_hbm [thread:$0]  %s5851_s1, 32, %s9315_s3, [#allocation3]  }
 0x422   :  { %7631 = dma.done.wait [#allocation3], 32  }
 0x423   :  { %7632 = vsyncadd [#allocation3], 4294967264 }
 0x424   :  { %5857 = vsyncpa [#allocation3], 1 }

</bundles_post_ra>
